<compile_context>
chip_gen: v7x
topology: tpu7x:2x2x1
jax: 0.10.0
libtpu: 0.0.40
codegen_flags: <defaults>
</compile_context>

<pallas_src>
import jax
import jax.numpy as jnp
from jax.experimental import pallas as pl
from jax.experimental.pallas import tpu as pltpu


def _resblock_kernel(x_ref, w1_ref, w2_ref, b1_ref, b2_ref, out_ref,
                     xscr, midscr):
    """Fused ResBlock for one batch element (channels pre-padded to Cp).

    x_ref:   (1, H, W, Cp)   f32 input (padded lanes are exact zeros)
    w*_ref:  (3, 3*Cp, Cp)   bf16, BN scale folded in; rows ordered (dx, cin)
    b*_ref:  (1, Cp)         f32 folded BN bias
    out_ref: (1, H, W, Cp)
    xscr:    (H+2, W, 3*Cp)  bf16 im2row scratch for conv1 (vertical halo rows)
    midscr:  (H+2, W, 3*Cp)  bf16 im2row scratch for conv2
    """
    _, H, W, Cp = x_ref.shape
    C3 = 3 * Cp

    # Edge masks for the wrapped-around column of each horizontal roll,
    # computed once per grid step (JAX does not CSE broadcast_in_dim).
    col = jax.lax.broadcasted_iota(jnp.int32, (1, W, 1), 1)
    left_edge = col == 0          # column that wrapped for the x[j-1] tap
    right_edge = col == W - 1     # column that wrapped for the x[j+1] tap

    def stage(src_f32, scr):
        """Write [x(:,j-1) | x(:,j) | x(:,j+1)] side-by-side along channels
        into the vertically zero-padded bf16 scratch (rows 1..H)."""
        rolled_l = pltpu.roll(src_f32, 1, axis=1)        # t[:, j] = x[:, j-1]
        rolled_r = pltpu.roll(src_f32, W - 1, axis=1)    # t[:, j] = x[:, j+1]
        sl = jnp.where(left_edge, jnp.zeros_like(src_f32), rolled_l)
        sr = jnp.where(right_edge, jnp.zeros_like(src_f32), rolled_r)
        scr[0] = jnp.zeros((W, C3), scr.dtype)           # top halo row
        scr[H + 1] = jnp.zeros((W, C3), scr.dtype)       # bottom halo row
        scr[1:H + 1] = jnp.concatenate([sl, src_f32, sr],
                                       axis=-1).astype(scr.dtype)

    def conv3x3(scr, w_ref, b_ref):
        # 3x3 / stride 1 / pad 1 as 3 row-band matmuls (K = 3*Cp), bf16
        # operands, f32 accumulation, bias pre-loaded into the accumulator.
        acc = jnp.broadcast_to(b_ref[...], (H * W, Cp)).astype(jnp.float32)
        for dy in range(3):
            # Leading-dim slice of the scratch: sublane/lane aligned, no
            # relayout (W kept a multiple of the sublane tile by the caller).
            patch = scr[dy:dy + H].reshape(H * W, C3)
            acc = acc + jnp.dot(patch, w_ref[dy],
                                preferred_element_type=jnp.float32)
        return acc

    x = x_ref[0].astype(jnp.float32)                     # (H, W, Cp)

    # conv1 -> folded BN1 -> ReLU
    stage(x, xscr)
    y1 = jnp.maximum(conv3x3(xscr, w1_ref, b1_ref), 0.0)

    # conv2 -> folded BN2 -> + identity residual -> ReLU
    stage(y1.reshape(H, W, Cp), midscr)
    y2 = conv3x3(midscr, w2_ref, b2_ref)
    out = jnp.maximum(y2 + x.reshape(H * W, Cp), 0.0)
    out_ref[0] = out.reshape(H, W, Cp).astype(out_ref.dtype)


@jax.jit
def resblock_forward(x_nchw, w1, w2, gamma1, beta1, mean1, var1,
                     gamma2, beta2, mean2, var2, eps=1e-5):
    """ResBlock forward (eval-mode BN). x_nchw: (N, Cin, H, W) -> (N, Cout, H, W)."""
    N, Cin, H, W = x_nchw.shape
    Cout = w1.shape[3]
    if Cin != Cout:
        raise ValueError("identity residual requires inplanes == planes "
                         "(this kernel implements the downsample=None, stride=1 case)")
    # TODO(synk): stride=2 / downsample path of ResBlock is not implemented.
    # TODO(synk): for large H*W add row-band tiling (grid=(N, H//BR) with a
    #             1-row halo) so the per-step VMEM footprint fits v7x's 64 MiB
    #             and both v7x TensorCores get work at N=1.
    # TODO(synk): if adjacent layers run NHWC, drop the NCHW<->NHWC transposes
    #             below and keep activations NHWC end-to-end.

    LANE = 128
    Cp = ((Cout + LANE - 1) // LANE) * LANE   # lane-dense channel padding
    pc = Cp - Cout

    # Fold eval-mode BatchNorm into the conv weights (f32, before the bf16
    # cast) and a per-channel bias.
    s1 = gamma1 / jnp.sqrt(var1 + eps)
    b1 = beta1 - mean1 * s1
    s2 = gamma2 / jnp.sqrt(var2 + eps)
    b2 = beta2 - mean2 * s2
    w1f = w1 * s1                              # scale out-channel axis
    w2f = w2 * s2

    # Pad channel axes, reshape to the (dy, 3*Cp, Cp) "im2row" layout
    # (contraction rows ordered dx-major, matching the staged channel order),
    # cast to bf16.
    w1p = jnp.pad(w1f, ((0, 0), (0, 0), (0, pc), (0, pc))) \
             .reshape(3, 3 * Cp, Cp).astype(jnp.bfloat16)
    w2p = jnp.pad(w2f, ((0, 0), (0, 0), (0, pc), (0, pc))) \
             .reshape(3, 3 * Cp, Cp).astype(jnp.bfloat16)
    b1p = jnp.pad(b1, (0, pc)).reshape(1, Cp).astype(jnp.float32)
    b2p = jnp.pad(b2, (0, pc)).reshape(1, Cp).astype(jnp.float32)

    # NCHW -> NHWC, pad channels to Cp (padded lanes are exact zeros and stay
    # zero through conv / BN / ReLU / residual; sliced off after the kernel).
    x = jnp.transpose(x_nchw, (0, 2, 3, 1))
    x = jnp.pad(x, ((0, 0), (0, 0), (0, 0), (0, pc)))

    # Explicit scoped-VMEM budget (scratches + double-buffered in/out blocks
    # + weights + temporaries), clamped to [32 MiB, 64 MiB] so it is valid on
    # v5e/v6e/v7x alike.
    vmem_need = (2 * (H + 2) * W * 3 * Cp * 2        # bf16 im2row scratches
                 + 4 * H * W * Cp * 4                # double-buffered in/out blocks
                 + 4 * 3 * 3 * Cp * Cp * 2           # double-buffered weights
                 + 6 * H * W * Cp * 4)               # in-kernel temporaries headroom
    vmem_limit = int(min(max(vmem_need, 32 << 20), 64 << 20))

    out_nhwc = pl.pallas_call(
        _resblock_kernel,
        out_shape=jax.ShapeDtypeStruct((N, H, W, Cp), x.dtype),
        grid_spec=pltpu.PrefetchScalarGridSpec(
            num_scalar_prefetch=0,
            grid=(N,),
            in_specs=[
                pl.BlockSpec((1, H, W, Cp), lambda n: (n, 0, 0, 0)),
                pl.BlockSpec((3, 3 * Cp, Cp), lambda n: (0, 0, 0)),
                pl.BlockSpec((3, 3 * Cp, Cp), lambda n: (0, 0, 0)),
                pl.BlockSpec((1, Cp), lambda n: (0, 0)),
                pl.BlockSpec((1, Cp), lambda n: (0, 0)),
            ],
            out_specs=pl.BlockSpec((1, H, W, Cp), lambda n: (n, 0, 0, 0)),
            scratch_shapes=[
                pltpu.VMEM((H + 2, W, 3 * Cp), jnp.bfloat16),
                pltpu.VMEM((H + 2, W, 3 * Cp), jnp.bfloat16),
            ],
        ),
        compiler_params=pltpu.CompilerParams(
            dimension_semantics=("parallel",),       # batch items independent
            vmem_limit_bytes=vmem_limit),
    )(x, w1p, w2p, b1p, b2p)

    out_nhwc = out_nhwc[..., :Cout]                   # drop padded lanes
    return jnp.transpose(out_nhwc, (0, 3, 1, 2))      # NHWC -> NCHW


def _reference(x_nchw, w1, w2, gamma1, beta1, mean1, var1,
               gamma2, beta2, mean2, var2, eps=1e-5):
    """Pure-JAX reference with the same precision policy as the kernel:
    eval-mode BN folded into the weights in f32, bf16 conv operands, f32
    accumulation, f32 residual add."""
    s1 = gamma1 / jnp.sqrt(var1 + eps)
    b1 = beta1 - mean1 * s1
    s2 = gamma2 / jnp.sqrt(var2 + eps)
    b2 = beta2 - mean2 * s2
    dn = ("NHWC", "HWIO", "NHWC")
    x = jnp.transpose(x_nchw, (0, 2, 3, 1))
    y = jax.lax.conv_general_dilated(
        x.astype(jnp.bfloat16), (w1 * s1).astype(jnp.bfloat16), (1, 1), "SAME",
        dimension_numbers=dn, preferred_element_type=jnp.float32) + b1
    y = jnp.maximum(y, 0.0)
    y = jax.lax.conv_general_dilated(
        y.astype(jnp.bfloat16), (w2 * s2).astype(jnp.bfloat16), (1, 1), "SAME",
        dimension_numbers=dn, preferred_element_type=jnp.float32) + b2
    y = jnp.maximum(y + x, 0.0)
    return jnp.transpose(y, (0, 3, 1, 2))


if __name__ == "__main__":
    # ResBlock(inplanes=4, planes=4, stride=1) on a small deterministic input.
    N, C, H, W = 2, 4, 16, 16
    key = jax.random.PRNGKey(0)
    kx, kw1, kw2, kg1, kb1, km1, kv1, kg2, kb2, km2, kv2 = jax.random.split(key, 11)

    x = jax.random.normal(kx, (N, C, H, W), jnp.float32)

    # Conv weights in HWIO layout (kh, kw, in, out), no bias (bias=False).
    w1 = jax.random.normal(kw1, (3, 3, C, C), jnp.float32) * 0.1
    w2 = jax.random.normal(kw2, (3, 3, C, C), jnp.float32) * 0.1

    # BatchNorm parameters / running stats (eval-mode BN).
    gamma1 = 1.0 + 0.1 * jax.random.normal(kg1, (C,), jnp.float32)
    beta1 = 0.1 * jax.random.normal(kb1, (C,), jnp.float32)
    mean1 = 0.1 * jax.random.normal(km1, (C,), jnp.float32)
    var1 = 1.0 + 0.1 * jax.random.uniform(kv1, (C,), jnp.float32)
    gamma2 = 1.0 + 0.1 * jax.random.normal(kg2, (C,), jnp.float32)
    beta2 = 0.1 * jax.random.normal(kb2, (C,), jnp.float32)
    mean2 = 0.1 * jax.random.normal(km2, (C,), jnp.float32)
    var2 = 1.0 + 0.1 * jax.random.uniform(kv2, (C,), jnp.float32)

    out = resblock_forward(x, w1, w2, gamma1, beta1, mean1, var1,
                           gamma2, beta2, mean2, var2)
    out = jax.block_until_ready(out)

    ref = _reference(x, w1, w2, gamma1, beta1, mean1, var1,
                     gamma2, beta2, mean2, var2)
    assert out.shape == (N, C, H, W)
    assert jnp.allclose(out, ref, atol=1e-2, rtol=1e-2), "mismatch vs reference"

    print("KERNEL_OK")
</pallas_src>

<mosaic_0001>
module attributes {stable_mosaic.version = 11 : i64} {
  func.func @_resblock_kernel(%arg0: i32, %arg1: memref<1x16x16x128xf32, #tpu.memory_space<vmem>>, %arg2: memref<3x384x128xbf16, #tpu.memory_space<vmem>>, %arg3: memref<3x384x128xbf16, #tpu.memory_space<vmem>>, %arg4: memref<1x128xf32, #tpu.memory_space<vmem>>, %arg5: memref<1x128xf32, #tpu.memory_space<vmem>>, %arg6: memref<1x16x16x128xf32, #tpu.memory_space<vmem>>, %arg7: memref<18x16x384xbf16, #tpu.memory_space<vmem>>, %arg8: memref<18x16x384xbf16, #tpu.memory_space<vmem>>) attributes {dimension_semantics = [#tpu.dimension_semantics<parallel>], iteration_bounds = array<i64: 2>, scalar_prefetch = 0 : i64, scratch_operands = 2 : i64, tpu.core_type = #tpu.core_type<tc>, window_params = [{transform_indices = @transform_0, window_bounds = array<i64: 1, 16, 16, 128>}, {pipeline_mode = #tpu.pipeline_mode<synchronous>, transform_indices = @transform_1, window_bounds = array<i64: 3, 384, 128>}, {pipeline_mode = #tpu.pipeline_mode<synchronous>, transform_indices = @transform_2, window_bounds = array<i64: 3, 384, 128>}, {pipeline_mode = #tpu.pipeline_mode<synchronous>, transform_indices = @transform_3, window_bounds = array<i64: 1, 128>}, {pipeline_mode = #tpu.pipeline_mode<synchronous>, transform_indices = @transform_4, window_bounds = array<i64: 1, 128>}, {transform_indices = @transform_5, window_bounds = array<i64: 1, 16, 16, 128>}]} {
    %0 = tpu.iota {dimensions = array<i32: 1>} : vector<1x16x1xi32>
    %c0_i32 = arith.constant 0 : i32
    %1 = vector.broadcast %c0_i32 : i32 to vector<1x16x1xi32>
    %2 = arith.cmpi eq, %0, %1 : vector<1x16x1xi32>
    %c15_i32 = arith.constant 15 : i32
    %3 = vector.broadcast %c15_i32 : i32 to vector<1x16x1xi32>
    %4 = arith.cmpi eq, %0, %3 : vector<1x16x1xi32>
    %c0 = arith.constant 0 : index
    %c0_0 = arith.constant 0 : index
    %c0_1 = arith.constant 0 : index
    %c0_2 = arith.constant 0 : index
    %5 = vector.load %arg1[%c0, %c0_0, %c0_1, %c0_2] : memref<1x16x16x128xf32, #tpu.memory_space<vmem>>, vector<1x16x16x128xf32>
    %6 = vector.shape_cast %5 : vector<1x16x16x128xf32> to vector<16x16x128xf32>
    %c1_i32 = arith.constant 1 : i32
    %7 = tpu.dynamic_rotate %6 by %c1_i32 dim 1 : vector<16x16x128xf32>, i32 -> vector<16x16x128xf32>
    %c15_i32_3 = arith.constant 15 : i32
    %8 = tpu.dynamic_rotate %6 by %c15_i32_3 dim 1 : vector<16x16x128xf32>, i32 -> vector<16x16x128xf32>
    %cst = arith.constant 0.000000e+00 : f32
    %9 = vector.broadcast %cst : f32 to vector<16x16x128xf32>
    %10 = vector.shape_cast %2 : vector<1x16x1xi1> to vector<1x16x1xi1>
    %11 = vector.broadcast %10 : vector<1x16x1xi1> to vector<16x16x128xi1>
    %12 = arith.select %11, %9, %7 : vector<16x16x128xi1>, vector<16x16x128xf32>
    %cst_4 = arith.constant 0.000000e+00 : f32
    %13 = vector.broadcast %cst_4 : f32 to vector<16x16x128xf32>
    %14 = vector.shape_cast %4 : vector<1x16x1xi1> to vector<1x16x1xi1>
    %15 = vector.broadcast %14 : vector<1x16x1xi1> to vector<16x16x128xi1>
    %16 = arith.select %15, %13, %8 : vector<16x16x128xi1>, vector<16x16x128xf32>
    %cst_5 = arith.constant 0.000000e+00 : bf16
    %17 = vector.broadcast %cst_5 : bf16 to vector<16x384xbf16>
    %c0_6 = arith.constant 0 : index
    %c0_7 = arith.constant 0 : index
    %c0_8 = arith.constant 0 : index
    %18 = vector.load %arg7[%c0_6, %c0_7, %c0_8] : memref<18x16x384xbf16, #tpu.memory_space<vmem>>, vector<1x16x384xbf16>
    %19 = vector.shape_cast %18 : vector<1x16x384xbf16> to vector<16x384xbf16>
    %20 = vector.shape_cast %17 : vector<16x384xbf16> to vector<1x16x384xbf16>
    tpu.vector_store %arg7[%c0_6, %c0_7, %c0_8], %20 {strides = array<i32>} : memref<18x16x384xbf16, #tpu.memory_space<vmem>>, vector<1x16x384xbf16>,
    %cst_9 = arith.constant 0.000000e+00 : bf16
    %21 = vector.broadcast %cst_9 : bf16 to vector<16x384xbf16>
    %c17 = arith.constant 17 : index
    %c0_10 = arith.constant 0 : index
    %c0_11 = arith.constant 0 : index
    %22 = vector.load %arg7[%c17, %c0_10, %c0_11] : memref<18x16x384xbf16, #tpu.memory_space<vmem>>, vector<1x16x384xbf16>
    %23 = vector.shape_cast %22 : vector<1x16x384xbf16> to vector<16x384xbf16>
    %24 = vector.shape_cast %21 : vector<16x384xbf16> to vector<1x16x384xbf16>
    tpu.vector_store %arg7[%c17, %c0_10, %c0_11], %24 {strides = array<i32>} : memref<18x16x384xbf16, #tpu.memory_space<vmem>>, vector<1x16x384xbf16>,
    %25 = tpu.concatenate %12, %6, %16 in 2 : vector<16x16x128xf32>, vector<16x16x128xf32>, vector<16x16x128xf32> -> vector<16x16x384xf32>
    %26 = arith.truncf %25 : vector<16x16x384xf32> to vector<16x16x384xbf16>
    %c1 = arith.constant 1 : index
    %c0_12 = arith.constant 0 : index
    %c0_13 = arith.constant 0 : index
    %27 = vector.load %arg7[%c1, %c0_12, %c0_13] : memref<18x16x384xbf16, #tpu.memory_space<vmem>>, vector<16x16x384xbf16>
    tpu.vector_store %arg7[%c1, %c0_12, %c0_13], %26 {strides = array<i32>} : memref<18x16x384xbf16, #tpu.memory_space<vmem>>, vector<16x16x384xbf16>,
    %c0_14 = arith.constant 0 : index
    %c0_15 = arith.constant 0 : index
    %28 = vector.load %arg4[%c0_14, %c0_15] : memref<1x128xf32, #tpu.memory_space<vmem>>, vector<1x128xf32>
    %29 = vector.shape_cast %28 : vector<1x128xf32> to vector<1x128xf32>
    %30 = vector.broadcast %29 : vector<1x128xf32> to vector<256x128xf32>
    %c0_16 = arith.constant 0 : index
    %c0_17 = arith.constant 0 : index
    %c0_18 = arith.constant 0 : index
    %31 = vector.load %arg7[%c0_16, %c0_17, %c0_18] : memref<18x16x384xbf16, #tpu.memory_space<vmem>>, vector<16x16x384xbf16>
    %32 = vector.shape_cast %31 : vector<16x16x384xbf16> to vector<256x384xbf16>
    %c0_19 = arith.constant 0 : index
    %c0_20 = arith.constant 0 : index
    %c0_21 = arith.constant 0 : index
    %33 = vector.load %arg2[%c0_19, %c0_20, %c0_21] : memref<3x384x128xbf16, #tpu.memory_space<vmem>>, vector<1x384x128xbf16>
    %34 = vector.shape_cast %33 : vector<1x384x128xbf16> to vector<384x128xbf16>
    %cst_22 = arith.constant dense<0.000000e+00> : vector<256x128xf32>
    %35 = tpu.matmul %32, %34, %cst_22 {dimension_numbers = #tpu.dot_dimension_numbers<[1], [0], [0], [1], [0, 0, 1, 1], [], []>} : vector<256x384xbf16>, vector<384x128xbf16>, vector<256x128xf32> -> vector<256x128xf32>
    %36 = arith.addf %30, %35 : vector<256x128xf32>
    %c1_23 = arith.constant 1 : index
    %c0_24 = arith.constant 0 : index
    %c0_25 = arith.constant 0 : index
    %37 = vector.load %arg7[%c1_23, %c0_24, %c0_25] : memref<18x16x384xbf16, #tpu.memory_space<vmem>>, vector<16x16x384xbf16>
    %38 = vector.shape_cast %37 : vector<16x16x384xbf16> to vector<256x384xbf16>
    %c1_26 = arith.constant 1 : index
    %c0_27 = arith.constant 0 : index
    %c0_28 = arith.constant 0 : index
    %39 = vector.load %arg2[%c1_26, %c0_27, %c0_28] : memref<3x384x128xbf16, #tpu.memory_space<vmem>>, vector<1x384x128xbf16>
    %40 = vector.shape_cast %39 : vector<1x384x128xbf16> to vector<384x128xbf16>
    %cst_29 = arith.constant dense<0.000000e+00> : vector<256x128xf32>
    %41 = tpu.matmul %38, %40, %cst_29 {dimension_numbers = #tpu.dot_dimension_numbers<[1], [0], [0], [1], [0, 0, 1, 1], [], []>} : vector<256x384xbf16>, vector<384x128xbf16>, vector<256x128xf32> -> vector<256x128xf32>
    %42 = arith.addf %36, %41 : vector<256x128xf32>
    %c2 = arith.constant 2 : index
    %c0_30 = arith.constant 0 : index
    %c0_31 = arith.constant 0 : index
    %43 = vector.load %arg7[%c2, %c0_30, %c0_31] : memref<18x16x384xbf16, #tpu.memory_space<vmem>>, vector<16x16x384xbf16>
    %44 = vector.shape_cast %43 : vector<16x16x384xbf16> to vector<256x384xbf16>
    %c2_32 = arith.constant 2 : index
    %c0_33 = arith.constant 0 : index
    %c0_34 = arith.constant 0 : index
    %45 = vector.load %arg2[%c2_32, %c0_33, %c0_34] : memref<3x384x128xbf16, #tpu.memory_space<vmem>>, vector<1x384x128xbf16>
    %46 = vector.shape_cast %45 : vector<1x384x128xbf16> to vector<384x128xbf16>
    %cst_35 = arith.constant dense<0.000000e+00> : vector<256x128xf32>
    %47 = tpu.matmul %44, %46, %cst_35 {dimension_numbers = #tpu.dot_dimension_numbers<[1], [0], [0], [1], [0, 0, 1, 1], [], []>} : vector<256x384xbf16>, vector<384x128xbf16>, vector<256x128xf32> -> vector<256x128xf32>
    %48 = arith.addf %42, %47 : vector<256x128xf32>
    %cst_36 = arith.constant 0.000000e+00 : f32
    %49 = vector.broadcast %cst_36 : f32 to vector<256x128xf32>
    %50 = arith.maximumf %48, %49 : vector<256x128xf32>
    %51 = vector.shape_cast %50 : vector<256x128xf32> to vector<16x16x128xf32>
    %c1_i32_37 = arith.constant 1 : i32
    %52 = tpu.dynamic_rotate %51 by %c1_i32_37 dim 1 : vector<16x16x128xf32>, i32 -> vector<16x16x128xf32>
    %c15_i32_38 = arith.constant 15 : i32
    %53 = tpu.dynamic_rotate %51 by %c15_i32_38 dim 1 : vector<16x16x128xf32>, i32 -> vector<16x16x128xf32>
    %cst_39 = arith.constant 0.000000e+00 : f32
    %54 = vector.broadcast %cst_39 : f32 to vector<16x16x128xf32>
    %55 = vector.shape_cast %2 : vector<1x16x1xi1> to vector<1x16x1xi1>
    %56 = vector.broadcast %55 : vector<1x16x1xi1> to vector<16x16x128xi1>
    %57 = arith.select %56, %54, %52 : vector<16x16x128xi1>, vector<16x16x128xf32>
    %cst_40 = arith.constant 0.000000e+00 : f32
    %58 = vector.broadcast %cst_40 : f32 to vector<16x16x128xf32>
    %59 = vector.shape_cast %4 : vector<1x16x1xi1> to vector<1x16x1xi1>
    %60 = vector.broadcast %59 : vector<1x16x1xi1> to vector<16x16x128xi1>
    %61 = arith.select %60, %58, %53 : vector<16x16x128xi1>, vector<16x16x128xf32>
    %cst_41 = arith.constant 0.000000e+00 : bf16
    %62 = vector.broadcast %cst_41 : bf16 to vector<16x384xbf16>
    %c0_42 = arith.constant 0 : index
    %c0_43 = arith.constant 0 : index
    %c0_44 = arith.constant 0 : index
    %63 = vector.load %arg8[%c0_42, %c0_43, %c0_44] : memref<18x16x384xbf16, #tpu.memory_space<vmem>>, vector<1x16x384xbf16>
    %64 = vector.shape_cast %63 : vector<1x16x384xbf16> to vector<16x384xbf16>
    %65 = vector.shape_cast %62 : vector<16x384xbf16> to vector<1x16x384xbf16>
    tpu.vector_store %arg8[%c0_42, %c0_43, %c0_44], %65 {strides = array<i32>} : memref<18x16x384xbf16, #tpu.memory_space<vmem>>, vector<1x16x384xbf16>,
    %cst_45 = arith.constant 0.000000e+00 : bf16
    %66 = vector.broadcast %cst_45 : bf16 to vector<16x384xbf16>
    %c17_46 = arith.constant 17 : index
    %c0_47 = arith.constant 0 : index
    %c0_48 = arith.constant 0 : index
    %67 = vector.load %arg8[%c17_46, %c0_47, %c0_48] : memref<18x16x384xbf16, #tpu.memory_space<vmem>>, vector<1x16x384xbf16>
    %68 = vector.shape_cast %67 : vector<1x16x384xbf16> to vector<16x384xbf16>
    %69 = vector.shape_cast %66 : vector<16x384xbf16> to vector<1x16x384xbf16>
    tpu.vector_store %arg8[%c17_46, %c0_47, %c0_48], %69 {strides = array<i32>} : memref<18x16x384xbf16, #tpu.memory_space<vmem>>, vector<1x16x384xbf16>,
    %70 = tpu.concatenate %57, %51, %61 in 2 : vector<16x16x128xf32>, vector<16x16x128xf32>, vector<16x16x128xf32> -> vector<16x16x384xf32>
    %71 = arith.truncf %70 : vector<16x16x384xf32> to vector<16x16x384xbf16>
    %c1_49 = arith.constant 1 : index
    %c0_50 = arith.constant 0 : index
    %c0_51 = arith.constant 0 : index
    %72 = vector.load %arg8[%c1_49, %c0_50, %c0_51] : memref<18x16x384xbf16, #tpu.memory_space<vmem>>, vector<16x16x384xbf16>
    tpu.vector_store %arg8[%c1_49, %c0_50, %c0_51], %71 {strides = array<i32>} : memref<18x16x384xbf16, #tpu.memory_space<vmem>>, vector<16x16x384xbf16>,
    %c0_52 = arith.constant 0 : index
    %c0_53 = arith.constant 0 : index
    %73 = vector.load %arg5[%c0_52, %c0_53] : memref<1x128xf32, #tpu.memory_space<vmem>>, vector<1x128xf32>
    %74 = vector.shape_cast %73 : vector<1x128xf32> to vector<1x128xf32>
    %75 = vector.broadcast %74 : vector<1x128xf32> to vector<256x128xf32>
    %c0_54 = arith.constant 0 : index
    %c0_55 = arith.constant 0 : index
    %c0_56 = arith.constant 0 : index
    %76 = vector.load %arg8[%c0_54, %c0_55, %c0_56] : memref<18x16x384xbf16, #tpu.memory_space<vmem>>, vector<16x16x384xbf16>
    %77 = vector.shape_cast %76 : vector<16x16x384xbf16> to vector<256x384xbf16>
    %c0_57 = arith.constant 0 : index
    %c0_58 = arith.constant 0 : index
    %c0_59 = arith.constant 0 : index
    %78 = vector.load %arg3[%c0_57, %c0_58, %c0_59] : memref<3x384x128xbf16, #tpu.memory_space<vmem>>, vector<1x384x128xbf16>
    %79 = vector.shape_cast %78 : vector<1x384x128xbf16> to vector<384x128xbf16>
    %cst_60 = arith.constant dense<0.000000e+00> : vector<256x128xf32>
    %80 = tpu.matmul %77, %79, %cst_60 {dimension_numbers = #tpu.dot_dimension_numbers<[1], [0], [0], [1], [0, 0, 1, 1], [], []>} : vector<256x384xbf16>, vector<384x128xbf16>, vector<256x128xf32> -> vector<256x128xf32>
    %81 = arith.addf %75, %80 : vector<256x128xf32>
    %c1_61 = arith.constant 1 : index
    %c0_62 = arith.constant 0 : index
    %c0_63 = arith.constant 0 : index
    %82 = vector.load %arg8[%c1_61, %c0_62, %c0_63] : memref<18x16x384xbf16, #tpu.memory_space<vmem>>, vector<16x16x384xbf16>
    %83 = vector.shape_cast %82 : vector<16x16x384xbf16> to vector<256x384xbf16>
    %c1_64 = arith.constant 1 : index
    %c0_65 = arith.constant 0 : index
    %c0_66 = arith.constant 0 : index
    %84 = vector.load %arg3[%c1_64, %c0_65, %c0_66] : memref<3x384x128xbf16, #tpu.memory_space<vmem>>, vector<1x384x128xbf16>
    %85 = vector.shape_cast %84 : vector<1x384x128xbf16> to vector<384x128xbf16>
    %cst_67 = arith.constant dense<0.000000e+00> : vector<256x128xf32>
    %86 = tpu.matmul %83, %85, %cst_67 {dimension_numbers = #tpu.dot_dimension_numbers<[1], [0], [0], [1], [0, 0, 1, 1], [], []>} : vector<256x384xbf16>, vector<384x128xbf16>, vector<256x128xf32> -> vector<256x128xf32>
    %87 = arith.addf %81, %86 : vector<256x128xf32>
    %c2_68 = arith.constant 2 : index
    %c0_69 = arith.constant 0 : index
    %c0_70 = arith.constant 0 : index
    %88 = vector.load %arg8[%c2_68, %c0_69, %c0_70] : memref<18x16x384xbf16, #tpu.memory_space<vmem>>, vector<16x16x384xbf16>
    %89 = vector.shape_cast %88 : vector<16x16x384xbf16> to vector<256x384xbf16>
    %c2_71 = arith.constant 2 : index
    %c0_72 = arith.constant 0 : index
    %c0_73 = arith.constant 0 : index
    %90 = vector.load %arg3[%c2_71, %c0_72, %c0_73] : memref<3x384x128xbf16, #tpu.memory_space<vmem>>, vector<1x384x128xbf16>
    %91 = vector.shape_cast %90 : vector<1x384x128xbf16> to vector<384x128xbf16>
    %cst_74 = arith.constant dense<0.000000e+00> : vector<256x128xf32>
    %92 = tpu.matmul %89, %91, %cst_74 {dimension_numbers = #tpu.dot_dimension_numbers<[1], [0], [0], [1], [0, 0, 1, 1], [], []>} : vector<256x384xbf16>, vector<384x128xbf16>, vector<256x128xf32> -> vector<256x128xf32>
    %93 = arith.addf %87, %92 : vector<256x128xf32>
    %94 = vector.shape_cast %6 : vector<16x16x128xf32> to vector<256x128xf32>
    %95 = arith.addf %93, %94 : vector<256x128xf32>
    %cst_75 = arith.constant 0.000000e+00 : f32
    %96 = vector.broadcast %cst_75 : f32 to vector<256x128xf32>
    %97 = arith.maximumf %95, %96 : vector<256x128xf32>
    %98 = vector.shape_cast %97 : vector<256x128xf32> to vector<16x16x128xf32>
    %c0_76 = arith.constant 0 : index
    %c0_77 = arith.constant 0 : index
    %c0_78 = arith.constant 0 : index
    %c0_79 = arith.constant 0 : index
    %99 = vector.load %arg6[%c0_76, %c0_77, %c0_78, %c0_79] : memref<1x16x16x128xf32, #tpu.memory_space<vmem>>, vector<1x16x16x128xf32>
    %100 = vector.shape_cast %99 : vector<1x16x16x128xf32> to vector<16x16x128xf32>
    %101 = vector.shape_cast %98 : vector<16x16x128xf32> to vector<1x16x16x128xf32>
    tpu.vector_store %arg6[%c0_76, %c0_77, %c0_78, %c0_79], %101 {strides = array<i32>} : memref<1x16x16x128xf32, #tpu.memory_space<vmem>>, vector<1x16x16x128xf32>,
    return
  }
  func.func @transform_0(%arg0: i32) -> (i32, i32, i32, i32) {
    %c0_i32 = arith.constant 0 : i32
    %c0_i32_0 = arith.constant 0 : i32
    %c0_i32_1 = arith.constant 0 : i32
    %c0_i32_2 = arith.constant 0 : i32
    return %arg0, %c0_i32, %c0_i32_0, %c0_i32_1 : i32, i32, i32, i32
  }
  func.func @transform_1(%arg0: i32) -> (i32, i32, i32) {
    %c0_i32 = arith.constant 0 : i32
    %c0_i32_0 = arith.constant 0 : i32
    %c0_i32_1 = arith.constant 0 : i32
    %c0_i32_2 = arith.constant 0 : i32
    return %c0_i32, %c0_i32_0, %c0_i32_1 : i32, i32, i32
  }
  func.func @transform_2(%arg0: i32) -> (i32, i32, i32) {
    %c0_i32 = arith.constant 0 : i32
    %c0_i32_0 = arith.constant 0 : i32
    %c0_i32_1 = arith.constant 0 : i32
    %c0_i32_2 = arith.constant 0 : i32
    return %c0_i32, %c0_i32_0, %c0_i32_1 : i32, i32, i32
  }
  func.func @transform_3(%arg0: i32) -> (i32, i32) {
    %c0_i32 = arith.constant 0 : i32
    %c0_i32_0 = arith.constant 0 : i32
    %c0_i32_1 = arith.constant 0 : i32
    return %c0_i32, %c0_i32_0 : i32, i32
  }
  func.func @transform_4(%arg0: i32) -> (i32, i32) {
    %c0_i32 = arith.constant 0 : i32
    %c0_i32_0 = arith.constant 0 : i32
    %c0_i32_1 = arith.constant 0 : i32
    return %c0_i32, %c0_i32_0 : i32, i32
  }
  func.func @transform_5(%arg0: i32) -> (i32, i32, i32, i32) {
    %c0_i32 = arith.constant 0 : i32
    %c0_i32_0 = arith.constant 0 : i32
    %c0_i32_1 = arith.constant 0 : i32
    %c0_i32_2 = arith.constant 0 : i32
    return %arg0, %c0_i32, %c0_i32_0, %c0_i32_1 : i32, i32, i32, i32
  }
}

</mosaic_0001>

<bundles_post_ra>
// kernel: resblock_forward.1
= control target key start
LH: loop header
LB: loop body
LE: loop exit
PB: predicated region body
PF: predicated region fallthrough
CT: control target
= control target key end

     0   :  { %s7437_s18 = smov 0   ;;  %s10002_s0 = inlined_call_operand.vmem [shape: f32[2,16,16,128], index: 0, kind: input, shape index: {}]   ;;  %s10003_s1 = inlined_call_operand.vmem [shape: bf16[3,384,128], index: 1, kind: input, shape index: {}]   ;;  %s10004_s2 = inlined_call_operand.vmem [shape: bf16[3,384,128], index: 2, kind: input, shape index: {}]   ;;  %s10005_s3 = inlined_call_operand.vmem [shape: f32[1,128], index: 3, kind: input, shape index: {}]   ;;  %s10006_s4 = inlined_call_operand.vmem [shape: f32[1,128], index: 4, kind: input, shape index: {}]   ;;  %s10007_s5 = inlined_call_operand.vmem [shape: f32[2,16,16,128], index: 5, kind: output, shape index: {}]  }
   0x1 LB: > { %s4634_s19 = sadd.s32 4294967295, %s7403_s18   ;;  %p4638_p0 = scmp.ge.s32.totalorder %s7403_s18, 1  ;;  %s7403_s18 = sphi %s7437_s18, %s15_s18  }
   0x2   : > { %p187_p1 = scmp.lt.s32.totalorder %s7403_s18, 3 }
   0x4   : > { %p188_p2 = pnand %p4638_p0, %p187_p1 }
   0x6   : > { %191 = sbr.rel (%p188_p2) target bundleno = 1058 (0x422), region = 40 }
   0xd   : > { %v7221_v0 = vld [vmem:[%s10003_s1 + $0x40] sm:$0xff]   ;;  %v226_v1 = vlaneseq  ;;  %v10008_v3 = vmov 0   ;;  %v7225_v7 = vld [vmem:[%s10003_s1 + $0x48] sm:$0xff]   ;;  %v7229_v12 = vld [vmem:[%s10003_s1 + $0x50] sm:$0xff]   ;;  %p215_p3 = scmp.lt.s32.totalorder %s4634_s19, 1  ;;  %vm7406_vm3 = vmmov 1  }
   0xe   : > { %v7222_v2 = vld [vmem:[%s10003_s1 + $0x100] sm:$0xff]   ;;  %850 = vmatprep.mubr.bf16.mxu0 %v10008_v3  ;;  %5721 = vmatprep.subr.bf16.mxu0 %v7221_v0  ;;  %v7226_v8 = vld [vmem:[%s10003_s1 + $0x108] sm:$0xff]   ;;  %v7230_v13 = vld [vmem:[%s10003_s1 + $0x110] sm:$0xff]   ;;  %v10048_v42 = vmov 0  ;;  %v10051_v46 = vmov 0 }
   0xf   : > { %v7223_v4 = vld [vmem:[%s10003_s1] sm:$0xff]   ;;  %5857 = vmatprep.subr.bf16.mxu1 %v7222_v2  ;;  %v7458_v6 = vshrl.u32 %v226_v1, 7  ;;  %v7227_v10 = vld [vmem:[%s10003_s1 + $0x8] sm:$0xff]   ;;  %v7231_v14 = vld [vmem:[%s10003_s1 + $0x10] sm:$0xff]   ;;  %s10130_s19 = smov (!%p215_p3, %s4634_s19), 1 }
  0x10   : > { %v7224_v5 = vld [vmem:[%s10003_s1 + $0xc0] sm:$0xff]   ;;  %5722 = vmatpush3.bf16.msra.mxu0 %v7223_v4  ;;  %v7228_v11 = vld [vmem:[%s10003_s1 + $0xc8] sm:$0xff]   ;;  %v7232_v15 = vld [vmem:[%s10003_s1 + $0xd0] sm:$0xff]   ;;  %s4983_s28 = sshll.u32 %s10130_s19, 8 }
  0x11   : > { %10047 = vst [vmem:[#allocation4_spill] sm:$0xff] %v7458_v6  ;;  %5858 = vmatpush3.bf16.msra.mxu1 %v7224_v5  ;;  %v7467_v9 = vadd.s32 8, %v7458_v6  ;;  %5723 = vmatprep.subr.bf16.mxu0 %v7225_v7  ;;  %v7233_v16 = vld [vmem:[%s10003_s1 + $0x58] sm:$0xff]   ;;  %v7237_v20 = vld [vmem:[%s10003_s1 + $0x60] sm:$0xff]   ;;  %v7241_v24 = vld [vmem:[%s10003_s1 + $0x68] sm:$0xff]   ;;  %s7553_s12 = scalar_lea.vmem %s10002_s0, %s4983_s28  ;;  %vm297_vm0 = vcmp.lt.s32.totalorder %v7458_v6, 1  ;;  %s9905_s16 = scalar_lea.vmem %s10007_s5, %s4983_s28 }
  0x12   : > { %5859 = vmatprep.subr.bf16.mxu1 %v7226_v8  ;;  %v7234_v17 = vld [vmem:[%s10003_s1 + $0x118] sm:$0xff]   ;;  %v7238_v21 = vld [vmem:[%s10003_s1 + $0x120] sm:$0xff]   ;;  %v7242_v25 = vld [vmem:[%s10003_s1 + $0x128] sm:$0xff]   ;;  %vm7209_vm2 = vcmp.ne.s32.totalorder %v7458_v6, 0  ;;  %vm362_vm6 = vcmp.lt.s32.totalorder %v7458_v6, 7 }
  0x13   : > { %v7235_v18 = vld [vmem:[%s10003_s1 + $0x18] sm:$0xff]   ;;  %v7239_v22 = vld [vmem:[%s10003_s1 + $0x20] sm:$0xff]   ;;  %v7243_v26 = vld [vmem:[%s10003_s1 + $0x28] sm:$0xff]   ;;  %vm7210_vm1 = vcmp.ne.s32.totalorder %v7467_v9, 15 }
  0x14   : > { %5724 = vmatpush3.bf16.msra.mxu0 %v7227_v10  ;;  %v7236_v19 = vld [vmem:[%s10003_s1 + $0xd8] sm:$0xff]   ;;  %v7240_v23 = vld [vmem:[%s10003_s1 + $0xe0] sm:$0xff]   ;;  %v7244_v27 = vld [vmem:[%s10003_s1 + $0xe8] sm:$0xff]  }
  0x15   : > { %5860 = vmatpush3.bf16.msra.mxu1 %v7228_v11  ;;  %5725 = vmatprep.subr.bf16.mxu0 %v7229_v12  ;;  %v7245_v28 = vld [vmem:[%s10003_s1 + $0x70] sm:$0xff]   ;;  %v7249_v32 = vld [vmem:[%s10003_s1 + $0x78] sm:$0xff]   ;;  %v7564_v36 = vld [vmem:[%s7553_s12] sm:$0xff] }
  0x16   : > { %5861 = vmatprep.subr.bf16.mxu1 %v7230_v13  ;;  %v7246_v29 = vld [vmem:[%s10003_s1 + $0x130] sm:$0xff]   ;;  %v7250_v33 = vld [vmem:[%s10003_s1 + $0x138] sm:$0xff]   ;;  %v7567_v37 = vld [vmem:[%s7553_s12 + $0x8] sm:$0xff]  ;;  %v265_v38 = vrot.slane %v7564_v36, 7 }
  0x17   : > { %v7247_v30 = vld [vmem:[%s10003_s1 + $0x30] sm:$0xff]   ;;  %v7251_v34 = vld [vmem:[%s10003_s1 + $0x38] sm:$0xff]   ;;  %v281_v39 = vrot.slane %v7567_v37, 7  ;;  %v475_v40 = vpack.c.bf16 %v7567_v37, %v7564_v36  ;;  %v7253_v41 = vld [vmem:[%s10003_s1 + $0x80] sm:$0xff]  }
  0x18   : > { %5726 = vmatpush3.bf16.msra.mxu0 %v7231_v14  ;;  %v7248_v31 = vld [vmem:[%s10003_s1 + $0xf0] sm:$0xff]   ;;  %v7252_v35 = vld [vmem:[%s10003_s1 + $0xf8] sm:$0xff]   ;;  %vm7577_vm4 = vmpackc.low %vm7210_vm1, %vm7406_vm3 }
  0x19   : > { %5862 = vmatpush3.bf16.msra.mxu1 %v7232_v15  ;;  %5727 = vmatprep.subr.bf16.mxu0 %v7233_v16  ;;  %v10049_v42 = vsel %vm7577_vm4, 4294967295, %v10048_v42  ;;  %v7582_v43 = vld [vmem:[%s7553_s12 + $0x10] sm:$0xff]  ;;  %v298_v44 = vsel %vm297_vm0, %v265_v38, %v281_v39  ;;  %v314_v45 = vsel %vm297_vm0, %v281_v39, %v265_v38  ;;  %vm7589_vm5 = vmpackc.low %vm7406_vm3, %vm7209_vm2  ;;  %v7594_v47 = vld [vmem:[%s7553_s12 + $0x18] sm:$0xff] }
  0x1a   : > { %5863 = vmatprep.subr.bf16.mxu1 %v7234_v17  ;;  %10050 = vst [vmem:[#allocation5_spill] sm:$0xff] %v10049_v42  ;;  %v10052_v46 = vsel %vm7589_vm5, 4294967295, %v10051_v46  ;;  %v266_v48 = vrot.slane %v7582_v43, 7  ;;  %1445 = vmatprep.mubr.bf16.mxu1 %v475_v40  ;;  %v4987_v49 = vpack.c.bf16 %v298_v44, %v314_v45  ;;  %v282_v50 = vrot.slane %v7594_v47, 7  ;;  %v7254_v52 = vld [vmem:[%s10003_s1 + $0x88] sm:$0xff]   ;;  %v7608_v53 = vld [vmem:[%s7553_s12 + $0x20] sm:$0xff] }
  0x1b   : > { %10053 = vst [vmem:[#allocation6_spill] sm:$0xff] %v10052_v46  ;;  %v7600_v51 = vpack.c.bf16 %v7594_v47, %v7582_v43  ;;  %v7255_v56 = vld [vmem:[%s10003_s1 + $0x90] sm:$0xff]   ;;  %v7619_v57 = vld [vmem:[%s7553_s12 + $0x28] sm:$0xff]  ;;  %v267_v59 = vrot.slane %v7608_v53, 7  ;;  %v7256_v60 = vld [vmem:[%s10003_s1 + $0x98] sm:$0xff]  }
  0x1c   : > { %5728 = vmatpush3.bf16.msra.mxu0 %v7235_v18  ;;  %v299_v54 = vsel %vm297_vm0, %v266_v48, %v282_v50  ;;  %v315_v55 = vsel %vm297_vm0, %v282_v50, %v266_v48  ;;  %v283_v61 = vrot.slane %v7619_v57, 7  ;;  %v7632_v62 = vpack.c.bf16 %v7619_v57, %v7608_v53  ;;  %v7257_v63 = vld [vmem:[%s10003_s1 + $0x140] sm:$0xff]   ;;  %v7259_v1 = vld [vmem:[%s10003_s1 + $0x148] sm:$0xff]   ;;  %v7653_v5 = vld [vmem:[%s7553_s12 + $0x30] sm:$0xff] }
  0x1d   : > { %5864 = vmatpush3.bf16.msra.mxu1 %v7236_v19  ;;  %5729 = vmatprep.subr.bf16.mxu0 %v7237_v20  ;;  %v7621_v58 = vpack.c.bf16 %v299_v54, %v315_v55  ;;  %v7258_v0 = vld [vmem:[%s10003_s1 + $0xa0] sm:$0xff]   ;;  %v7656_v7 = vld [vmem:[%s7553_s12 + $0x38] sm:$0xff]  ;;  %v7260_v9 = vld [vmem:[%s10003_s1 + $0xa8] sm:$0xff]   ;;  %v268_v10 = vrot.slane %v7653_v5, 7 }
  0x1e   : > { %5865 = vmatprep.subr.bf16.mxu1 %v7238_v21  ;;  %v300_v2 = vsel %vm297_vm0, %v267_v59, %v283_v61  ;;  %v316_v4 = vsel %vm297_vm0, %v283_v61, %v267_v59  ;;  %v284_v11 = vrot.slane %v7656_v7, 7  ;;  %v7670_v12 = vpack.c.bf16 %v7656_v7, %v7653_v5  ;;  %v7261_v13 = vld [vmem:[%s10003_s1 + $0x150] sm:$0xff]   ;;  %v7688_v17 = vld [vmem:[%s7553_s12 + $0x40] sm:$0xff]  ;;  %v7263_v18 = vld [vmem:[%s10003_s1 + $0x158] sm:$0xff]  }
  0x1f   : > { %v7658_v8 = vpack.c.bf16 %v300_v2, %v316_v4  ;;  %v7262_v14 = vld [vmem:[%s10003_s1 + $0xb0] sm:$0xff]   ;;  %v7694_v19 = vld [vmem:[%s7553_s12 + $0x48] sm:$0xff]  ;;  %v269_v21 = vrot.slane %v7688_v17, 7  ;;  %v7268_v39 = vld [vmem:[%s10003_s1 + $0x178] sm:$0xff]  }
  0x20   : > { %5730 = vmatpush3.bf16.msra.mxu0 %v7239_v22  ;;  %v301_v15 = vsel %vm297_vm0, %v268_v10, %v284_v11  ;;  %v317_v16 = vsel %vm297_vm0, %v284_v11, %v268_v10  ;;  %v7264_v22 = vld [vmem:[%s10003_s1 + $0xb8] sm:$0xff]   ;;  %v7761_v44 = vld [vmem:[%s7553_s12 + $0x60] sm:$0xff]  ;;  %v7764_v45 = vld [vmem:[%s7553_s12 + $0x68] sm:$0xff] }
  0x21   : > { %5866 = vmatpush3.bf16.msra.mxu1 %v7240_v23  ;;  %5731 = vmatprep.subr.bf16.mxu0 %v7241_v24  ;;  %v7696_v20 = vpack.c.bf16 %v301_v15, %v317_v16  ;;  %v285_v23 = vrot.slane %v7694_v19, 7  ;;  %v7708_v24 = vpack.c.bf16 %v7694_v19, %v7688_v17  ;;  %v7769_v48 = vld [vmem:[%s10003_s1 + $0x200] sm:$0xff]   ;;  %v7774_v50 = vld [vmem:[%s7553_s12 + $0x70] sm:$0xff]  ;;  %v271_v54 = vrot.slane %v7761_v44, 7  ;;  %v7810_v4 = vld [vmem:[%s7553_s12 + $0x98] sm:$0xff] }
  0x22   : > { %5867 = vmatprep.subr.bf16.mxu1 %v7242_v25  ;;  %v7265_v25 = vld [vmem:[%s10003_s1 + $0x160] sm:$0xff]   ;;  %v287_v55 = vrot.slane %v7764_v45, 7  ;;  %v272_v61 = vrot.slane %v7774_v50, 7  ;;  %v7807_v2 = vld [vmem:[%s7553_s12 + $0x90] sm:$0xff]  ;;  %v290_v15 = vrot.slane %v7810_v4, 7 }
  0x24   : > { %5732 = vmatpush3.bf16.msra.mxu0 %v7243_v26  ;;  %v7266_v26 = vld [vmem:[%s10003_s1 + $0x168] sm:$0xff]   ;;  %v304_v59 = vsel %vm297_vm0, %v271_v54, %v287_v55 }
  0x25   : > { %5868 = vmatpush3.bf16.msra.mxu1 %v7244_v27  ;;  %5733 = vmatprep.subr.bf16.mxu0 %v7245_v28  ;;  %v302_v27 = vsel %vm297_vm0, %v269_v21, %v285_v23  ;;  %v318_v28 = vsel %vm297_vm0, %v285_v23, %v269_v21  ;;  %v7835_v21 = vld [vmem:[%s7553_s12 + $0xa0] sm:$0xff]  ;;  %v7841_v23 = vld [vmem:[%s7553_s12 + $0xb0] sm:$0xff] }
  0x26   : > { %5869 = vmatprep.subr.bf16.mxu1 %v7246_v29  ;;  %v7726_v29 = vld [vmem:[%s7553_s12 + $0x50] sm:$0xff] }
  0x28   : > { %5734 = vmatpush3.bf16.msra.mxu0 %v7247_v30  ;;  %v7729_v30 = vld [vmem:[%s7553_s12 + $0x58] sm:$0xff] }
  0x29   : > { %5870 = vmatpush3.bf16.msra.mxu1 %v7248_v31  ;;  %5735 = vmatprep.subr.bf16.mxu0 %v7249_v32  ;;  %v7269_v31 = vld [vmem:[%s10003_s1 + $0x1c0] sm:$0xff]   ;;  %v7267_v32 = vld [vmem:[%s10003_s1 + $0x170] sm:$0xff]   ;;  %v7746_v38 = vpack.c.bf16 %v7729_v30, %v7726_v29 }
  0x2a   : > { %5871 = vmatprep.subr.bf16.mxu1 %v7250_v33  ;;  %v7737_v33 = vpack.c.bf16 %v302_v27, %v318_v28  ;;  %v7850_v27 = vld [vmem:[%s7553_s12 + $0xc8] sm:$0xff] }
  0x2c   : > { %5736 = vmatpush3.bf16.msra.mxu0 %v7251_v34  ;;  %v270_v34 = vrot.slane %v7726_v29, 7 }
  0x2d   : > { %5872 = vmatpush3.bf16.msra.mxu1 %v7252_v35  ;;  %6537 = vmatprep.subr.bf16.mxu0 %v7253_v41  ;;  %v286_v35 = vrot.slane %v7729_v30, 7 }
  0x2e   : > { %6585 = vmatprep.subr.bf16.mxu1 %v7257_v63 }
  0x2f   : > { %851 = vmatmul.mubr.bf16.vlgmr.msra.gmra.mrb[0].mxu0 %v10008_v3 }
  0x30   : > { %6538 = vmatpush3.bf16.msra.mxu0 %v7253_v41  ;;  %858 = vmatprep.mubr.bf16.mxu0 %v475_v40  ;;  %v303_v40 = vsel %vm297_vm0, %v270_v34, %v286_v35  ;;  %v319_v41 = vsel %vm297_vm0, %v286_v35, %v270_v34  ;;  %v276_v35 = vrot.slane %v7841_v23, 7 }
  0x31   : > { %5108 = vmatmul.mubr.msk.bf16.vlgmr.msra.gmra.mrb[0].mxu1 %vm7589_vm5, %v4987_v49  ;;  %6539 = vmatprep.subr.bf16.mxu0 %v7254_v52 }
  0x32   : > { %1453 = vmatprep.mubr.bf16.mxu1 %v7600_v51  ;;  %6586 = vmatpush3.bf16.msra.mxu1 %v7257_v63 }
  0x33   : > { %6587 = vmatprep.subr.bf16.mxu1 %v7259_v1 }
  0x34   : > { %6540 = vmatpush3.bf16.msra.mxu0 %v7254_v52  ;;  %v7777_v52 = vld [vmem:[%s7553_s12 + $0x78] sm:$0xff] }
  0x35   : > { %6541 = vmatprep.subr.bf16.mxu0 %v7255_v56  ;;  %v288_v63 = vrot.slane %v7777_v52, 7  ;;  %v7819_v10 = vpack.c.bf16 %v7777_v52, %v7774_v50 }
  0x36   : > { %6588 = vmatpush3.bf16.msra.mxu1 %v7259_v1  ;;  %v7804_v1 = vld [vmem:[%s7553_s12 + $0x88] sm:$0xff] }
  0x37   : > { %4988 = vmatmul.mubr.msk.bf16.gmra.mrb[4].mxu0 %vm7589_vm5, %v4987_v49  ;;  %6589 = vmatprep.subr.bf16.mxu1 %v7261_v13  ;;  %v7771_v49 = vpack.c.bf16 %v303_v40, %v319_v41  ;;  %v305_v16 = vsel %vm297_vm0, %v272_v61, %v288_v63  ;;  %v293_v41 = vrot.slane %v7850_v27, 7 }
  0x38   : > { %866 = vmatprep.mubr.bf16.mxu0 %v7600_v51  ;;  %6542 = vmatpush3.bf16.msra.mxu0 %v7255_v56  ;;  %v7786_v56 = vpack.c.bf16 %v7764_v45, %v7761_v44 }
  0x39   : > { %5112 = vmatmul.mubr.msk.bf16.gmra.mrb[4].mxu1 %vm7589_vm5, %v7621_v58  ;;  %6543 = vmatprep.subr.bf16.mxu0 %v7256_v60 }
  0x3a   : > { %1461 = vmatprep.mubr.bf16.mxu1 %v7632_v62  ;;  %6590 = vmatpush3.bf16.msra.mxu1 %v7261_v13  ;;  %v289_v13 = vrot.slane %v7804_v1, 7 }
  0x3b   : > { %6591 = vmatprep.subr.bf16.mxu1 %v7263_v18 }
  0x3c   : > { %6544 = vmatpush3.bf16.msra.mxu0 %v7256_v60  ;;  %v320_v60 = vsel %vm297_vm0, %v287_v55, %v271_v54 }
  0x3d   : > { %6545 = vmatprep.subr.bf16.mxu0 %v7258_v0 }
  0x3e   : > { %6592 = vmatpush3.bf16.msra.mxu1 %v7263_v18  ;;  %v321_v18 = vsel %vm297_vm0, %v288_v63, %v272_v61 }
  0x3f   : > { %4992 = vmatmul.mubr.msk.bf16.gmra.mrb[8].mxu0 %vm7589_vm5, %v7621_v58  ;;  %6593 = vmatprep.subr.bf16.mxu1 %v7265_v25  ;;  %v7852_v28 = vpack.c.bf16 %v305_v16, %v321_v18 }
  0x40   : > { %874 = vmatprep.mubr.bf16.mxu0 %v7632_v62  ;;  %6546 = vmatpush3.bf16.msra.mxu0 %v7258_v0  ;;  %v7801_v0 = vld [vmem:[%s7553_s12 + $0x80] sm:$0xff] }
  0x41   : > { %5116 = vmatmul.mubr.msk.bf16.gmra.mrb[8].mxu1 %vm7589_vm5, %v7658_v8  ;;  %6547 = vmatprep.subr.bf16.mxu0 %v7260_v9  ;;  %v273_v11 = vrot.slane %v7801_v0, 7 }
  0x42   : > { %1469 = vmatprep.mubr.bf16.mxu1 %v7670_v12  ;;  %6594 = vmatpush3.bf16.msra.mxu1 %v7265_v25  ;;  %v7844_v25 = vld [vmem:[%s7553_s12 + $0xb8] sm:$0xff] }
  0x43   : > { %6595 = vmatprep.subr.bf16.mxu1 %v7266_v26  ;;  %v306_v54 = vsel %vm297_vm0, %v273_v11, %v289_v13  ;;  %v322_v55 = vsel %vm297_vm0, %v289_v13, %v273_v11  ;;  %v7919_v18 = vpack.c.bf16 %v7844_v25, %v7841_v23 }
  0x44   : > { %6548 = vmatpush3.bf16.msra.mxu0 %v7260_v9  ;;  %v7812_v9 = vpack.c.bf16 %v304_v59, %v320_v60  ;;  %v7876_v59 = vpack.c.bf16 %v306_v54, %v322_v55  ;;  %v7883_v60 = vpack.c.bf16 %v7810_v4, %v7807_v2  ;;  %v7931_v54 = vld [vmem:[%s7553_s12 + $0xd0] sm:$0xff]  ;;  %v7934_v55 = vld [vmem:[%s7553_s12 + $0xd8] sm:$0xff] }
  0x45   : > { %6549 = vmatprep.subr.bf16.mxu0 %v7262_v14  ;;  %10058 = vst [vmem:[#allocation11_spill] sm:$0xff] %v7919_v18 }
  0x46   : > { %6596 = vmatpush3.bf16.msra.mxu1 %v7266_v26  ;;  %v7847_v26 = vld [vmem:[%s7553_s12 + $0xc0] sm:$0xff]  ;;  %10054 = vst [vmem:[#allocation7_spill] sm:$0xff] %v7883_v60 }
  0x47   : > { %4996 = vmatmul.mubr.msk.bf16.gmra.mrb[12].mxu0 %vm7589_vm5, %v7658_v8  ;;  %6597 = vmatprep.subr.bf16.mxu1 %v7267_v32  ;;  %v277_v40 = vrot.slane %v7847_v26, 7 }
  0x48   : > { %882 = vmatprep.mubr.bf16.mxu0 %v7670_v12  ;;  %6550 = vmatpush3.bf16.msra.mxu0 %v7262_v14  ;;  %v274_v14 = vrot.slane %v7807_v2, 7 }
  0x49   : > { %5120 = vmatmul.mubr.msk.bf16.gmra.mrb[12].mxu1 %vm7589_vm5, %v7696_v20  ;;  %6551 = vmatprep.subr.bf16.mxu0 %v7264_v22 }
  0x4a   : > { %1477 = vmatprep.mubr.bf16.mxu1 %v7708_v24  ;;  %6598 = vmatpush3.bf16.msra.mxu1 %v7267_v32  ;;  %v275_v32 = vrot.slane %v7835_v21, 7  ;;  %v307_v61 = vsel %vm297_vm0, %v274_v14, %v290_v15  ;;  %v323_v63 = vsel %vm297_vm0, %v290_v15, %v274_v14 }
  0x4b   : > { %6599 = vmatprep.subr.bf16.mxu1 %v7268_v39  ;;  %v7894_v11 = vpack.c.bf16 %v307_v61, %v323_v63  ;;  %v7943_v63 = vpack.c.bf16 %v7850_v27, %v7847_v26 }
  0x4c   : > { %6552 = vmatpush3.bf16.msra.mxu0 %v7264_v22  ;;  %v7838_v22 = vld [vmem:[%s7553_s12 + $0xa8] sm:$0xff] }
  0x4d   : > { %5993 = vmatprep.subr.bf16.mxu0 %v7269_v31  ;;  %v7859_v31 = vpack.c.bf16 %v7804_v1, %v7801_v0  ;;  %v291_v34 = vrot.slane %v7838_v22, 7  ;;  %10055 = vst [vmem:[#allocation8_spill] sm:$0xff] %v7894_v11  ;;  %v7901_v13 = vpack.c.bf16 %v7838_v22, %v7835_v21  ;;  %10060 = vst [vmem:[#allocation13_spill] sm:$0xff] %v7943_v63 }
  0x4e   : > { %6600 = vmatpush3.bf16.msra.mxu1 %v7268_v39  ;;  %v292_v39 = vrot.slane %v7844_v25, 7 }
  0x4f   : > { %5000 = vmatmul.mubr.msk.bf16.gmra.mrb[16].mxu0 %vm7589_vm5, %v7696_v20  ;;  %6633 = vmatprep.subr.bf16.mxu1 %v7769_v48  ;;  %10056 = vst [vmem:[#allocation9_spill] sm:$0xff] %v7901_v13  ;;  %v308_v14 = vsel %vm297_vm0, %v275_v32, %v291_v34  ;;  %v324_v15 = vsel %vm297_vm0, %v291_v34, %v275_v32 }
  0x50   : > { %890 = vmatprep.mubr.bf16.mxu0 %v7708_v24  ;;  %v7912_v16 = vpack.c.bf16 %v308_v14, %v324_v15  ;;  %v309_v32 = vsel %vm297_vm0, %v276_v35, %v292_v39  ;;  %v325_v34 = vsel %vm297_vm0, %v292_v39, %v276_v35  ;;  %v278_v35 = vrot.slane %v7931_v54, 7 }
  0x51   : > { %5124 = vmatmul.mubr.msk.bf16.gmra.mrb[16].mxu1 %vm7589_vm5, %v7737_v33  ;;  %v7936_v61 = vpack.c.bf16 %v309_v32, %v325_v34  ;;  %v294_v39 = vrot.slane %v7934_v55, 7  ;;  %v310_v14 = vsel %vm297_vm0, %v277_v40, %v293_v41  ;;  %v326_v15 = vsel %vm297_vm0, %v293_v41, %v277_v40 }
  0x52   : > { %1485 = vmatprep.mubr.bf16.mxu1 %v7746_v38  ;;  %10057 = vst [vmem:[#allocation10_spill] sm:$0xff] %v7912_v16  ;;  %v7956_v32 = vpack.c.bf16 %v310_v14, %v326_v15  ;;  %v7963_v34 = vpack.c.bf16 %v7934_v55, %v7931_v54  ;;  %v7975_v14 = vld [vmem:[%s7553_s12 + $0xe0] sm:$0xff]  ;;  %v7978_v15 = vld [vmem:[%s7553_s12 + $0xe8] sm:$0xff] }
  0x53   : > { %10059 = vst [vmem:[#allocation12_spill] sm:$0xff] %v7936_v61  ;;  %v311_v40 = vsel %vm297_vm0, %v278_v35, %v294_v39  ;;  %v327_v41 = vsel %vm297_vm0, %v294_v39, %v278_v35 }
  0x54   : > { %10061 = vst [vmem:[#allocation14_spill] sm:$0xff] %v7956_v32  ;;  %10062 = vst [vmem:[#allocation15_spill] sm:$0xff] %v7963_v34  ;;  %v7980_v3 = vpack.c.bf16 %v311_v40, %v327_v41  ;;  %v8001_v40 = vld [vmem:[%s7553_s12 + $0xf0] sm:$0xff]  ;;  %v8004_v41 = vld [vmem:[%s7553_s12 + $0xf8] sm:$0xff] }
  0x56   : > { %10063 = vst [vmem:[#allocation16_spill] sm:$0xff] %v7980_v3 }
  0x57   : > { %5004 = vmatmul.mubr.msk.bf16.gmra.mrb[20].mxu0 %vm7589_vm5, %v7737_v33 }
  0x58   : > { %898 = vmatprep.mubr.bf16.mxu0 %v7746_v38 }
  0x59   : > { %5128 = vmatmul.mubr.msk.bf16.gmra.mrb[20].mxu1 %vm7589_vm5, %v7771_v49 }
  0x5a   : > { %1493 = vmatprep.mubr.bf16.mxu1 %v7786_v56 }
  0x5f   : > { %5008 = vmatmul.mubr.msk.bf16.gmra.mrb[24].mxu0 %vm7589_vm5, %v7771_v49 }
  0x60   : > { %906 = vmatprep.mubr.bf16.mxu0 %v7786_v56 }
  0x61   : > { %5132 = vmatmul.mubr.msk.bf16.gmra.mrb[24].mxu1 %vm7589_vm5, %v7812_v9 }
  0x62   : > { %1501 = vmatprep.mubr.bf16.mxu1 %v7819_v10 }
  0x67   : > { %5012 = vmatmul.mubr.msk.bf16.gmra.mrb[28].mxu0 %vm7589_vm5, %v7812_v9 }
  0x68   : > { %914 = vmatprep.mubr.bf16.mxu0 %v7819_v10 }
  0x69   : > { %5136 = vmatmul.mubr.msk.bf16.gmra.mrb[28].mxu1 %vm7589_vm5, %v7852_v28 }
  0x6a   : > { %1509 = vmatprep.mubr.bf16.mxu1 %v7859_v31 }
  0x6f   : > { %5016 = vmatmul.mubr.msk.bf16.gmra.mrb[32].mxu0 %vm7589_vm5, %v7852_v28 }
  0x70   : > { %922 = vmatprep.mubr.bf16.mxu0 %v7859_v31 }
  0x71   : > { %5140 = vmatmul.mubr.msk.bf16.gmra.mrb[32].mxu1 %vm7589_vm5, %v7876_v59 }
  0x72   : > { %1517 = vmatprep.mubr.bf16.mxu1 %v7883_v60 }
  0x77   : > { %5020 = vmatmul.mubr.msk.bf16.gmra.mrb[36].mxu0 %vm7589_vm5, %v7876_v59 }
  0x78   : > { %930 = vmatprep.mubr.bf16.mxu0 %v7883_v60  ;;  %v332_v60 = vrot.slane %v7608_v53, 1  ;;  %v7270_v53 = vld [vmem:[%s10003_s1 + $0x180] sm:$0xff]  }
  0x79   : > { %5144 = vmatmul.mubr.msk.bf16.gmra.mrb[36].mxu1 %vm7589_vm5, %v7894_v11 }
  0x7a   : > { %1525 = vmatprep.mubr.bf16.mxu1 %v7901_v13 }
  0x7f   : > { %5024 = vmatmul.mubr.msk.bf16.gmra.mrb[40].mxu0 %vm7589_vm5, %v7894_v11  ;;  %v347_v11 = vrot.slane %v7594_v47, 1 }
  0x80   : > { %938 = vmatprep.mubr.bf16.mxu0 %v7901_v13  ;;  %v8015_v13 = vpack.c.bf16 %v8004_v41, %v8001_v40 }
  0x81   : > { %5148 = vmatmul.mubr.msk.bf16.gmra.mrb[40].mxu1 %vm7589_vm5, %v7912_v16 }
  0x82   : > { %1533 = vmatprep.mubr.bf16.mxu1 %v7919_v18  ;;  %10065 = vst [vmem:[#allocation18_spill] sm:$0xff] %v8015_v13 }
  0x87   : > { %5028 = vmatmul.mubr.msk.bf16.gmra.mrb[44].mxu0 %vm7589_vm5, %v7912_v16  ;;  %v296_v16 = vrot.slane %v8004_v41, 7 }
  0x88   : > { %946 = vmatprep.mubr.bf16.mxu0 %v7919_v18  ;;  %v7989_v18 = vpack.c.bf16 %v7978_v15, %v7975_v14 }
  0x89   : > { %5152 = vmatmul.mubr.msk.bf16.gmra.mrb[44].mxu1 %vm7589_vm5, %v7936_v61 }
  0x8a   : > { %1541 = vmatprep.mubr.bf16.mxu1 %v7943_v63  ;;  %10064 = vst [vmem:[#allocation17_spill] sm:$0xff] %v7989_v18 }
  0x8f   : > { %5032 = vmatmul.mubr.msk.bf16.gmra.mrb[48].mxu0 %vm7589_vm5, %v7936_v61  ;;  %v295_v61 = vrot.slane %v7978_v15, 7 }
  0x90   : > { %954 = vmatprep.mubr.bf16.mxu0 %v7943_v63  ;;  %v279_v63 = vrot.slane %v7975_v14, 7 }
  0x91   : > { %5156 = vmatmul.mubr.msk.bf16.gmra.mrb[48].mxu1 %vm7589_vm5, %v7956_v32 }
  0x92   : > { %1549 = vmatprep.mubr.bf16.mxu1 %v7963_v34  ;;  %v312_v35 = vsel %vm297_vm0, %v279_v63, %v295_v61  ;;  %v328_v39 = vsel %vm297_vm0, %v295_v61, %v279_v63  ;;  %v330_v61 = vrot.slane %v7564_v36, 1  ;;  %v346_v63 = vrot.slane %v7567_v37, 1 }
  0x94   : > { %v363_v36 = vsel %vm362_vm6, %v330_v61, %v346_v63  ;;  %v379_v37 = vsel %vm362_vm6, %v346_v63, %v330_v61  ;;  %v7271_v63 = vld [vmem:[%s10003_s1 + $0x1c8] sm:$0xff]  }
  0x97   : > { %5036 = vmatmul.mubr.msk.bf16.gmra.mrb[52].mxu0 %vm7589_vm5, %v7956_v32  ;;  %v8006_v32 = vpack.c.bf16 %v312_v35, %v328_v39 }
  0x98   : > { %962 = vmatprep.mubr.bf16.mxu0 %v7963_v34  ;;  %v280_v34 = vrot.slane %v8001_v40, 7 }
  0x99   : > { %5160 = vmatmul.mubr.msk.bf16.gmra.mrb[52].mxu1 %vm7589_vm5, %v7980_v3 }
  0x9a   : > { %1557 = vmatprep.mubr.bf16.mxu1 %v7989_v18  ;;  %v313_v35 = vsel %vm297_vm0, %v280_v34, %v296_v16  ;;  %v329_v39 = vsel %vm297_vm0, %v296_v16, %v280_v34  ;;  %v348_v16 = vrot.slane %v7619_v57, 1  ;;  %v10066_v34 = vmov 0  }
  0x9c   : > { %v365_v57 = vsel %vm362_vm6, %v332_v60, %v348_v16  ;;  %v381_v61 = vsel %vm362_vm6, %v348_v16, %v332_v60 }
  0x9f   : > { %5040 = vmatmul.mubr.msk.bf16.gmra.mrb[56].mxu0 %vm7589_vm5, %v7980_v3  ;;  %v331_v3 = vrot.slane %v7582_v43, 1 }
  0xa0   : > { %970 = vmatprep.mubr.bf16.mxu0 %v7989_v18  ;;  %v8033_v18 = vpack.c.bf16 %v313_v35, %v329_v39  ;;  %v8068_v39 = vpack.c.bf16 %v381_v61, %v365_v57  ;;  %v335_v57 = vrot.slane %v7726_v29, 1  ;;  %v351_v61 = vrot.slane %v7729_v30, 1  ;;  %v7276_v29 = vld [vmem:[%s10003_s1 + $0x198] sm:$0xff]  }
  0xa1   : > { %5164 = vmatmul.mubr.msk.bf16.gmra.mrb[56].mxu1 %vm7589_vm5, %v8006_v32  ;;  %v364_v43 = vsel %vm362_vm6, %v331_v3, %v347_v11  ;;  %v380_v47 = vsel %vm362_vm6, %v347_v11, %v331_v3  ;;  %v333_v3 = vrot.slane %v7653_v5, 1  ;;  %v349_v11 = vrot.slane %v7656_v7, 1  ;;  %v7272_v5 = vld [vmem:[%s10003_s1 + $0x188] sm:$0xff]   ;;  %v7284_v30 = vld [vmem:[%s10003_s1 + $0x218] sm:$0xff]  }
  0xa2   : > { %1565 = vmatprep.mubr.bf16.mxu1 %v8015_v13  ;;  %v5047_v13 = vpack.c.bf16 %v379_v37, %v363_v36  ;;  %v8062_v35 = vpack.c.bf16 %v380_v47, %v364_v43  ;;  %v334_v36 = vrot.slane %v7688_v17, 1  ;;  %v350_v37 = vrot.slane %v7694_v19, 1  ;;  %v7280_v7 = vld [vmem:[%s10003_s1 + $0x208] sm:$0xff]   ;;  %v7273_v17 = vld [vmem:[%s10003_s1 + $0x1d0] sm:$0xff]   ;;  %v7275_v47 = vld [vmem:[%s10003_s1 + $0x1d8] sm:$0xff]  }
  0xa3   : > { %v366_v19 = vsel %vm362_vm6, %v333_v3, %v349_v11  ;;  %v382_v60 = vsel %vm362_vm6, %v349_v11, %v333_v3  ;;  %v7274_v43 = vld [vmem:[%s10003_s1 + $0x190] sm:$0xff]   ;;  %v336_v3 = vrot.slane %v7761_v44, 1  ;;  %v352_v11 = vrot.slane %v7764_v45, 1  ;;  %v7277_v44 = vld [vmem:[%s10003_s1 + $0x1e0] sm:$0xff]  }
  0xa4   : > { %v383_v16 = vsel %vm362_vm6, %v350_v37, %v334_v36  ;;  %v368_v45 = vsel %vm362_vm6, %v335_v57, %v351_v61 }
  0xa7   : > { %5044 = vmatmul.mubr.msk.bf16.gmra.mrb[60].mxu0 %vm7589_vm5, %v8006_v32 }
  0xa8   : > { %6553 = vmatprep.mubr.bf16.mxu0 %v10066_v34 }
  0xa9   : > { %5168 = vmatmul.mubr.msk.bf16.gmra.mrb[60].mxu1 %vm7589_vm5, %v8033_v18 }
  0xaa   : > { %6601 = vmatprep.mubr.msk.bf16.mxu1 %vm7577_vm4, %v5047_v13 }
  0xaf   : > { %6554 = vmatmul.mubr.msk.bf16.vlgmr.msra.gmra.mrb[64].mxu0 %vm7577_vm4, %v5047_v13  ;;  %v367_v13 = vsel %vm362_vm6, %v334_v36, %v350_v37  ;;  %v384_v36 = vsel %vm362_vm6, %v351_v61, %v335_v57  ;;  %v369_v37 = vsel %vm362_vm6, %v336_v3, %v352_v11 }
  0xb0   : > { %5994 = vmatpush3.bf16.msra.mxu0 %v7270_v53  ;;  %6557 = vmatprep.mubr.msk.bf16.mxu0 %vm7577_vm4, %v8062_v35  ;;  %v8108_v53 = vpack.c.bf16 %v382_v60, %v366_v19  ;;  %v7286_v19 = vld [vmem:[%s10003_s1 + $0x220] sm:$0xff]   ;;  %v8154_v60 = vpack.c.bf16 %v384_v36, %v368_v45  ;;  %v339_v45 = vrot.slane %v7807_v2, 1  ;;  %v355_v36 = vrot.slane %v7810_v4, 1  ;;  %v7291_v2 = vld [vmem:[%s10003_s1 + $0x1b8] sm:$0xff]  }
  0xb1   : > { %5995 = vmatprep.subr.bf16.mxu0 %v7271_v63  ;;  %6602 = vmatmul.mubr.msk.bf16.vlgmr.msra.gmra.mrb[64].mxu1 %vm7577_vm4, %v8062_v35  ;;  %v8115_v63 = vpack.c.bf16 %v383_v16, %v367_v13  ;;  %v337_v13 = vrot.slane %v7774_v50, 1  ;;  %v353_v16 = vrot.slane %v7777_v52, 1  ;;  %v7283_v50 = vld [vmem:[%s10003_s1 + $0x1a8] sm:$0xff]   ;;  %v7292_v4 = vld [vmem:[%s10003_s1 + $0x238] sm:$0xff]  }
  0xb2   : > { %6605 = vmatprep.mubr.msk.bf16.mxu1 %vm7577_vm4, %v8068_v39  ;;  %6634 = vmatpush3.bf16.msra.mxu1 %v7769_v48  ;;  %v7282_v48 = vld [vmem:[%s10003_s1 + $0x210] sm:$0xff]   ;;  %v7288_v52 = vld [vmem:[%s10003_s1 + $0x228] sm:$0xff]  }
  0xb3   : > { %6635 = vmatprep.subr.bf16.mxu1 %v7280_v7  ;;  %v386_v57 = vsel %vm362_vm6, %v353_v16, %v337_v13 }
  0xb4   : > { %5996 = vmatpush3.bf16.msra.mxu0 %v7272_v5  ;;  %v385_v5 = vsel %vm362_vm6, %v352_v11, %v336_v3  ;;  %v7287_v11 = vld [vmem:[%s10003_s1 + $0x1b0] sm:$0xff]  }
  0xb5   : > { %5997 = vmatprep.subr.bf16.mxu0 %v7273_v17  ;;  %v7281_v17 = vld [vmem:[%s10003_s1 + $0x1e8] sm:$0xff]  }
  0xb6   : > { %6636 = vmatpush3.bf16.msra.mxu1 %v7280_v7  ;;  %v7279_v7 = vld [vmem:[%s10003_s1 + $0x1a0] sm:$0xff]  }
  0xb7   : > { %6558 = vmatmul.mubr.msk.bf16.gmra.mrb[68].mxu0 %vm7577_vm4, %v8068_v39  ;;  %6637 = vmatprep.subr.bf16.mxu1 %v7282_v48 }
  0xb8   : > { %6561 = vmatprep.mubr.msk.bf16.mxu0 %vm7577_vm4, %v8108_v53  ;;  %5998 = vmatpush3.bf16.msra.mxu0 %v7274_v43  ;;  %v8161_v43 = vpack.c.bf16 %v385_v5, %v369_v37  ;;  %v340_v5 = vrot.slane %v7835_v21, 1  ;;  %v372_v21 = vsel %vm362_vm6, %v339_v45, %v355_v36 }
  0xb9   : > { %5999 = vmatprep.subr.bf16.mxu0 %v7275_v47  ;;  %6606 = vmatmul.mubr.msk.bf16.gmra.mrb[68].mxu1 %vm7577_vm4, %v8108_v53  ;;  %v338_v47 = vrot.slane %v7801_v0, 1  ;;  %v7285_v0 = vld [vmem:[%s10003_s1 + $0x1f0] sm:$0xff]  }
  0xba   : > { %6609 = vmatprep.mubr.msk.bf16.mxu1 %vm7577_vm4, %v8115_v63  ;;  %6638 = vmatpush3.bf16.msra.mxu1 %v7282_v48  ;;  %v354_v48 = vrot.slane %v7804_v1, 1  ;;  %v370_v1 = vsel %vm362_vm6, %v337_v13, %v353_v16  ;;  %v341_v16 = vrot.slane %v7841_v23, 1 }
  0xbb   : > { %6639 = vmatprep.subr.bf16.mxu1 %v7284_v30 }
  0xbc   : > { %6000 = vmatpush3.bf16.msra.mxu0 %v7276_v29  ;;  %v371_v61 = vsel %vm362_vm6, %v338_v47, %v354_v48  ;;  %v387_v3 = vsel %vm362_vm6, %v354_v48, %v338_v47  ;;  %v7289_v29 = vld [vmem:[%s10003_s1 + $0x1f8] sm:$0xff]   ;;  %v357_v47 = vrot.slane %v7844_v25, 1 }
  0xbd   : > { %6001 = vmatprep.subr.bf16.mxu0 %v7277_v44  ;;  %v8200_v44 = vpack.c.bf16 %v386_v57, %v370_v1  ;;  %v8207_v37 = vpack.c.bf16 %v387_v3, %v371_v61  ;;  %v343_v1 = vrot.slane %v7931_v54, 1  ;;  %v359_v57 = vrot.slane %v7934_v55, 1 }
  0xbe   : > { %6640 = vmatpush3.bf16.msra.mxu1 %v7284_v30  ;;  %v7290_v30 = vld [vmem:[%s10003_s1 + $0x230] sm:$0xff]   ;;  %v374_v23 = vsel %vm362_vm6, %v341_v16, %v357_v47  ;;  %v390_v25 = vsel %vm362_vm6, %v357_v47, %v341_v16  ;;  %v344_v3 = vrot.slane %v7975_v14, 1 }
  0xbf   : > { %6562 = vmatmul.mubr.msk.bf16.gmra.mrb[72].mxu0 %vm7577_vm4, %v8115_v63  ;;  %6641 = vmatprep.subr.bf16.mxu1 %v7286_v19  ;;  %v376_v54 = vsel %vm362_vm6, %v343_v1, %v359_v57  ;;  %v392_v55 = vsel %vm362_vm6, %v359_v57, %v343_v1 }
  0xc0   : > { %6565 = vmatprep.mubr.msk.bf16.mxu0 %vm7577_vm4, %v8154_v60  ;;  %6002 = vmatpush3.bf16.msra.mxu0 %v7279_v7  ;;  %v356_v7 = vrot.slane %v7838_v22, 1  ;;  %v388_v22 = vsel %vm362_vm6, %v355_v36, %v339_v45  ;;  %v361_v45 = vrot.slane %v8004_v41, 1 }
  0xc1   : > { %6003 = vmatprep.subr.bf16.mxu0 %v7281_v17  ;;  %6610 = vmatmul.mubr.msk.bf16.gmra.mrb[72].mxu1 %vm7577_vm4, %v8154_v60  ;;  %v8234_v13 = vpack.c.bf16 %v388_v22, %v372_v21 }
  0xc2   : > { %6613 = vmatprep.mubr.msk.bf16.mxu1 %vm7577_vm4, %v8161_v43  ;;  %6642 = vmatpush3.bf16.msra.mxu1 %v7286_v19  ;;  %v373_v17 = vsel %vm362_vm6, %v340_v5, %v356_v7  ;;  %v389_v19 = vsel %vm362_vm6, %v356_v7, %v340_v5 }
  0xc3   : > { %6643 = vmatprep.subr.bf16.mxu1 %v7288_v52  ;;  %v8241_v48 = vpack.c.bf16 %v389_v19, %v373_v17 }
  0xc4   : > { %6004 = vmatpush3.bf16.msra.mxu0 %v7283_v50  ;;  %v342_v50 = vrot.slane %v7847_v26, 1 }
  0xc5   : > { %6005 = vmatprep.subr.bf16.mxu0 %v7285_v0  ;;  %v8262_v0 = vpack.c.bf16 %v390_v25, %v374_v23 }
  0xc6   : > { %6644 = vmatpush3.bf16.msra.mxu1 %v7288_v52  ;;  %v358_v52 = vrot.slane %v7850_v27, 1 }
  0xc7   : > { %6566 = vmatmul.mubr.msk.bf16.gmra.mrb[76].mxu0 %vm7577_vm4, %v8161_v43  ;;  %6645 = vmatprep.subr.bf16.mxu1 %v7290_v30 }
  0xc8   : > { %6569 = vmatprep.mubr.msk.bf16.mxu0 %vm7577_vm4, %v8200_v44  ;;  %6006 = vmatpush3.bf16.msra.mxu0 %v7287_v11  ;;  %v375_v26 = vsel %vm362_vm6, %v342_v50, %v358_v52  ;;  %v391_v27 = vsel %vm362_vm6, %v358_v52, %v342_v50  ;;  %v360_v11 = vrot.slane %v7978_v15, 1 }
  0xc9   : > { %6007 = vmatprep.subr.bf16.mxu0 %v7289_v29  ;;  %6614 = vmatmul.mubr.msk.bf16.gmra.mrb[76].mxu1 %vm7577_vm4, %v8200_v44  ;;  %v8269_v61 = vpack.c.bf16 %v391_v27, %v375_v26  ;;  %v8290_v29 = vpack.c.bf16 %v392_v55, %v376_v54 }
  0xca   : > { %6617 = vmatprep.mubr.msk.bf16.mxu1 %vm7577_vm4, %v8207_v37  ;;  %6646 = vmatpush3.bf16.msra.mxu1 %v7290_v30  ;;  %v377_v14 = vsel %vm362_vm6, %v344_v3, %v360_v11  ;;  %v393_v15 = vsel %vm362_vm6, %v360_v11, %v344_v3  ;;  %v345_v30 = vrot.slane %v8001_v40, 1 }
  0xcb   : > { %6647 = vmatprep.subr.bf16.mxu1 %v7292_v4  ;;  %v8297_v36 = vpack.c.bf16 %v393_v15, %v377_v14 }
  0xcc   : > { %6008 = vmatpush3.bf16.msra.mxu0 %v7291_v2  ;;  %v378_v40 = vsel %vm362_vm6, %v345_v30, %v361_v45  ;;  %v394_v41 = vsel %vm362_vm6, %v361_v45, %v345_v30 }
  0xcd   : > { %v8312_v5 = vpack.c.bf16 %v394_v41, %v378_v40 }
  0xce   : > { %6648 = vmatpush3.bf16.msra.mxu1 %v7292_v4 }
  0xcf   : > { %6570 = vmatmul.mubr.msk.bf16.gmra.mrb[80].mxu0 %vm7577_vm4, %v8207_v37 }
  0xd0   : > { %6573 = vmatprep.mubr.msk.bf16.mxu0 %vm7577_vm4, %v8234_v13 }
  0xd1   : > { %6618 = vmatmul.mubr.msk.bf16.gmra.mrb[80].mxu1 %vm7577_vm4, %v8234_v13 }
  0xd2   : > { %6621 = vmatprep.mubr.msk.bf16.mxu1 %vm7577_vm4, %v8241_v48 }
  0xd7   : > { %6574 = vmatmul.mubr.msk.bf16.gmra.mrb[84].mxu0 %vm7577_vm4, %v8241_v48 }
  0xd8   : > { %6577 = vmatprep.mubr.msk.bf16.mxu0 %vm7577_vm4, %v8262_v0 }
  0xd9   : > { %6622 = vmatmul.mubr.msk.bf16.gmra.mrb[84].mxu1 %vm7577_vm4, %v8262_v0 }
  0xda   : > { %6625 = vmatprep.mubr.msk.bf16.mxu1 %vm7577_vm4, %v8269_v61 }
  0xdf   : > { %6578 = vmatmul.mubr.msk.bf16.gmra.mrb[88].mxu0 %vm7577_vm4, %v8269_v61 }
  0xe0   : > { %6581 = vmatprep.mubr.msk.bf16.mxu0 %vm7577_vm4, %v8290_v29 }
  0xe1   : > { %6626 = vmatmul.mubr.msk.bf16.gmra.mrb[88].mxu1 %vm7577_vm4, %v8290_v29 }
  0xe2   : > { %6629 = vmatprep.mubr.msk.bf16.mxu1 %vm7577_vm4, %v8297_v36 }
  0xe7   : > { %6582 = vmatmul.mubr.msk.bf16.gmra.mrb[92].mxu0 %vm7577_vm4, %v8297_v36 }
  0xe8   : > { %2041 = vmatprep.mubr.bf16.mxu0 %v7600_v51 }
  0xe9   : > { %6630 = vmatmul.mubr.msk.bf16.gmra.mrb[92].mxu1 %vm7577_vm4, %v8312_v5 }
  0xea   : > { %6649 = vmatprep.mubr.msk.bf16.mxu1 %vm7577_vm4, %v8062_v35 }
  0xef   : > { %5236 = vmatmul.mubr.msk.bf16.vlgmr.msra.gmra.mrb[96].mxu0 %vm7589_vm5, %v7621_v58 }
  0xf0   : > { %2049 = vmatprep.mubr.bf16.mxu0 %v7632_v62 }
  0xf1   : > { %6650 = vmatmul.mubr.msk.bf16.vlgmr.msra.gmra.mrb[64].mxu1 %vm7577_vm4, %v8068_v39 }
  0xf2   : > { %6653 = vmatprep.mubr.msk.bf16.mxu1 %vm7577_vm4, %v8108_v53 }
  0xf7   : > { %5240 = vmatmul.mubr.msk.bf16.gmra.mrb[100].mxu0 %vm7589_vm5, %v7658_v8 }
  0xf8   : > { %2057 = vmatprep.mubr.bf16.mxu0 %v7670_v12 }
  0xf9   : > { %6654 = vmatmul.mubr.msk.bf16.gmra.mrb[68].mxu1 %vm7577_vm4, %v8115_v63 }
  0xfa   : > { %6657 = vmatprep.mubr.msk.bf16.mxu1 %vm7577_vm4, %v8154_v60 }
  0xff   : > { %5244 = vmatmul.mubr.msk.bf16.gmra.mrb[104].mxu0 %vm7589_vm5, %v7696_v20 }
 0x100   : > { %2065 = vmatprep.mubr.bf16.mxu0 %v7708_v24 }
 0x101   : > { %6658 = vmatmul.mubr.msk.bf16.gmra.mrb[72].mxu1 %vm7577_vm4, %v8161_v43 }
 0x102   : > { %v5737_v51 = vpop.f32.mrb[0].mxu0  ;;  %6661 = vmatprep.mubr.msk.bf16.mxu1 %vm7577_vm4, %v8200_v44 }
 0x103   : > { %v5738_v58 = vpop.f32.mrb[1].mxu0 }
 0x104   : > { %v8354_v62 = vadd.f32 %v5738_v58, %v5737_v51  ;;  %v5740_v8 = vpop.f32.mrb[2].mxu0  ;;  %v5873_v35 = vpop.f32.mrb[0].mxu1 }
 0x105   : > { %v5741_v12 = vpop.f32.mrb[3].mxu0  ;;  %v5874_v20 = vpop.f32.mrb[1].mxu1 }
 0x106   : > { %v8356_v39 = vadd.f32 %v5741_v12, %v5740_v8  ;;  %v8361_v24 = vadd.f32 %v5874_v20, %v5873_v35  ;;  %v5876_v53 = vpop.f32.mrb[2].mxu1  ;;  %v10067_v8 = vld [vmem:[#allocation7_spill] sm:$0xff] }
 0x107   : > { %5248 = vmatmul.mubr.msk.bf16.gmra.mrb[108].mxu0 %vm7589_vm5, %v7737_v33  ;;  %v5877_v63 = vpop.f32.mrb[3].mxu1 }
 0x108   : > { %2073 = vmatprep.mubr.bf16.mxu0 %v7746_v38  ;;  %v8364_v60 = vadd.f32 %v5877_v63, %v5876_v53 }
 0x109   : > { %6662 = vmatmul.mubr.msk.bf16.gmra.mrb[76].mxu1 %vm7577_vm4, %v8207_v37 }
 0x10a   : > { %v5743_v43 = vpop.f32.mrb[4].mxu0  ;;  %6665 = vmatprep.mubr.msk.bf16.mxu1 %vm7577_vm4, %v8234_v13 }
 0x10b   : > { %v5744_v44 = vpop.f32.mrb[5].mxu0 }
 0x10c   : > { %v8372_v7 = vadd.f32 %v5744_v44, %v5743_v43  ;;  %v5746_v33 = vpop.f32.mrb[6].mxu0  ;;  %v5879_v4 = vpop.f32.mrb[4].mxu1 }
 0x10d   : > { %v5747_v2 = vpop.f32.mrb[7].mxu0  ;;  %v5880_v38 = vpop.f32.mrb[5].mxu1 }
 0x10e   : > { %v8374_v21 = vadd.f32 %v5747_v2, %v5746_v33  ;;  %v8379_v22 = vadd.f32 %v5880_v38, %v5879_v4  ;;  %v5882_v37 = vpop.f32.mrb[6].mxu1  ;;  %v7294_v33 = vld [vmem:[%s10004_s2] sm:$0xff]  }
 0x10f   : > { %5252 = vmatmul.mubr.msk.bf16.gmra.mrb[112].mxu0 %vm7589_vm5, %v7771_v49  ;;  %v5883_v17 = vpop.f32.mrb[7].mxu1  ;;  %v10068_v38 = vld [vmem:[#allocation8_spill] sm:$0xff] }
 0x110   : > { %2081 = vmatprep.mubr.bf16.mxu0 %v7786_v56  ;;  %v8382_v19 = vadd.f32 %v5883_v17, %v5882_v37 }
 0x111   : > { %6666 = vmatmul.mubr.msk.bf16.gmra.mrb[80].mxu1 %vm7577_vm4, %v8241_v48 }
 0x112   : > { %v5749_v13 = vpop.f32.mrb[8].mxu0  ;;  %6669 = vmatprep.mubr.msk.bf16.mxu1 %vm7577_vm4, %v8262_v0 }
 0x113   : > { %v5750_v16 = vpop.f32.mrb[9].mxu0 }
 0x114   : > { %v8390_v47 = vadd.f32 %v5750_v16, %v5749_v13  ;;  %v5752_v49 = vpop.f32.mrb[10].mxu0  ;;  %v5885_v52 = vpop.f32.mrb[8].mxu1  ;;  %v10069_v13 = vld [vmem:[#allocation9_spill] sm:$0xff] }
 0x115   : > { %v5753_v50 = vpop.f32.mrb[11].mxu0  ;;  %v5886_v56 = vpop.f32.mrb[9].mxu1 }
 0x116   : > { %v8392_v23 = vadd.f32 %v5753_v50, %v5752_v49  ;;  %v8397_v25 = vadd.f32 %v5886_v56, %v5885_v52  ;;  %v5888_v48 = vpop.f32.mrb[10].mxu1  ;;  %v7295_v49 = vld [vmem:[%s10004_s2 + $0x48] sm:$0xff]  }
 0x117   : > { %5256 = vmatmul.mubr.msk.bf16.gmra.mrb[116].mxu0 %vm7589_vm5, %v7812_v9  ;;  %v5889_v26 = vpop.f32.mrb[11].mxu1  ;;  %v7296_v50 = vld [vmem:[%s10004_s2 + $0x8] sm:$0xff]  }
 0x118   : > { %2089 = vmatprep.mubr.bf16.mxu0 %v7819_v10  ;;  %v8400_v27 = vadd.f32 %v5889_v26, %v5888_v48 }
 0x119   : > { %6670 = vmatmul.mubr.msk.bf16.gmra.mrb[84].mxu1 %vm7577_vm4, %v8269_v61 }
 0x11a   : > { %v5755_v0 = vpop.f32.mrb[12].mxu0  ;;  %6673 = vmatprep.mubr.msk.bf16.mxu1 %vm7577_vm4, %v8290_v29 }
 0x11b   : > { %v5756_v1 = vpop.f32.mrb[13].mxu0 }
 0x11c   : > { %v8408_v57 = vadd.f32 %v5756_v1, %v5755_v0  ;;  %v5758_v9 = vpop.f32.mrb[14].mxu0  ;;  %v5891_v11 = vpop.f32.mrb[12].mxu1  ;;  %v7297_v1 = vld [vmem:[%s10004_s2 + $0x50] sm:$0xff]  }
 0x11d   : > { %v5759_v3 = vpop.f32.mrb[15].mxu0  ;;  %v5892_v10 = vpop.f32.mrb[13].mxu1 }
 0x11e   : > { %v8410_v54 = vadd.f32 %v5759_v3, %v5758_v9  ;;  %v8415_v55 = vadd.f32 %v5892_v10, %v5891_v11  ;;  %v5894_v61 = vpop.f32.mrb[14].mxu1  ;;  %v7298_v9 = vld [vmem:[%s10004_s2 + $0x80] sm:$0xff]   ;;  %v7299_v10 = vld [vmem:[%s10004_s2 + $0x10] sm:$0xff]  }
 0x11f   : > { %5260 = vmatmul.mubr.msk.bf16.gmra.mrb[120].mxu0 %vm7589_vm5, %v7852_v28  ;;  %v5895_v14 = vpop.f32.mrb[15].mxu1  ;;  %6681 = vmatprep.subr.bf16.mxu1 %v7298_v9 }
 0x120   : > { %2097 = vmatprep.mubr.bf16.mxu0 %v7859_v31  ;;  %v8418_v15 = vadd.f32 %v5895_v14, %v5894_v61  ;;  %6682 = vmatpush3.bf16.msra.mxu1 %v7298_v9  ;;  %v7308_v9 = vld [vmem:[%s10004_s2 + $0x28] sm:$0xff]  }
 0x121   : > { %6674 = vmatmul.mubr.msk.bf16.gmra.mrb[88].mxu1 %vm7577_vm4, %v8297_v36 }
 0x122   : > { %v5761_v29 = vpop.f32.mrb[16].mxu0  ;;  %6677 = vmatprep.mubr.msk.bf16.mxu1 %vm7577_vm4, %v8312_v5 }
 0x123   : > { %v5762_v30 = vpop.f32.mrb[17].mxu0 }
 0x124   : > { %v8426_v45 = vadd.f32 %v5762_v30, %v5761_v29  ;;  %v5764_v28 = vpop.f32.mrb[18].mxu0  ;;  %v5897_v41 = vpop.f32.mrb[16].mxu1  ;;  %v10070_v29 = vld [vmem:[#allocation10_spill] sm:$0xff] }
 0x125   : > { %v5765_v40 = vpop.f32.mrb[19].mxu0  ;;  %v5898_v31 = vpop.f32.mrb[17].mxu1 }
 0x126   : > { %v8428_v51 = vadd.f32 %v5765_v40, %v5764_v28  ;;  %v8433_v58 = vadd.f32 %v5898_v31, %v5897_v41  ;;  %v5900_v36 = vpop.f32.mrb[18].mxu1  ;;  %v10071_v40 = vld [vmem:[#allocation11_spill] sm:$0xff] }
 0x127   : > { %5264 = vmatmul.mubr.msk.bf16.gmra.mrb[124].mxu0 %vm7589_vm5, %v7876_v59  ;;  %v5901_v12 = vpop.f32.mrb[19].mxu1  ;;  %v7293_v59 = vld [vmem:[%s10004_s2 + $0x40] sm:$0xff]   ;;  %v7300_v31 = vld [vmem:[%s10004_s2 + $0x58] sm:$0xff]  }
 0x128   : > { %2105 = vmatprep.mubr.bf16.mxu0 %v10067_v8  ;;  %v8436_v35 = vadd.f32 %v5901_v12, %v5900_v36  ;;  %6129 = vmatprep.subr.bf16.mxu0 %v7293_v59  ;;  %v7301_v36 = vld [vmem:[%s10004_s2 + $0x88] sm:$0xff]   ;;  %v7302_v8 = vld [vmem:[%s10004_s2 + $0x18] sm:$0xff]  }
 0x129   : > { %6678 = vmatmul.mubr.bf16.gmra.mrb[92].mxu1 %v10066_v34  ;;  %6130 = vmatpush3.bf16.msra.mxu0 %v7294_v33 }
 0x12a   : > { %v5767_v5 = vpop.f32.mrb[20].mxu0  ;;  %6697 = vmatprep.mubr.bf16.mxu1 %v10066_v34  ;;  %6131 = vmatprep.subr.bf16.mxu0 %v7295_v49 }
 0x12b   : > { %v5768_v20 = vpop.f32.mrb[21].mxu0  ;;  %6683 = vmatprep.subr.bf16.mxu1 %v7301_v36 }
 0x12c   : > { %v8440_v53 = vadd.f32 %v5768_v20, %v5767_v5  ;;  %v5770_v63 = vpop.f32.mrb[22].mxu0  ;;  %v5903_v44 = vpop.f32.mrb[20].mxu1  ;;  %6684 = vmatpush3.bf16.msra.mxu1 %v7301_v36  ;;  %v7311_v36 = vld [vmem:[%s10004_s2 + $0x30] sm:$0xff]  }
 0x12d   : > { %v5771_v43 = vpop.f32.mrb[23].mxu0  ;;  %v5904_v4 = vpop.f32.mrb[21].mxu1  ;;  %6132 = vmatpush3.bf16.msra.mxu0 %v7296_v50 }
 0x12e   : > { %v8448_v2 = vadd.f32 %v5771_v43, %v5770_v63  ;;  %v8453_v37 = vadd.f32 %v5904_v4, %v5903_v44  ;;  %v5906_v17 = vpop.f32.mrb[22].mxu1  ;;  %6133 = vmatprep.subr.bf16.mxu0 %v7297_v1  ;;  %v7303_v43 = vld [vmem:[%s10004_s2 + $0x60] sm:$0xff]   ;;  %v7304_v44 = vld [vmem:[%s10004_s2 + $0x90] sm:$0xff]   ;;  %v7307_v1 = vld [vmem:[%s10004_s2 + $0x98] sm:$0xff]  }
 0x12f   : > { %5268 = vmatmul.mubr.msk.bf16.gmra.mrb[128].mxu0 %vm7589_vm5, %v10068_v38  ;;  %v5907_v16 = vpop.f32.mrb[23].mxu1  ;;  %v7305_v38 = vld [vmem:[%s10004_s2 + $0x20] sm:$0xff]   ;;  %6685 = vmatprep.subr.bf16.mxu1 %v7304_v44 }
 0x130   : > { %2113 = vmatprep.mubr.bf16.mxu0 %v10069_v13  ;;  %v8462_v52 = vadd.f32 %v5907_v16, %v5906_v17  ;;  %v10072_v16 = vld [vmem:[#allocation12_spill] sm:$0xff]  ;;  %6686 = vmatpush3.bf16.msra.mxu1 %v7304_v44  ;;  %v10075_v44 = vld [vmem:[#allocation15_spill] sm:$0xff] }
 0x131   : > { %6134 = vmatpush3.bf16.msra.mxu0 %v7299_v10  ;;  %6687 = vmatprep.subr.bf16.mxu1 %v7307_v1 }
 0x132   : > { %v5773_v56 = vpop.f32.mrb[24].mxu0  ;;  %6135 = vmatprep.subr.bf16.mxu0 %v7300_v31 }
 0x133   : > { %v5774_v48 = vpop.f32.mrb[25].mxu0 }
 0x134   : > { %v8464_v26 = vadd.f32 %v5774_v48, %v5773_v56  ;;  %v5776_v0 = vpop.f32.mrb[26].mxu0  ;;  %v5909_v11 = vpop.f32.mrb[24].mxu1  ;;  %v10073_v56 = vld [vmem:[#allocation13_spill] sm:$0xff]  ;;  %6688 = vmatpush3.bf16.msra.mxu1 %v7307_v1  ;;  %v7315_v1 = vld [vmem:[%s10004_s2 + $0xb0] sm:$0xff]  }
 0x135   : > { %v5777_v3 = vpop.f32.mrb[27].mxu0  ;;  %v5910_v14 = vpop.f32.mrb[25].mxu1  ;;  %6136 = vmatpush3.bf16.msra.mxu0 %v7302_v8 }
 0x136   : > { %v8475_v61 = vadd.f32 %v5777_v3, %v5776_v0  ;;  %v8480_v30 = vadd.f32 %v5910_v14, %v5909_v11  ;;  %v5912_v28 = vpop.f32.mrb[26].mxu1  ;;  %6137 = vmatprep.subr.bf16.mxu0 %v7303_v43  ;;  %v7306_v0 = vld [vmem:[%s10004_s2 + $0x68] sm:$0xff]  }
 0x137   : > { %5272 = vmatmul.mubr.msk.bf16.gmra.mrb[132].mxu0 %vm7589_vm5, %v10070_v29  ;;  %v5913_v41 = vpop.f32.mrb[27].mxu1 }
 0x138   : > { %2121 = vmatprep.mubr.bf16.mxu0 %v10071_v40  ;;  %v8492_v12 = vadd.f32 %v5913_v41, %v5912_v28  ;;  %v7309_v28 = vld [vmem:[%s10004_s2 + $0x70] sm:$0xff]   ;;  %v7310_v40 = vld [vmem:[%s10004_s2 + $0xa0] sm:$0xff]  }
 0x139   : > { %6138 = vmatpush3.bf16.msra.mxu0 %v7305_v38  ;;  %6689 = vmatprep.subr.bf16.mxu1 %v7310_v40  ;;  %v7313_v38 = vld [vmem:[%s10004_s2 + $0xa8] sm:$0xff]  }
 0x13a   : > { %v5779_v5 = vpop.f32.mrb[28].mxu0  ;;  %6139 = vmatprep.subr.bf16.mxu0 %v7306_v0  ;;  %6690 = vmatpush3.bf16.msra.mxu1 %v7310_v40 }
 0x13b   : > { %v5780_v20 = vpop.f32.mrb[29].mxu0  ;;  %6691 = vmatprep.subr.bf16.mxu1 %v7313_v38 }
 0x13c   : > { %v8494_v63 = vadd.f32 %v5780_v20, %v5779_v5  ;;  %v5782_v59 = vpop.f32.mrb[30].mxu0  ;;  %v5915_v4 = vpop.f32.mrb[28].mxu1  ;;  %v10074_v20 = vld [vmem:[#allocation14_spill] sm:$0xff] }
 0x13d   : > { %v5783_v33 = vpop.f32.mrb[31].mxu0  ;;  %v5916_v13 = vpop.f32.mrb[29].mxu1  ;;  %6140 = vmatpush3.bf16.msra.mxu0 %v7308_v9 }
 0x13e   : > { %v8505_v17 = vadd.f32 %v5783_v33, %v5782_v59  ;;  %v8510_v49 = vadd.f32 %v5916_v13, %v5915_v4  ;;  %v5918_v50 = vpop.f32.mrb[30].mxu1  ;;  %6141 = vmatprep.subr.bf16.mxu0 %v7309_v28  ;;  %v7312_v4 = vld [vmem:[%s10004_s2 + $0x78] sm:$0xff]   ;;  %6692 = vmatpush3.bf16.msra.mxu1 %v7313_v38  ;;  %v10076_v28 = vld [vmem:[#allocation16_spill] sm:$0xff] }
 0x13f   : > { %5276 = vmatmul.mubr.msk.bf16.gmra.mrb[136].mxu0 %vm7589_vm5, %v10072_v16  ;;  %v5919_v48 = vpop.f32.mrb[31].mxu1  ;;  %v7314_v16 = vld [vmem:[%s10004_s2 + $0x38] sm:$0xff]   ;;  %6693 = vmatprep.subr.bf16.mxu1 %v7315_v1 }
 0x140   : > { %2129 = vmatprep.mubr.bf16.mxu0 %v10073_v56  ;;  %v8522_v3 = vadd.f32 %v5919_v48, %v5918_v50 }
 0x141   : > { %6142 = vmatpush3.bf16.msra.mxu0 %v7311_v36 }
 0x142   : > { %v5785_v11 = vpop.f32.mrb[32].mxu0  ;;  %6143 = vmatprep.subr.bf16.mxu0 %v7312_v4  ;;  %6694 = vmatpush3.bf16.msra.mxu1 %v7315_v1 }
 0x143   : > { %v5786_v10 = vpop.f32.mrb[33].mxu0 }
 0x144   : > { %v8524_v14 = vadd.f32 %v5786_v10, %v5785_v11  ;;  %v5788_v29 = vpop.f32.mrb[34].mxu0  ;;  %v5921_v31 = vpop.f32.mrb[32].mxu1 }
 0x145   : > { %v5789_v41 = vpop.f32.mrb[35].mxu0  ;;  %v5922_v5 = vpop.f32.mrb[33].mxu1  ;;  %6144 = vmatpush3.bf16.msra.mxu0 %v7314_v16 }
 0x146   : > { %v8535_v8 = vadd.f32 %v5789_v41, %v5788_v29  ;;  %v8540_v59 = vadd.f32 %v5922_v5, %v5921_v31  ;;  %v5924_v43 = vpop.f32.mrb[34].mxu1  ;;  %v10077_v31 = vld [vmem:[#allocation17_spill] sm:$0xff]  ;;  %v7316_v5 = vld [vmem:[%s10004_s2 + $0xb8] sm:$0xff]  }
 0x147   : > { %5280 = vmatmul.mubr.msk.bf16.gmra.mrb[140].mxu0 %vm7589_vm5, %v10074_v20  ;;  %v5925_v33 = vpop.f32.mrb[35].mxu1  ;;  %6695 = vmatprep.subr.bf16.mxu1 %v7316_v5 }
 0x148   : > { %2137 = vmatprep.mubr.bf16.mxu0 %v10075_v44  ;;  %v8549_v13 = vadd.f32 %v5925_v33, %v5924_v43  ;;  %6696 = vmatpush3.bf16.msra.mxu1 %v7316_v5 }
 0x14a   : > { %v5791_v50 = vpop.f32.mrb[36].mxu0 }
 0x14b   : > { %v5792_v56 = vpop.f32.mrb[37].mxu0 }
 0x14c   : > { %v8554_v48 = vadd.f32 %v5792_v56, %v5791_v50  ;;  %v5794_v0 = vpop.f32.mrb[38].mxu0  ;;  %v5927_v11 = vpop.f32.mrb[36].mxu1 }
 0x14d   : > { %v5795_v9 = vpop.f32.mrb[39].mxu0  ;;  %v5928_v29 = vpop.f32.mrb[37].mxu1 }
 0x14e   : > { %v8559_v10 = vadd.f32 %v5795_v9, %v5794_v0  ;;  %v8564_v40 = vadd.f32 %v5928_v29, %v5927_v11  ;;  %v5930_v41 = vpop.f32.mrb[38].mxu1  ;;  %v10078_v9 = vld [vmem:[#allocation18_spill] sm:$0xff] }
 0x14f   : > { %5284 = vmatmul.mubr.msk.bf16.gmra.mrb[144].mxu0 %vm7589_vm5, %v10076_v28  ;;  %v5931_v36 = vpop.f32.mrb[39].mxu1 }
 0x150   : > { %2145 = vmatprep.mubr.bf16.mxu0 %v10077_v31  ;;  %v8570_v20 = vadd.f32 %v5931_v36, %v5930_v41 }
 0x152   : > { %v5797_v43 = vpop.f32.mrb[40].mxu0 }
 0x153   : > { %v5798_v44 = vpop.f32.mrb[41].mxu0 }
 0x154   : > { %v8572_v33 = vadd.f32 %v5798_v44, %v5797_v43  ;;  %v5800_v4 = vpop.f32.mrb[42].mxu0  ;;  %v5933_v16 = vpop.f32.mrb[40].mxu1 }
 0x155   : > { %v5801_v38 = vpop.f32.mrb[43].mxu0  ;;  %v5934_v56 = vpop.f32.mrb[41].mxu1 }
 0x156   : > { %v8574_v50 = vadd.f32 %v5801_v38, %v5800_v4  ;;  %v8579_v0 = vadd.f32 %v5934_v56, %v5933_v16  ;;  %v5936_v1 = vpop.f32.mrb[42].mxu1 }
 0x157   : > { %5288 = vmatmul.mubr.msk.bf16.gmra.mrb[148].mxu0 %vm7589_vm5, %v8006_v32  ;;  %v5937_v11 = vpop.f32.mrb[43].mxu1 }
 0x158   : > { %2153 = vmatprep.mubr.bf16.mxu0 %v10078_v9  ;;  %v8582_v29 = vadd.f32 %v5937_v11, %v5936_v1 }
 0x15a   : > { %10079 = vst [vmem:[#allocation7_spill] sm:$0xff] %v8582_v29  ;;  %v5803_v28 = vpop.f32.mrb[44].mxu0 }
 0x15b   : > { %v5804_v41 = vpop.f32.mrb[45].mxu0 }
 0x15c   : > { %v8584_v31 = vadd.f32 %v5804_v41, %v5803_v28  ;;  %v5806_v36 = vpop.f32.mrb[46].mxu0  ;;  %v5939_v43 = vpop.f32.mrb[44].mxu1 }
 0x15d   : > { %v5807_v5 = vpop.f32.mrb[47].mxu0  ;;  %v5940_v4 = vpop.f32.mrb[45].mxu1 }
 0x15e   : > { %v8586_v44 = vadd.f32 %v5807_v5, %v5806_v36  ;;  %v8591_v32 = vadd.f32 %v5940_v4, %v5939_v43  ;;  %v5942_v38 = vpop.f32.mrb[46].mxu1 }
 0x15f   : > { %5292 = vmatmul.mubr.msk.bf16.gmra.mrb[152].mxu0 %vm7589_vm5, %v8033_v18  ;;  %v5943_v16 = vpop.f32.mrb[47].mxu1 }
 0x160   : > { %2161 = vmatprep.mubr.bf16.mxu0 %v10066_v34  ;;  %v8594_v56 = vadd.f32 %v5943_v16, %v5942_v38 }
 0x162   : > { %v5809_v1 = vpop.f32.mrb[48].mxu0 }
 0x163   : > { %v5810_v9 = vpop.f32.mrb[49].mxu0 }
 0x164   : > { %v8596_v11 = vadd.f32 %v5810_v9, %v5809_v1  ;;  %v5812_v28 = vpop.f32.mrb[50].mxu0  ;;  %v5945_v36 = vpop.f32.mrb[48].mxu1 }
 0x165   : > { %v5813_v41 = vpop.f32.mrb[51].mxu0  ;;  %v5946_v42 = vpop.f32.mrb[49].mxu1 }
 0x166   : > { %10080 = vst [vmem:[#allocation8_spill] sm:$0xff] %v8596_v11  ;;  %v8598_v5 = vadd.f32 %v5813_v41, %v5812_v28  ;;  %v8601_v18 = vadd.f32 %v5946_v42, %v5945_v36  ;;  %v5948_v43 = vpop.f32.mrb[50].mxu1 }
 0x167   : > { %2162 = vmatmul.mubr.bf16.gmra.mrb[156].mxu0 %v10066_v34  ;;  %v5949_v4 = vpop.f32.mrb[51].mxu1 }
 0x168   : > { %10081 = vst [vmem:[#allocation9_spill] sm:$0xff] %v8598_v5  ;;  %10082 = vst [vmem:[#allocation10_spill] sm:$0xff] %v8601_v18  ;;  %2970 = vmatprep.mubr.bf16.mxu0 %v10066_v34  ;;  %v8604_v38 = vadd.f32 %v5949_v4, %v5948_v43 }
 0x16a   : > { %10083 = vst [vmem:[#allocation11_spill] sm:$0xff] %v8604_v38  ;;  %v5815_v16 = vpop.f32.mrb[52].mxu0 }
 0x16b   : > { %v5816_v46 = vpop.f32.mrb[53].mxu0 }
 0x16c   : > { %v8606_v1 = vadd.f32 %v5816_v46, %v5815_v16  ;;  %v5818_v9 = vpop.f32.mrb[54].mxu0  ;;  %v5951_v11 = vpop.f32.mrb[52].mxu1 }
 0x16d   : > { %v5819_v6 = vpop.f32.mrb[55].mxu0  ;;  %v5952_v41 = vpop.f32.mrb[53].mxu1 }
 0x16e   : > { %10084 = vst [vmem:[#allocation12_spill] sm:$0xff] %v8606_v1  ;;  %v8608_v28 = vadd.f32 %v5819_v6, %v5818_v9  ;;  %v8610_v5 = vadd.f32 %v5952_v41, %v5951_v11  ;;  %v5954_v42 = vpop.f32.mrb[54].mxu1 }
 0x16f   : > { %2971 = vmatmul.mubr.bf16.vlgmr.msra.gmra.mrb[160].mxu0 %v10066_v34  ;;  %v5955_v36 = vpop.f32.mrb[55].mxu1 }
 0x170   : > { %10085 = vst [vmem:[#allocation13_spill] sm:$0xff] %v8608_v28  ;;  %10086 = vst [vmem:[#allocation14_spill] sm:$0xff] %v8610_v5  ;;  %v8613_v18 = vadd.f32 %v5955_v36, %v5954_v42 }
 0x172   : > { %10087 = vst [vmem:[#allocation15_spill] sm:$0xff] %v8613_v18  ;;  %v5821_v43 = vpop.f32.mrb[56].mxu0 }
 0x173   : > { %v5822_v4 = vpop.f32.mrb[57].mxu0 }
 0x174   : > { %v8615_v38 = vadd.f32 %v5822_v4, %v5821_v43  ;;  %v5824_v46 = vpop.f32.mrb[58].mxu0  ;;  %v5957_v1 = vpop.f32.mrb[56].mxu1 }
 0x175   : > { %v5825_v16 = vpop.f32.mrb[59].mxu0  ;;  %v5958_v6 = vpop.f32.mrb[57].mxu1 }
 0x176   : > { %10088 = vst [vmem:[#allocation16_spill] sm:$0xff] %v8615_v38  ;;  %v8617_v29 = vadd.f32 %v5825_v16, %v5824_v46  ;;  %v8619_v9 = vadd.f32 %v5958_v6, %v5957_v1  ;;  %v5960_v11 = vpop.f32.mrb[58].mxu1  ;;  %v8630_v46 = vld [vmem:[%s10005_s3] ss:$0 sm:$0xff] }
 0x177   : > { %v5961_v41 = vpop.f32.mrb[59].mxu1 }
 0x178   : > { %10089 = vst [vmem:[#allocation17_spill] sm:$0xff] %v8617_v29  ;;  %10090 = vst [vmem:[#allocation18_spill] sm:$0xff] %v8619_v9  ;;  %v8621_v5 = vadd.f32 %v5961_v41, %v5960_v11  ;;  %v6825_v11 = vadd.f32 %v8372_v7, %v8630_v46 }
 0x17a   : > { %10091 = vst [vmem:[#allocation19_spill] sm:$0xff] %v8621_v5  ;;  %v5827_v34 = vpop.f32.mrb[60].mxu0  ;;  %v6835_v5 = vadd.f32 %v8374_v21, %v8630_v46  ;;  %v6845_v21 = vadd.f32 %v8408_v57, %v8630_v46 }
 0x17b   : > { %v5828_v28 = vpop.f32.mrb[61].mxu0 }
 0x17c   : > { %v8623_v42 = vadd.f32 %v5828_v28, %v5827_v34  ;;  %v5830_v36 = vpop.f32.mrb[62].mxu0  ;;  %v5963_v43 = vpop.f32.mrb[60].mxu1 }
 0x17d   : > { %v5831_v18 = vpop.f32.mrb[63].mxu0  ;;  %v5964_v38 = vpop.f32.mrb[61].mxu1 }
 0x17e   : > { %v8625_v4 = vadd.f32 %v5831_v18, %v5830_v36  ;;  %v8632_v1 = vadd.f32 %v5964_v38, %v5963_v43  ;;  %v5966_v16 = vpop.f32.mrb[62].mxu1  ;;  %v6830_v18 = vadd.f32 %v8354_v62, %v8630_v46  ;;  %v6840_v38 = vadd.f32 %v8356_v39, %v8630_v46 }
 0x17f   : > { %v5967_v6 = vpop.f32.mrb[63].mxu1  ;;  %v6850_v39 = vadd.f32 %v8390_v47, %v8630_v46 }
 0x180   : > { %v8636_v34 = vadd.f32 %v5967_v6, %v5966_v16 }
 0x182   : > { %10092 = vst [vmem:[#allocation20_spill] sm:$0xff] %v8636_v34  ;;  %v6555_v28 = vpop.f32.mrb[64].mxu0 }
 0x183   : > { %v6826_v41 = vadd.f32 %v6825_v11, %v6555_v28  ;;  %v1013_v36 = vpop.f32.mrb[65].mxu0 }
 0x184   : > { %v6831_v9 = vadd.f32 %v6830_v18, %v1013_v36  ;;  %v6556_v29 = vpop.f32.mrb[66].mxu0 }
 0x185   : > { %v8645_v43 = vadd.f32 %v6826_v41, %v8379_v22  ;;  %v6836_v7 = vadd.f32 %v6835_v5, %v6556_v29  ;;  %v1016_v16 = vpop.f32.mrb[67].mxu0 }
 0x186   : > { %v8648_v6 = vadd.f32 %v6831_v9, %v8361_v24  ;;  %v6841_v34 = vadd.f32 %v6840_v38, %v1016_v16  ;;  %v6855_v24 = vadd.f32 %v8410_v54, %v8630_v46  ;;  %v6865_v54 = vadd.f32 %v8440_v53, %v8630_v46 }
 0x187   : > { %v8651_v62 = vadd.f32 %v6836_v7, %v8382_v19  ;;  %v6860_v19 = vadd.f32 %v8392_v23, %v8630_v46  ;;  %v6870_v23 = vadd.f32 %v8426_v45, %v8630_v46 }
 0x188   : > { %v8654_v11 = vadd.f32 %v6841_v34, %v8364_v60 }
 0x18a   : > { %v6559_v28 = vpop.f32.mrb[68].mxu0 }
 0x18b   : > { %v6846_v22 = vadd.f32 %v6845_v21, %v6559_v28  ;;  %v1029_v29 = vpop.f32.mrb[69].mxu0 }
 0x18c   : > { %v6851_v5 = vadd.f32 %v6850_v39, %v1029_v29  ;;  %v6560_v9 = vpop.f32.mrb[70].mxu0  ;;  %v6885_v29 = vadd.f32 %v8494_v63, %v8630_v46 }
 0x18d   : > { %v8665_v60 = vadd.f32 %v6846_v22, %v8415_v55  ;;  %v6856_v34 = vadd.f32 %v6855_v24, %v6560_v9  ;;  %v1032_v18 = vpop.f32.mrb[71].mxu0 }
 0x18e   : > { %v8668_v57 = vadd.f32 %v6851_v5, %v8397_v25  ;;  %v6861_v41 = vadd.f32 %v6860_v19, %v1032_v18  ;;  %v6875_v25 = vadd.f32 %v8448_v2, %v8630_v46 }
 0x18f   : > { %v8671_v47 = vadd.f32 %v6856_v34, %v8418_v15  ;;  %v6880_v15 = vadd.f32 %v8428_v51, %v8630_v46 }
 0x190   : > { %v8674_v36 = vadd.f32 %v6861_v41, %v8400_v27  ;;  %v8687_v27 = vld [vmem:[%s10004_s2 + $0x140] sm:$0xff]  }
 0x191   : > { %6729 = vmatprep.subr.bf16.mxu1 %v8687_v27 }
 0x192   : > { %v6563_v38 = vpop.f32.mrb[72].mxu0 }
 0x193   : > { %v6866_v55 = vadd.f32 %v6865_v54, %v6563_v38  ;;  %v1045_v7 = vpop.f32.mrb[73].mxu0 }
 0x194   : > { %v6871_v16 = vadd.f32 %v6870_v23, %v1045_v7  ;;  %v6564_v21 = vpop.f32.mrb[74].mxu0 }
 0x195   : > { %v8690_v53 = vadd.f32 %v6866_v55, %v8453_v37  ;;  %v6876_v28 = vadd.f32 %v6875_v25, %v6564_v21  ;;  %v1048_v45 = vpop.f32.mrb[75].mxu0  ;;  %v6890_v37 = vadd.f32 %v8464_v26, %v8630_v46 }
 0x196   : > { %v8693_v39 = vadd.f32 %v6871_v16, %v8433_v58  ;;  %v6881_v22 = vadd.f32 %v6880_v15, %v1048_v45  ;;  %v6895_v58 = vadd.f32 %v8505_v17, %v8630_v46  ;;  %v6905_v17 = vadd.f32 %v8554_v48, %v8630_v46 }
 0x197   : > { %v8697_v2 = vadd.f32 %v6876_v28, %v8462_v52  ;;  %v6900_v52 = vadd.f32 %v8475_v61, %v8630_v46  ;;  %v6910_v61 = vadd.f32 %v8524_v14, %v8630_v46 }
 0x198   : > { %v8700_v51 = vadd.f32 %v6881_v22, %v8436_v35 }
 0x19a   : > { %v6567_v24 = vpop.f32.mrb[76].mxu0 }
 0x19b   : > { %v6886_v5 = vadd.f32 %v6885_v29, %v6567_v24  ;;  %v1061_v9 = vpop.f32.mrb[77].mxu0 }
 0x19c   : > { %v6891_v19 = vadd.f32 %v6890_v37, %v1061_v9  ;;  %v6568_v34 = vpop.f32.mrb[78].mxu0 }
 0x19d   : > { %v8711_v35 = vadd.f32 %v6886_v5, %v8510_v49  ;;  %v6896_v18 = vadd.f32 %v6895_v58, %v6568_v34  ;;  %v1064_v41 = vpop.f32.mrb[79].mxu0  ;;  %v10093_v58 = vld [vmem:[#allocation7_spill] sm:$0xff]  ;;  %v10094_v34 = vld [vmem:[#allocation12_spill] sm:$0xff] }
 0x19e   : > { %v8714_v63 = vadd.f32 %v6891_v19, %v8480_v30  ;;  %v6901_v54 = vadd.f32 %v6900_v52, %v1064_v41  ;;  %v6915_v30 = vadd.f32 %v8559_v10, %v8630_v46  ;;  %v6925_v10 = vadd.f32 %v8584_v31, %v8630_v46  ;;  %v10095_v41 = vld [vmem:[#allocation8_spill] sm:$0xff] }
 0x19f   : > { %v8717_v26 = vadd.f32 %v6896_v18, %v8522_v3  ;;  %v6920_v3 = vadd.f32 %v8535_v8, %v8630_v46  ;;  %v6930_v8 = vadd.f32 %v8572_v33, %v8630_v46  ;;  %v7323_v33 = vld [vmem:[%s10004_s2 + $0xc0] sm:$0xff]   ;;  %v6945_v52 = vadd.f32 %v10094_v34, %v8630_v46 }
 0x1a0   : > { %v8720_v38 = vadd.f32 %v6901_v54, %v8492_v12  ;;  %v6975_v34 = vadd.f32 %v8625_v4, %v8630_v46  ;;  %v10104_v4 = vld [vmem:[#allocation18_spill] sm:$0xff] }
 0x1a2   : > { %v6571_v23 = vpop.f32.mrb[80].mxu0 }
 0x1a3   : > { %v6906_v49 = vadd.f32 %v6905_v17, %v6571_v23  ;;  %v1077_v55 = vpop.f32.mrb[81].mxu0  ;;  %v10096_v23 = vld [vmem:[#allocation13_spill] sm:$0xff] }
 0x1a4   : > { %v6911_v7 = vadd.f32 %v6910_v61, %v1077_v55  ;;  %v6572_v25 = vpop.f32.mrb[82].mxu0  ;;  %v6955_v61 = vadd.f32 %v10096_v23, %v8630_v46  ;;  %v7333_v23 = vld [vmem:[%s10004_s2 + $0xe0] sm:$0xff]  }
 0x1a5   : > { %v8731_v12 = vadd.f32 %v6906_v49, %v8564_v40  ;;  %v6916_v16 = vadd.f32 %v6915_v30, %v6572_v25  ;;  %v1080_v21 = vpop.f32.mrb[83].mxu0  ;;  %v10097_v30 = vld [vmem:[#allocation9_spill] sm:$0xff]  ;;  %v7326_v25 = vld [vmem:[%s10004_s2 + $0x110] sm:$0xff]  }
 0x1a6   : > { %v8734_v48 = vadd.f32 %v6911_v7, %v8540_v59  ;;  %v6921_v15 = vadd.f32 %v6920_v3, %v1080_v21  ;;  %v6935_v59 = vadd.f32 %v8586_v44, %v8630_v46  ;;  %v6960_v7 = vadd.f32 %v10097_v30, %v8630_v46  ;;  %v10098_v3 = vld [vmem:[#allocation14_spill] sm:$0xff]  ;;  %v10106_v30 = vld [vmem:[#allocation19_spill] sm:$0xff] }
 0x1a7   : > { %v8737_v14 = vadd.f32 %v6916_v16, %v8570_v20  ;;  %v6940_v20 = vadd.f32 %v8574_v50, %v8630_v46 }
 0x1a8   : > { %v8740_v28 = vadd.f32 %v6921_v15, %v8549_v13  ;;  %v7321_v13 = vld [vmem:[%s10004_s2 + $0x100] sm:$0xff]  }
 0x1a9   : > { %6265 = vmatprep.subr.bf16.mxu0 %v7321_v13  ;;  %v6965_v13 = vadd.f32 %v8623_v42, %v8630_v46 }
 0x1aa   : > { %v6575_v45 = vpop.f32.mrb[84].mxu0  ;;  %6266 = vmatpush3.bf16.msra.mxu0 %v7323_v33  ;;  %v10102_v33 = vld [vmem:[#allocation16_spill] sm:$0xff] }
 0x1ab   : > { %v6926_v40 = vadd.f32 %v6925_v10, %v6575_v45  ;;  %v1093_v22 = vpop.f32.mrb[85].mxu0  ;;  %v7328_v10 = vld [vmem:[%s10004_s2 + $0xd0] sm:$0xff]  }
 0x1ac   : > { %v6931_v29 = vadd.f32 %v6930_v8, %v1093_v22  ;;  %v6576_v24 = vpop.f32.mrb[86].mxu0  ;;  %v10099_v45 = vld [vmem:[#allocation10_spill] sm:$0xff]  ;;  %v10100_v22 = vld [vmem:[#allocation15_spill] sm:$0xff] }
 0x1ad   : > { %v8754_v31 = vadd.f32 %v6926_v40, %v8591_v32  ;;  %v6936_v37 = vadd.f32 %v6935_v59, %v6576_v24  ;;  %v1096_v5 = vpop.f32.mrb[87].mxu0  ;;  %v7324_v32 = vld [vmem:[%s10004_s2 + $0x108] sm:$0xff]  }
 0x1ae   : > { %v8760_v44 = vadd.f32 %v6931_v29, %v8579_v0  ;;  %v6941_v9 = vadd.f32 %v6940_v20, %v1096_v5  ;;  %v7325_v0 = vld [vmem:[%s10004_s2 + $0xc8] sm:$0xff]   ;;  %6267 = vmatprep.subr.bf16.mxu0 %v7324_v32  ;;  %v10101_v29 = vld [vmem:[#allocation11_spill] sm:$0xff] }
 0x1af   : > { %v8763_v50 = vadd.f32 %v6936_v37, %v8594_v56  ;;  %v6950_v56 = vadd.f32 %v10095_v41, %v8630_v46  ;;  %6268 = vmatpush3.bf16.msra.mxu0 %v7325_v0  ;;  %v7329_v20 = vld [vmem:[%s10004_s2 + $0x118] sm:$0xff]   ;;  %v7331_v41 = vld [vmem:[%s10004_s2 + $0x120] sm:$0xff]  }
 0x1b0   : > { %v8766_v19 = vadd.f32 %v6941_v9, %v10093_v58  ;;  %6269 = vmatprep.subr.bf16.mxu0 %v7326_v25  ;;  %v7330_v37 = vld [vmem:[%s10004_s2 + $0xd8] sm:$0xff]   ;;  %v6970_v9 = vadd.f32 %v10102_v33, %v8630_v46  ;;  %v7335_v25 = vld [vmem:[%s10004_s2 + $0xe8] sm:$0xff]  }
 0x1b2   : > { %v6579_v18 = vpop.f32.mrb[88].mxu0 }
 0x1b3   : > { %v6946_v54 = vadd.f32 %v6945_v52, %v6579_v18  ;;  %v1109_v17 = vpop.f32.mrb[89].mxu0  ;;  %6270 = vmatpush3.bf16.msra.mxu0 %v7328_v10  ;;  %v10103_v18 = vld [vmem:[#allocation17_spill] sm:$0xff] }
 0x1b4   : > { %v6951_v49 = vadd.f32 %v6950_v56, %v1109_v17  ;;  %v6580_v55 = vpop.f32.mrb[90].mxu0  ;;  %6271 = vmatprep.subr.bf16.mxu0 %v7329_v20  ;;  %v6980_v42 = vadd.f32 %v10103_v18, %v8630_v46 }
 0x1b5   : > { %v8786_v16 = vadd.f32 %v6946_v54, %v10098_v3  ;;  %v6956_v21 = vadd.f32 %v6955_v61, %v6580_v55  ;;  %v1112_v15 = vpop.f32.mrb[91].mxu0  ;;  %v10105_v55 = vld [vmem:[#allocation20_spill] sm:$0xff] }
 0x1b6   : > { %v8792_v8 = vadd.f32 %v6951_v49, %v10099_v45  ;;  %v6961_v40 = vadd.f32 %v6960_v7, %v1112_v15  ;;  %v7336_v45 = vld [vmem:[%s10004_s2 + $0x130] sm:$0xff]  }
 0x1b7   : > { %v8795_v59 = vadd.f32 %v6956_v21, %v10100_v22  ;;  %6272 = vmatpush3.bf16.msra.mxu0 %v7330_v37 }
 0x1b8   : > { %v8798_v24 = vadd.f32 %v6961_v40, %v10101_v29  ;;  %6273 = vmatprep.subr.bf16.mxu0 %v7331_v41  ;;  %v7338_v29 = vld [vmem:[%s10004_s2 + $0xf0] sm:$0xff]  }
 0x1ba   : > { %v6583_v5 = vpop.f32.mrb[92].mxu0 }
 0x1bb   : > { %v6966_v58 = vadd.f32 %v6965_v13, %v6583_v5  ;;  %v1125_v32 = vpop.f32.mrb[93].mxu0  ;;  %6274 = vmatpush3.bf16.msra.mxu0 %v7333_v23 }
 0x1bc   : > { %v6971_v52 = vadd.f32 %v6970_v9, %v1125_v32  ;;  %v6584_v0 = vpop.f32.mrb[94].mxu0  ;;  %v7339_v32 = vld [vmem:[%s10004_s2 + $0x138] sm:$0xff]  }
 0x1bd   : > { %v8818_v56 = vadd.f32 %v6966_v58, %v8632_v1  ;;  %v6976_v54 = vadd.f32 %v6975_v34, %v6584_v0  ;;  %v1128_v17 = vpop.f32.mrb[95].mxu0  ;;  %v7334_v1 = vld [vmem:[%s10004_s2 + $0x128] sm:$0xff]   ;;  %v7340_v34 = vld [vmem:[%s10004_s2 + $0xf8] sm:$0xff]  }
 0x1be   : > { %v8824_v61 = vadd.f32 %v6971_v52, %v10104_v4  ;;  %v6981_v49 = vadd.f32 %v6980_v42, %v1128_v17  ;;  %6275 = vmatprep.subr.bf16.mxu0 %v7334_v1 }
 0x1bf   : > { %v8827_v46 = vadd.f32 %v6976_v54, %v10105_v55  ;;  %6276 = vmatpush3.bf16.msra.mxu0 %v7335_v25 }
 0x1c0   : > { %v8830_v7 = vadd.f32 %v6981_v49, %v10106_v30  ;;  %6277 = vmatprep.subr.bf16.mxu0 %v7336_v45 }
 0x1c2   : > { %v6009_v3 = vpop.f32.mrb[96].mxu0 }
 0x1c3   : > { %v6010_v21 = vpop.f32.mrb[97].mxu0  ;;  %6278 = vmatpush3.bf16.msra.mxu0 %v7338_v29 }
 0x1c4   : > { %v6011_v15 = vadd.f32 %v6010_v21, %v6009_v3  ;;  %v6012_v10 = vpop.f32.mrb[98].mxu0  ;;  %v6651_v40 = vpop.f32.mrb[64].mxu1  ;;  %6279 = vmatprep.subr.bf16.mxu0 %v7339_v32 }
 0x1c5   : > { %v6013_v22 = vpop.f32.mrb[99].mxu0  ;;  %v2204_v20 = vpop.f32.mrb[65].mxu1 }
 0x1c6   : > { %v6833_v13 = vadd.f32 %v8648_v6, %v6011_v15  ;;  %v6014_v37 = vadd.f32 %v6013_v22, %v6012_v10  ;;  %v6652_v5 = vpop.f32.mrb[66].mxu1  ;;  %v7344_v15 = vld [vmem:[%s10004_s2 + $0x188] sm:$0xff]  }
 0x1c7   : > { %v2207_v9 = vpop.f32.mrb[67].mxu1  ;;  %6280 = vmatpush3.bf16.msra.mxu0 %v7340_v34 }
 0x1c8   : > { %v6834_v33 = vadd.f32 %v6833_v13, %v2204_v20  ;;  %v6843_v58 = vadd.f32 %v8654_v11, %v6014_v37 }
 0x1ca   : > { %v2363_v52 = vmax.f32 %v6834_v33, 0.0  ;;  %v6844_v0 = vadd.f32 %v6843_v58, %v2207_v9  ;;  %v6015_v18 = vpop.f32.mrb[100].mxu0  ;;  %v7318_v33 = vld [vmem:[%s10004_s2 + $0x148] sm:$0xff]  }
 0x1cb   : > { %v6016_v6 = vpop.f32.mrb[101].mxu0 }
 0x1cc   : > { %v2364_v42 = vmax.f32 %v6844_v0, 0.0  ;;  %v6017_v41 = vadd.f32 %v6016_v6, %v6015_v18  ;;  %v6018_v54 = vpop.f32.mrb[102].mxu0  ;;  %v2459_v17 = vrot.slane %v2363_v52, 1  ;;  %v8852_v23 = vpop.f32.mrb[68].mxu1  ;;  %v2395_v25 = vrot.slane %v2363_v52, 7 }
 0x1cd   : > { %v6019_v11 = vpop.f32.mrb[103].mxu0  ;;  %v2220_v30 = vpop.f32.mrb[69].mxu1 }
 0x1ce   : > { %v2411_v4 = vrot.slane %v2364_v42, 7  ;;  %v2475_v49 = vrot.slane %v2364_v42, 1  ;;  %v6828_v55 = vadd.f32 %v8645_v43, %v6017_v41  ;;  %v6020_v1 = vadd.f32 %v6019_v11, %v6018_v54  ;;  %v8855_v3 = vpop.f32.mrb[70].mxu1  ;;  %v7319_v54 = vld [vmem:[%s10004_s2 + $0x150] sm:$0xff]  }
 0x1cf   : > { %v8857_v21 = vpack.c.bf16 %v2364_v42, %v2363_v52  ;;  %v2223_v20 = vpop.f32.mrb[71].mxu1 }
 0x1d0   : > { %v2491_v10 = vsel %vm362_vm6, %v2459_v17, %v2475_v49  ;;  %v2507_v45 = vsel %vm362_vm6, %v2475_v49, %v2459_v17  ;;  %v6829_v22 = vadd.f32 %v6828_v55, %v6651_v40  ;;  %v6838_v29 = vadd.f32 %v8651_v62, %v6020_v1 }
 0x1d1   : > { %v8864_v13 = vpack.c.bf16 %v2507_v45, %v2491_v10  ;;  %2978 = vmatprep.mubr.bf16.mxu0 %v8857_v21  ;;  %v2427_v43 = vsel %vm297_vm0, %v2395_v25, %v2411_v4  ;;  %v2443_v37 = vsel %vm297_vm0, %v2411_v4, %v2395_v25 }
 0x1d2   : > { %v2365_v9 = vmax.f32 %v6829_v22, 0.0  ;;  %v6839_v58 = vadd.f32 %v6838_v29, %v6652_v5  ;;  %v6021_v40 = vpop.f32.mrb[104].mxu0  ;;  %v8874_v32 = vpack.c.bf16 %v2427_v43, %v2443_v37 }
 0x1d3   : > { %v6022_v62 = vpop.f32.mrb[105].mxu0  ;;  %6698 = vmatmul.mubr.msk.bf16.vlgmr.msra.gmra.mrb[96].mxu1 %vm7577_vm4, %v8864_v13 }
 0x1d4   : > { %v2366_v52 = vmax.f32 %v6839_v58, 0.0  ;;  %v6023_v0 = vadd.f32 %v6022_v62, %v6021_v40  ;;  %5356 = vmatmul.mubr.msk.bf16.gmra.mrb[164].mxu0 %vm7589_vm5, %v8874_v32  ;;  %v6024_v6 = vpop.f32.mrb[106].mxu0  ;;  %6730 = vmatpush3.bf16.msra.mxu1 %v8687_v27  ;;  %v2396_v42 = vrot.slane %v2365_v9, 7  ;;  %v8883_v41 = vpop.f32.mrb[72].mxu1  ;;  %v2460_v1 = vrot.slane %v2365_v9, 1 }
 0x1d5   : > { %v6025_v5 = vpop.f32.mrb[107].mxu0  ;;  %6731 = vmatprep.subr.bf16.mxu1 %v7318_v33  ;;  %v8889_v49 = vpop.f32.mrb[73].mxu1 }
 0x1d6   : > { %v2412_v17 = vrot.slane %v2366_v52, 7  ;;  %v2476_v11 = vrot.slane %v2366_v52, 1  ;;  %v6853_v4 = vadd.f32 %v8668_v57, %v6023_v0  ;;  %v6026_v55 = vadd.f32 %v6025_v5, %v6024_v6  ;;  %v8891_v25 = vpop.f32.mrb[74].mxu1 }
 0x1d7   : > { %v8893_v27 = vpack.c.bf16 %v2366_v52, %v2365_v9  ;;  %v8896_v22 = vpop.f32.mrb[75].mxu1 }
 0x1d8   : > { %v6854_v10 = vadd.f32 %v6853_v4, %v2220_v30  ;;  %v6863_v45 = vadd.f32 %v8674_v36, %v6026_v55  ;;  %v2428_v29 = vsel %vm297_vm0, %v2396_v42, %v2412_v17  ;;  %v2444_v43 = vsel %vm297_vm0, %v2412_v17, %v2396_v42  ;;  %6732 = vmatpush3.bf16.msra.mxu1 %v7318_v33  ;;  %v7320_v33 = vld [vmem:[%s10004_s2 + $0x158] sm:$0xff]  }
 0x1d9   : > { %2986 = vmatprep.mubr.bf16.mxu0 %v8893_v27  ;;  %v8903_v57 = vpack.c.bf16 %v2428_v29, %v2444_v43  ;;  %v2492_v37 = vsel %vm362_vm6, %v2460_v1, %v2476_v11  ;;  %v2508_v30 = vsel %vm362_vm6, %v2476_v11, %v2460_v1  ;;  %6733 = vmatprep.subr.bf16.mxu1 %v7319_v54 }
 0x1da   : > { %v2367_v36 = vmax.f32 %v6854_v10, 0.0  ;;  %v6864_v9 = vadd.f32 %v6863_v45, %v2223_v20  ;;  %v6027_v58 = vpop.f32.mrb[108].mxu0  ;;  %v8909_v40 = vpack.c.bf16 %v2508_v30, %v2492_v37  ;;  %v7322_v10 = vld [vmem:[%s10004_s2 + $0x160] sm:$0xff]  }
 0x1db   : > { %v6028_v62 = vpop.f32.mrb[109].mxu0 }
 0x1dc   : > { %v2368_v52 = vmax.f32 %v6864_v9, 0.0  ;;  %v6029_v0 = vadd.f32 %v6028_v62, %v6027_v58  ;;  %5360 = vmatmul.mubr.msk.bf16.gmra.mrb[168].mxu0 %vm7589_vm5, %v8903_v57  ;;  %6701 = vmatprep.mubr.msk.bf16.mxu1 %vm7577_vm4, %v8909_v40  ;;  %v6030_v6 = vpop.f32.mrb[110].mxu0  ;;  %v2397_v20 = vrot.slane %v2367_v36, 7  ;;  %v8920_v42 = vpop.f32.mrb[76].mxu1  ;;  %v2461_v45 = vrot.slane %v2367_v36, 1 }
 0x1dd   : > { %v6031_v5 = vpop.f32.mrb[111].mxu0  ;;  %6734 = vmatpush3.bf16.msra.mxu1 %v7319_v54  ;;  %v8923_v55 = vpop.f32.mrb[77].mxu1 }
 0x1de   : > { %v2413_v17 = vrot.slane %v2368_v52, 7  ;;  %v2477_v11 = vrot.slane %v2368_v52, 1  ;;  %v6848_v4 = vadd.f32 %v8665_v60, %v6029_v0  ;;  %v6032_v1 = vadd.f32 %v6031_v5, %v6030_v6  ;;  %6735 = vmatprep.subr.bf16.mxu1 %v7320_v33  ;;  %v8928_v29 = vpop.f32.mrb[78].mxu1  ;;  %v7327_v6 = vld [vmem:[%s10004_s2 + $0x168] sm:$0xff]  }
 0x1df   : > { %v8930_v43 = vpack.c.bf16 %v2368_v52, %v2367_v36  ;;  %v8934_v30 = vpop.f32.mrb[79].mxu1 }
 0x1e0   : > { %v6849_v37 = vadd.f32 %v6848_v4, %v8852_v23  ;;  %v6858_v54 = vadd.f32 %v8671_v47, %v6032_v1  ;;  %v2429_v60 = vsel %vm297_vm0, %v2397_v20, %v2413_v17  ;;  %v2445_v9 = vsel %vm297_vm0, %v2413_v17, %v2397_v20 }
 0x1e1   : > { %2994 = vmatprep.mubr.bf16.mxu0 %v8930_v43  ;;  %v8941_v58 = vpack.c.bf16 %v2429_v60, %v2445_v9  ;;  %v2493_v36 = vsel %vm362_vm6, %v2461_v45, %v2477_v11  ;;  %v2509_v23 = vsel %vm362_vm6, %v2477_v11, %v2461_v45  ;;  %6736 = vmatpush3.bf16.msra.mxu1 %v7320_v33  ;;  %v7332_v9 = vld [vmem:[%s10004_s2 + $0x170] sm:$0xff]  }
 0x1e2   : > { %v2369_v47 = vmax.f32 %v6849_v37, 0.0  ;;  %v6859_v62 = vadd.f32 %v6858_v54, %v8855_v3  ;;  %v6033_v52 = vpop.f32.mrb[112].mxu0  ;;  %v8948_v0 = vpack.c.bf16 %v2509_v23, %v2493_v36  ;;  %6737 = vmatprep.subr.bf16.mxu1 %v7322_v10 }
 0x1e3   : > { %10110 = vst [vmem:[#allocation7_spill] sm:$0xff] %v8941_v58  ;;  %v6034_v20 = vpop.f32.mrb[113].mxu0 }
 0x1e4   : > { %v2370_v5 = vmax.f32 %v6859_v62, 0.0  ;;  %v6035_v17 = vadd.f32 %v6034_v20, %v6033_v52  ;;  %5364 = vmatmul.mubr.msk.bf16.gmra.mrb[172].mxu0 %vm7589_vm5, %v8941_v58  ;;  %6702 = vmatmul.mubr.msk.bf16.gmra.mrb[100].mxu1 %vm7577_vm4, %v8948_v0  ;;  %v6036_v3 = vpop.f32.mrb[114].mxu0  ;;  %v2398_v33 = vrot.slane %v2369_v47, 7  ;;  %v8959_v11 = vpop.f32.mrb[80].mxu1  ;;  %v2462_v36 = vrot.slane %v2369_v47, 1 }
 0x1e5   : > { %v6037_v4 = vpop.f32.mrb[115].mxu0  ;;  %6738 = vmatpush3.bf16.msra.mxu1 %v7322_v10  ;;  %v8962_v54 = vpop.f32.mrb[81].mxu1 }
 0x1e6   : > { %v2414_v1 = vrot.slane %v2370_v5, 7  ;;  %v2478_v45 = vrot.slane %v2370_v5, 1  ;;  %v6873_v37 = vadd.f32 %v8693_v39, %v6035_v17  ;;  %v6038_v60 = vadd.f32 %v6037_v4, %v6036_v3  ;;  %6739 = vmatprep.subr.bf16.mxu1 %v7327_v6  ;;  %v8967_v23 = vpop.f32.mrb[82].mxu1 }
 0x1e7   : > { %v8969_v62 = vpack.c.bf16 %v2370_v5, %v2369_v47  ;;  %v8973_v20 = vpop.f32.mrb[83].mxu1 }
 0x1e8   : > { %v6874_v52 = vadd.f32 %v6873_v37, %v8889_v49  ;;  %v6883_v10 = vadd.f32 %v8700_v51, %v6038_v60  ;;  %v2430_v39 = vsel %vm297_vm0, %v2398_v33, %v2414_v1  ;;  %v2446_v17 = vsel %vm297_vm0, %v2414_v1, %v2398_v33  ;;  %v7337_v33 = vld [vmem:[%s10004_s2 + $0x178] sm:$0xff]  }
 0x1e9   : > { %10111 = vst [vmem:[#allocation12_spill] sm:$0xff] %v8969_v62  ;;  %3002 = vmatprep.mubr.bf16.mxu0 %v8969_v62  ;;  %v8980_v3 = vpack.c.bf16 %v2430_v39, %v2446_v17  ;;  %v2494_v47 = vsel %vm362_vm6, %v2462_v36, %v2478_v45  ;;  %v2510_v49 = vsel %vm362_vm6, %v2478_v45, %v2462_v36 }
 0x1ea   : > { %6740 = vmatpush3.bf16.msra.mxu1 %v7327_v6  ;;  %v2371_v51 = vmax.f32 %v6874_v52, 0.0  ;;  %v6884_v5 = vadd.f32 %v6883_v10, %v8896_v22  ;;  %v6039_v4 = vpop.f32.mrb[116].mxu0  ;;  %v8987_v37 = vpack.c.bf16 %v2510_v49, %v2494_v47 }
 0x1eb   : > { %10112 = vst [vmem:[#allocation8_spill] sm:$0xff] %v8980_v3  ;;  %6741 = vmatprep.subr.bf16.mxu1 %v7332_v9  ;;  %v6040_v1 = vpop.f32.mrb[117].mxu0 }
 0x1ec   : > { %v2372_v60 = vmax.f32 %v6884_v5, 0.0  ;;  %v6041_v39 = vadd.f32 %v6040_v1, %v6039_v4  ;;  %5368 = vmatmul.mubr.msk.bf16.gmra.mrb[176].mxu0 %vm7589_vm5, %v8980_v3  ;;  %6705 = vmatprep.mubr.msk.bf16.mxu1 %vm7577_vm4, %v8987_v37  ;;  %v6042_v22 = vpop.f32.mrb[118].mxu0  ;;  %v2399_v6 = vrot.slane %v2371_v51, 7  ;;  %v8998_v45 = vpop.f32.mrb[84].mxu1  ;;  %v7341_v5 = vld [vmem:[%s10004_s2 + $0x1c0] sm:$0xff]   ;;  %v2463_v4 = vrot.slane %v2371_v51, 1 }
 0x1ed   : > { %v6043_v36 = vpop.f32.mrb[119].mxu0  ;;  %v9001_v47 = vpop.f32.mrb[85].mxu1 }
 0x1ee   : > { %6742 = vmatpush3.bf16.msra.mxu1 %v7332_v9  ;;  %v2415_v52 = vrot.slane %v2372_v60, 7  ;;  %v2479_v10 = vrot.slane %v2372_v60, 1  ;;  %v6868_v17 = vadd.f32 %v8690_v53, %v6041_v39  ;;  %v6044_v49 = vadd.f32 %v6043_v36, %v6042_v22  ;;  %v9006_v1 = vpop.f32.mrb[86].mxu1 }
 0x1ef   : > { %6743 = vmatprep.subr.bf16.mxu1 %v7337_v33  ;;  %v9008_v3 = vpack.c.bf16 %v2372_v60, %v2371_v51  ;;  %v9012_v58 = vpop.f32.mrb[87].mxu1 }
 0x1f0   : > { %v6869_v62 = vadd.f32 %v6868_v17, %v8883_v41  ;;  %v6878_v9 = vadd.f32 %v8697_v2, %v6044_v49  ;;  %v2431_v53 = vsel %vm297_vm0, %v2399_v6, %v2415_v52  ;;  %v2447_v39 = vsel %vm297_vm0, %v2415_v52, %v2399_v6 }
 0x1f1   : > { %10113 = vst [vmem:[#allocation13_spill] sm:$0xff] %v9008_v3  ;;  %3010 = vmatprep.mubr.bf16.mxu0 %v9008_v3  ;;  %v9019_v22 = vpack.c.bf16 %v2431_v53, %v2447_v39  ;;  %v2495_v51 = vsel %vm362_vm6, %v2463_v4, %v2479_v10  ;;  %v2511_v41 = vsel %vm362_vm6, %v2479_v10, %v2463_v4 }
 0x1f2   : > { %6744 = vmatpush3.bf16.msra.mxu1 %v7337_v33  ;;  %v2373_v2 = vmax.f32 %v6869_v62, 0.0  ;;  %v6879_v60 = vadd.f32 %v6878_v9, %v8891_v25  ;;  %v6045_v36 = vpop.f32.mrb[120].mxu0  ;;  %v9026_v17 = vpack.c.bf16 %v2511_v41, %v2495_v51 }
 0x1f3   : > { %10114 = vst [vmem:[#allocation9_spill] sm:$0xff] %v9019_v22  ;;  %6401 = vmatprep.subr.bf16.mxu1 %v7341_v5  ;;  %v6046_v49 = vpop.f32.mrb[121].mxu0 }
 0x1f4   : > { %10115 = vst [vmem:[#allocation14_spill] sm:$0xff] %v9026_v17  ;;  %v2374_v6 = vmax.f32 %v6879_v60, 0.0  ;;  %v6047_v52 = vadd.f32 %v6046_v49, %v6045_v36  ;;  %5372 = vmatmul.mubr.msk.bf16.gmra.mrb[180].mxu0 %vm7589_vm5, %v9019_v22  ;;  %6706 = vmatmul.mubr.msk.bf16.gmra.mrb[104].mxu1 %vm7577_vm4, %v9026_v17  ;;  %v6048_v10 = vpop.f32.mrb[122].mxu0  ;;  %v2400_v33 = vrot.slane %v2373_v2, 7  ;;  %v9034_v62 = vpop.f32.mrb[88].mxu1  ;;  %v2464_v51 = vrot.slane %v2373_v2, 1 }
 0x1f5   : > { %v6049_v25 = vpop.f32.mrb[123].mxu0  ;;  %v9037_v53 = vpop.f32.mrb[89].mxu1 }
 0x1f6   : > { %v2416_v4 = vrot.slane %v2374_v6, 7  ;;  %v2480_v9 = vrot.slane %v2374_v6, 1  ;;  %v6893_v5 = vadd.f32 %v8714_v63, %v6047_v52  ;;  %v6050_v39 = vadd.f32 %v6049_v25, %v6048_v10  ;;  %v9039_v41 = vpop.f32.mrb[90].mxu1 }
 0x1f7   : > { %v9041_v60 = vpack.c.bf16 %v2374_v6, %v2373_v2  ;;  %v9045_v22 = vpop.f32.mrb[91].mxu1 }
 0x1f8   : > { %v6894_v36 = vadd.f32 %v6893_v5, %v8923_v55  ;;  %v6903_v49 = vadd.f32 %v8720_v38, %v6050_v39  ;;  %v2432_v3 = vsel %vm297_vm0, %v2400_v33, %v2416_v4  ;;  %v2448_v63 = vsel %vm297_vm0, %v2416_v4, %v2400_v33 }
 0x1f9   : > { %10116 = vst [vmem:[#allocation10_spill] sm:$0xff] %v9041_v60  ;;  %3018 = vmatprep.mubr.bf16.mxu0 %v9041_v60  ;;  %v9052_v52 = vpack.c.bf16 %v2432_v3, %v2448_v63  ;;  %v2496_v2 = vsel %vm362_vm6, %v2464_v51, %v2480_v9  ;;  %v2512_v55 = vsel %vm362_vm6, %v2480_v9, %v2464_v51 }
 0x1fa   : > { %v2375_v6 = vmax.f32 %v6894_v36, 0.0  ;;  %v6904_v38 = vadd.f32 %v6903_v49, %v8934_v30  ;;  %v6051_v10 = vpop.f32.mrb[124].mxu0  ;;  %v9059_v25 = vpack.c.bf16 %v2512_v55, %v2496_v2 }
 0x1fb   : > { %10117 = vst [vmem:[#allocation15_spill] sm:$0xff] %v9052_v52  ;;  %v6052_v5 = vpop.f32.mrb[125].mxu0 }
 0x1fc   : > { %10118 = vst [vmem:[#allocation11_spill] sm:$0xff] %v9059_v25  ;;  %v2376_v39 = vmax.f32 %v6904_v38, 0.0  ;;  %v6053_v17 = vadd.f32 %v6052_v5, %v6051_v10  ;;  %5376 = vmatmul.mubr.msk.bf16.gmra.mrb[184].mxu0 %vm7589_vm5, %v9052_v52  ;;  %6709 = vmatprep.mubr.msk.bf16.mxu1 %vm7577_vm4, %v9059_v25  ;;  %v6054_v3 = vpop.f32.mrb[126].mxu0  ;;  %v2401_v33 = vrot.slane %v2375_v6, 7  ;;  %v9067_v4 = vpop.f32.mrb[92].mxu1  ;;  %v2465_v2 = vrot.slane %v2375_v6, 1 }
 0x1fd   : > { %v6055_v9 = vpop.f32.mrb[127].mxu0  ;;  %v9070_v49 = vpop.f32.mrb[93].mxu1 }
 0x1fe   : > { %v2417_v30 = vrot.slane %v2376_v39, 7  ;;  %v2481_v51 = vrot.slane %v2376_v39, 1  ;;  %v6888_v36 = vadd.f32 %v8711_v35, %v6053_v17  ;;  %v6056_v63 = vadd.f32 %v6055_v9, %v6054_v3  ;;  %v9072_v55 = vpop.f32.mrb[94].mxu1 }
 0x1ff   : > { %v9074_v38 = vpack.c.bf16 %v2376_v39, %v2375_v6  ;;  %v9078_v52 = vpop.f32.mrb[95].mxu1 }
 0x200   : > { %v6889_v10 = vadd.f32 %v6888_v36, %v8920_v42  ;;  %v6898_v5 = vadd.f32 %v8717_v26, %v6056_v63  ;;  %v2433_v60 = vsel %vm297_vm0, %v2401_v33, %v2417_v30  ;;  %v2449_v35 = vsel %vm297_vm0, %v2417_v30, %v2401_v33 }
 0x201   : > { %3026 = vmatprep.mubr.bf16.mxu0 %v9074_v38  ;;  %v9085_v17 = vpack.c.bf16 %v2433_v60, %v2449_v35  ;;  %v2497_v6 = vsel %vm362_vm6, %v2465_v2, %v2481_v51  ;;  %v2513_v42 = vsel %vm362_vm6, %v2481_v51, %v2465_v2 }
 0x202   : > { %v2377_v39 = vmax.f32 %v6889_v10, 0.0  ;;  %v6899_v26 = vadd.f32 %v6898_v5, %v8928_v29  ;;  %v6057_v3 = vpop.f32.mrb[128].mxu0  ;;  %v9092_v9 = vpack.c.bf16 %v2513_v42, %v2497_v6 }
 0x203   : > { %v6058_v36 = vpop.f32.mrb[129].mxu0 }
 0x204   : > { %v2378_v63 = vmax.f32 %v6899_v26, 0.0  ;;  %v6059_v25 = vadd.f32 %v6058_v36, %v6057_v3  ;;  %5380 = vmatmul.mubr.msk.bf16.gmra.mrb[188].mxu0 %vm7589_vm5, %v9085_v17  ;;  %6710 = vmatmul.mubr.msk.bf16.gmra.mrb[108].mxu1 %vm7577_vm4, %v9092_v9  ;;  %v6060_v60 = vpop.f32.mrb[130].mxu0  ;;  %v2402_v33 = vrot.slane %v2377_v39, 7  ;;  %v2466_v5 = vrot.slane %v2377_v39, 1 }
 0x205   : > { %v6061_v30 = vpop.f32.mrb[131].mxu0 }
 0x206   : > { %v2418_v51 = vrot.slane %v2378_v63, 7  ;;  %v2482_v2 = vrot.slane %v2378_v63, 1  ;;  %v6913_v29 = vadd.f32 %v8734_v48, %v6059_v25  ;;  %v6062_v10 = vadd.f32 %v6061_v30, %v6060_v60 }
 0x207   : > { %v9101_v35 = vpack.c.bf16 %v2378_v63, %v2377_v39 }
 0x208   : > { %v6914_v6 = vadd.f32 %v6913_v29, %v8962_v54  ;;  %v6923_v42 = vadd.f32 %v8740_v28, %v6062_v10  ;;  %v2434_v26 = vsel %vm297_vm0, %v2402_v33, %v2418_v51  ;;  %v2450_v3 = vsel %vm297_vm0, %v2418_v51, %v2402_v33 }
 0x209   : > { %3034 = vmatprep.mubr.bf16.mxu0 %v9101_v35  ;;  %v9110_v36 = vpack.c.bf16 %v2434_v26, %v2450_v3  ;;  %v2498_v48 = vsel %vm362_vm6, %v2466_v5, %v2482_v2  ;;  %v2514_v25 = vsel %vm362_vm6, %v2482_v2, %v2466_v5 }
 0x20a   : > { %v2379_v39 = vmax.f32 %v6914_v6, 0.0  ;;  %v6924_v54 = vadd.f32 %v6923_v42, %v8973_v20  ;;  %v6063_v28 = vpop.f32.mrb[132].mxu0  ;;  %v9117_v63 = vpack.c.bf16 %v2514_v25, %v2498_v48 }
 0x20b   : > { %v6064_v60 = vpop.f32.mrb[133].mxu0 }
 0x20c   : > { %v2380_v30 = vmax.f32 %v6924_v54, 0.0  ;;  %v6065_v29 = vadd.f32 %v6064_v60, %v6063_v28  ;;  %5384 = vmatmul.mubr.msk.bf16.gmra.mrb[192].mxu0 %vm7589_vm5, %v9110_v36  ;;  %6713 = vmatprep.mubr.msk.bf16.mxu1 %vm7577_vm4, %v9117_v63  ;;  %v6066_v33 = vpop.f32.mrb[134].mxu0  ;;  %v2403_v51 = vrot.slane %v2379_v39, 7  ;;  %v2467_v42 = vrot.slane %v2379_v39, 1 }
 0x20d   : > { %v6067_v2 = vpop.f32.mrb[135].mxu0 }
 0x20e   : > { %v2419_v10 = vrot.slane %v2380_v30, 7  ;;  %v2483_v5 = vrot.slane %v2380_v30, 1  ;;  %v6908_v20 = vadd.f32 %v8731_v12, %v6065_v29  ;;  %v6068_v6 = vadd.f32 %v6067_v2, %v6066_v33 }
 0x20f   : > { %v9126_v26 = vpack.c.bf16 %v2380_v30, %v2379_v39 }
 0x210   : > { %v6909_v3 = vadd.f32 %v6908_v20, %v8959_v11  ;;  %v6918_v48 = vadd.f32 %v8737_v14, %v6068_v6  ;;  %v2435_v25 = vsel %vm297_vm0, %v2403_v51, %v2419_v10  ;;  %v2451_v54 = vsel %vm297_vm0, %v2419_v10, %v2403_v51 }
 0x211   : > { %3042 = vmatprep.mubr.bf16.mxu0 %v9126_v26  ;;  %v9135_v28 = vpack.c.bf16 %v2435_v25, %v2451_v54  ;;  %v2499_v12 = vsel %vm362_vm6, %v2467_v42, %v2483_v5  ;;  %v2515_v39 = vsel %vm362_vm6, %v2483_v5, %v2467_v42 }
 0x212   : > { %v2381_v60 = vmax.f32 %v6909_v3, 0.0  ;;  %v6919_v11 = vadd.f32 %v6918_v48, %v8967_v23  ;;  %v6069_v14 = vpop.f32.mrb[136].mxu0  ;;  %v9142_v30 = vpack.c.bf16 %v2515_v39, %v2499_v12 }
 0x213   : > { %v6070_v29 = vpop.f32.mrb[137].mxu0 }
 0x214   : > { %v2382_v33 = vmax.f32 %v6919_v11, 0.0  ;;  %v6071_v2 = vadd.f32 %v6070_v29, %v6069_v14  ;;  %5388 = vmatmul.mubr.msk.bf16.gmra.mrb[196].mxu0 %vm7589_vm5, %v9135_v28  ;;  %6714 = vmatmul.mubr.msk.bf16.gmra.mrb[112].mxu1 %vm7577_vm4, %v9142_v30  ;;  %v6072_v51 = vpop.f32.mrb[138].mxu0  ;;  %v2404_v10 = vrot.slane %v2381_v60, 7  ;;  %v2468_v3 = vrot.slane %v2381_v60, 1 }
 0x215   : > { %v6073_v5 = vpop.f32.mrb[139].mxu0 }
 0x216   : > { %v2420_v20 = vrot.slane %v2382_v33, 7  ;;  %v2484_v6 = vrot.slane %v2382_v33, 1  ;;  %v6933_v23 = vadd.f32 %v8760_v44, %v6071_v2  ;;  %v6074_v42 = vadd.f32 %v6073_v5, %v6072_v51 }
 0x217   : > { %v9151_v48 = vpack.c.bf16 %v2382_v33, %v2381_v60 }
 0x218   : > { %v6934_v25 = vadd.f32 %v6933_v23, %v9001_v47  ;;  %v6943_v54 = vadd.f32 %v8766_v19, %v6074_v42  ;;  %v2436_v12 = vsel %vm297_vm0, %v2404_v10, %v2420_v20  ;;  %v2452_v39 = vsel %vm297_vm0, %v2420_v20, %v2404_v10 }
 0x219   : > { %3050 = vmatprep.mubr.bf16.mxu0 %v9151_v48  ;;  %v9160_v11 = vpack.c.bf16 %v2436_v12, %v2452_v39  ;;  %v2500_v44 = vsel %vm362_vm6, %v2468_v3, %v2484_v6  ;;  %v2516_v60 = vsel %vm362_vm6, %v2484_v6, %v2468_v3 }
 0x21a   : > { %v2383_v14 = vmax.f32 %v6934_v25, 0.0  ;;  %v6944_v47 = vadd.f32 %v6943_v54, %v9012_v58  ;;  %v6075_v19 = vpop.f32.mrb[140].mxu0  ;;  %v9167_v29 = vpack.c.bf16 %v2516_v60, %v2500_v44 }
 0x21b   : > { %v6076_v33 = vpop.f32.mrb[141].mxu0 }
 0x21c   : > { %v2384_v2 = vmax.f32 %v6944_v47, 0.0  ;;  %v6077_v51 = vadd.f32 %v6076_v33, %v6075_v19  ;;  %5392 = vmatmul.mubr.msk.bf16.gmra.mrb[200].mxu0 %vm7589_vm5, %v9160_v11  ;;  %6717 = vmatprep.mubr.msk.bf16.mxu1 %vm7577_vm4, %v9167_v29  ;;  %v6078_v10 = vpop.f32.mrb[142].mxu0  ;;  %v2405_v5 = vrot.slane %v2383_v14, 7  ;;  %v2469_v3 = vrot.slane %v2383_v14, 1 }
 0x21d   : > { %v6079_v20 = vpop.f32.mrb[143].mxu0 }
 0x21e   : > { %v2421_v6 = vrot.slane %v2384_v2, 7  ;;  %v2485_v23 = vrot.slane %v2384_v2, 1  ;;  %v6928_v58 = vadd.f32 %v8754_v31, %v6077_v51  ;;  %v6080_v42 = vadd.f32 %v6079_v20, %v6078_v10 }
 0x21f   : > { %v9176_v25 = vpack.c.bf16 %v2384_v2, %v2383_v14 }
 0x220   : > { %v6929_v54 = vadd.f32 %v6928_v58, %v8998_v45  ;;  %v6938_v12 = vadd.f32 %v8763_v50, %v6080_v42  ;;  %v2437_v39 = vsel %vm297_vm0, %v2405_v5, %v2421_v6  ;;  %v2453_v44 = vsel %vm297_vm0, %v2421_v6, %v2405_v5 }
 0x221   : > { %3058 = vmatprep.mubr.bf16.mxu0 %v9176_v25  ;;  %v9185_v60 = vpack.c.bf16 %v2437_v39, %v2453_v44  ;;  %v2501_v31 = vsel %vm362_vm6, %v2469_v3, %v2485_v23  ;;  %v2517_v14 = vsel %vm362_vm6, %v2485_v23, %v2469_v3 }
 0x222   : > { %v2385_v47 = vmax.f32 %v6929_v54, 0.0  ;;  %v6939_v45 = vadd.f32 %v6938_v12, %v9006_v1  ;;  %v6081_v50 = vpop.f32.mrb[144].mxu0  ;;  %v9192_v19 = vpack.c.bf16 %v2517_v14, %v2501_v31 }
 0x223   : > { %v6082_v33 = vpop.f32.mrb[145].mxu0 }
 0x224   : > { %v2386_v2 = vmax.f32 %v6939_v45, 0.0  ;;  %v6083_v51 = vadd.f32 %v6082_v33, %v6081_v50  ;;  %5396 = vmatmul.mubr.msk.bf16.gmra.mrb[204].mxu0 %vm7589_vm5, %v9185_v60  ;;  %6718 = vmatmul.mubr.msk.bf16.gmra.mrb[116].mxu1 %vm7577_vm4, %v9192_v19  ;;  %v6084_v10 = vpop.f32.mrb[146].mxu0  ;;  %v2406_v5 = vrot.slane %v2385_v47, 7  ;;  %v2470_v42 = vrot.slane %v2385_v47, 1 }
 0x225   : > { %v6085_v20 = vpop.f32.mrb[147].mxu0 }
 0x226   : > { %v2422_v6 = vrot.slane %v2386_v2, 7  ;;  %v2486_v23 = vrot.slane %v2386_v2, 1  ;;  %v6953_v1 = vadd.f32 %v8792_v8, %v6083_v51  ;;  %v6086_v58 = vadd.f32 %v6085_v20, %v6084_v10 }
 0x227   : > { %v9201_v3 = vpack.c.bf16 %v2386_v2, %v2385_v47 }
 0x228   : > { %v6954_v54 = vadd.f32 %v6953_v1, %v9037_v53  ;;  %v6963_v12 = vadd.f32 %v8798_v24, %v6086_v58  ;;  %v2438_v39 = vsel %vm297_vm0, %v2406_v5, %v2422_v6  ;;  %v2454_v44 = vsel %vm297_vm0, %v2422_v6, %v2406_v5 }
 0x229   : > { %3066 = vmatprep.mubr.bf16.mxu0 %v9201_v3  ;;  %v9210_v31 = vpack.c.bf16 %v2438_v39, %v2454_v44  ;;  %v2502_v8 = vsel %vm362_vm6, %v2470_v42, %v2486_v23  ;;  %v2518_v14 = vsel %vm362_vm6, %v2486_v23, %v2470_v42 }
 0x22a   : > { %v2387_v47 = vmax.f32 %v6954_v54, 0.0  ;;  %v6964_v53 = vadd.f32 %v6963_v12, %v9045_v22  ;;  %v6087_v24 = vpop.f32.mrb[148].mxu0  ;;  %v9217_v45 = vpack.c.bf16 %v2518_v14, %v2502_v8 }
 0x22b   : > { %v6088_v50 = vpop.f32.mrb[149].mxu0 }
 0x22c   : > { %v2388_v33 = vmax.f32 %v6964_v53, 0.0  ;;  %v6089_v2 = vadd.f32 %v6088_v50, %v6087_v24  ;;  %5400 = vmatmul.mubr.msk.bf16.gmra.mrb[208].mxu0 %vm7589_vm5, %v9210_v31  ;;  %6721 = vmatprep.mubr.msk.bf16.mxu1 %vm7577_vm4, %v9217_v45  ;;  %v6090_v51 = vpop.f32.mrb[150].mxu0  ;;  %v2407_v10 = vrot.slane %v2387_v47, 7  ;;  %v2471_v1 = vrot.slane %v2387_v47, 1 }
 0x22d   : > { %v6091_v5 = vpop.f32.mrb[151].mxu0 }
 0x22e   : > { %v2423_v20 = vrot.slane %v2388_v33, 7  ;;  %v2487_v6 = vrot.slane %v2388_v33, 1  ;;  %v6948_v22 = vadd.f32 %v8786_v16, %v6089_v2  ;;  %v6092_v23 = vadd.f32 %v6091_v5, %v6090_v51 }
 0x22f   : > { %v9226_v58 = vpack.c.bf16 %v2388_v33, %v2387_v47 }
 0x230   : > { %v6949_v42 = vadd.f32 %v6948_v22, %v9034_v62  ;;  %v6958_v54 = vadd.f32 %v8795_v59, %v6092_v23  ;;  %v2439_v12 = vsel %vm297_vm0, %v2407_v10, %v2423_v20  ;;  %v2455_v39 = vsel %vm297_vm0, %v2423_v20, %v2407_v10 }
 0x231   : > { %3074 = vmatprep.mubr.bf16.mxu0 %v9226_v58  ;;  %v9235_v44 = vpack.c.bf16 %v2439_v12, %v2455_v39  ;;  %v2503_v16 = vsel %vm362_vm6, %v2471_v1, %v2487_v6  ;;  %v2519_v8 = vsel %vm362_vm6, %v2487_v6, %v2471_v1 }
 0x232   : > { %v2389_v14 = vmax.f32 %v6949_v42, 0.0  ;;  %v6959_v62 = vadd.f32 %v6958_v54, %v9039_v41  ;;  %v6093_v59 = vpop.f32.mrb[152].mxu0  ;;  %v9242_v47 = vpack.c.bf16 %v2519_v8, %v2503_v16 }
 0x233   : > { %v6094_v53 = vpop.f32.mrb[153].mxu0 }
 0x234   : > { %v2390_v24 = vmax.f32 %v6959_v62, 0.0  ;;  %v6095_v50 = vadd.f32 %v6094_v53, %v6093_v59  ;;  %5404 = vmatmul.mubr.msk.bf16.gmra.mrb[212].mxu0 %vm7589_vm5, %v9235_v44  ;;  %6722 = vmatmul.mubr.msk.bf16.gmra.mrb[120].mxu1 %vm7577_vm4, %v9242_v47  ;;  %v6096_v33 = vpop.f32.mrb[154].mxu0  ;;  %v2408_v2 = vrot.slane %v2389_v14, 7  ;;  %v2472_v6 = vrot.slane %v2389_v14, 1 }
 0x235   : > { %v6097_v51 = vpop.f32.mrb[155].mxu0 }
 0x236   : > { %v2424_v10 = vrot.slane %v2390_v24, 7  ;;  %v2488_v5 = vrot.slane %v2390_v24, 1  ;;  %v6973_v41 = vadd.f32 %v8824_v61, %v6095_v50  ;;  %v6098_v20 = vadd.f32 %v6097_v51, %v6096_v33 }
 0x237   : > { %v9251_v22 = vpack.c.bf16 %v2390_v24, %v2389_v14 }
 0x238   : > { %v6974_v23 = vadd.f32 %v6973_v41, %v9070_v49  ;;  %v6983_v1 = vadd.f32 %v8830_v7, %v6098_v20  ;;  %v2440_v42 = vsel %vm297_vm0, %v2408_v2, %v2424_v10  ;;  %v2456_v54 = vsel %vm297_vm0, %v2424_v10, %v2408_v2 }
 0x239   : > { %3082 = vmatprep.mubr.bf16.mxu0 %v9251_v22  ;;  %v9260_v12 = vpack.c.bf16 %v2440_v42, %v2456_v54  ;;  %v2504_v61 = vsel %vm362_vm6, %v2472_v6, %v2488_v5  ;;  %v2520_v39 = vsel %vm362_vm6, %v2488_v5, %v2472_v6 }
 0x23a   : > { %v2391_v16 = vmax.f32 %v6974_v23, 0.0  ;;  %v6984_v49 = vadd.f32 %v6983_v1, %v9078_v52  ;;  %v6099_v7 = vpop.f32.mrb[156].mxu0  ;;  %v9267_v8 = vpack.c.bf16 %v2520_v39, %v2504_v61 }
 0x23b   : > { %v6100_v14 = vpop.f32.mrb[157].mxu0 }
 0x23c   : > { %v2392_v62 = vmax.f32 %v6984_v49, 0.0  ;;  %v6101_v59 = vadd.f32 %v6100_v14, %v6099_v7  ;;  %5408 = vmatmul.mubr.msk.bf16.gmra.mrb[216].mxu0 %vm7589_vm5, %v9260_v12  ;;  %6725 = vmatprep.mubr.msk.bf16.mxu1 %vm7577_vm4, %v9267_v8  ;;  %v6102_v53 = vpop.f32.mrb[158].mxu0  ;;  %v2409_v24 = vrot.slane %v2391_v16, 7  ;;  %v2473_v10 = vrot.slane %v2391_v16, 1 }
 0x23d   : > { %v6103_v50 = vpop.f32.mrb[159].mxu0 }
 0x23e   : > { %v2425_v33 = vrot.slane %v2392_v62, 7  ;;  %v2489_v2 = vrot.slane %v2392_v62, 1  ;;  %v6968_v52 = vadd.f32 %v8818_v56, %v6101_v59  ;;  %v6104_v51 = vadd.f32 %v6103_v50, %v6102_v53 }
 0x23f   : > { %v9276_v5 = vpack.c.bf16 %v2392_v62, %v2391_v16 }
 0x240   : > { %v6969_v41 = vadd.f32 %v6968_v52, %v9067_v4  ;;  %v6978_v20 = vadd.f32 %v8827_v46, %v6104_v51  ;;  %v2441_v6 = vsel %vm297_vm0, %v2409_v24, %v2425_v33  ;;  %v2457_v23 = vsel %vm297_vm0, %v2425_v33, %v2409_v24 }
 0x241   : > { %3090 = vmatprep.mubr.bf16.mxu0 %v9276_v5  ;;  %v9285_v1 = vpack.c.bf16 %v2441_v6, %v2457_v23  ;;  %v2505_v56 = vsel %vm362_vm6, %v2473_v10, %v2489_v2  ;;  %v2521_v42 = vsel %vm362_vm6, %v2489_v2, %v2473_v10  ;;  %v7342_v10 = vld [vmem:[%s10004_s2 + $0x180] sm:$0xff]   ;;  %v7347_v6 = vld [vmem:[%s10004_s2 + $0x1d8] sm:$0xff]   ;;  %v10119_v23 = vld [vmem:[#allocation14_spill] sm:$0xff] }
 0x242   : > { %v2393_v54 = vmax.f32 %v6969_v41, 0.0  ;;  %v6979_v4 = vadd.f32 %v6978_v20, %v9072_v55  ;;  %v9292_v46 = vpack.c.bf16 %v2521_v42, %v2505_v56  ;;  %v6145_v61 = vpop.f32.mrb[160].mxu0  ;;  %v7343_v41 = vld [vmem:[%s10004_s2 + $0x1c8] sm:$0xff]   ;;  %v7346_v20 = vld [vmem:[%s10004_s2 + $0x190] sm:$0xff]   ;;  %v7348_v56 = vld [vmem:[%s10004_s2 + $0x198] sm:$0xff]  }
 0x243   : > { %v6146_v39 = vpop.f32.mrb[161].mxu0  ;;  %v7349_v42 = vld [vmem:[%s10004_s2 + $0x1e0] sm:$0xff]  }
 0x244   : > { %v2394_v16 = vmax.f32 %v6979_v4, 0.0  ;;  %5412 = vmatmul.mubr.msk.bf16.gmra.mrb[220].mxu0 %vm7589_vm5, %v9285_v1  ;;  %6726 = vmatmul.mubr.msk.bf16.gmra.mrb[124].mxu1 %vm7577_vm4, %v9292_v46  ;;  %v9300_v49 = vadd.f32 %v6146_v39, %v6145_v61  ;;  %v6148_v7 = vpop.f32.mrb[162].mxu0  ;;  %v2410_v14 = vrot.slane %v2393_v54, 7  ;;  %v2474_v62 = vrot.slane %v2393_v54, 1  ;;  %v7351_v4 = vld [vmem:[%s10004_s2 + $0x1e8] sm:$0xff]   ;;  %v10120_v61 = vld [vmem:[#allocation7_spill] sm:$0xff] }
 0x245   : > { %3565 = vmatprep.mubr.bf16.mxu0 %v8857_v21  ;;  %6745 = vmatprep.mubr.msk.bf16.mxu1 %vm7577_vm4, %v8864_v13  ;;  %v6149_v55 = vpop.f32.mrb[163].mxu0  ;;  %v10121_v39 = vld [vmem:[#allocation11_spill] sm:$0xff] }
 0x246   : > { %v2426_v59 = vrot.slane %v2394_v16, 7  ;;  %v2490_v53 = vrot.slane %v2394_v16, 1  ;;  %v9306_v24 = vadd.f32 %v6149_v55, %v6148_v7  ;;  %v9308_v50 = vpack.c.bf16 %v2394_v16, %v2393_v54  ;;  %v7350_v54 = vld [vmem:[%s10004_s2 + $0x1a0] sm:$0xff]   ;;  %v7352_v7 = vld [vmem:[%s10004_s2 + $0x1a8] sm:$0xff]   ;;  %v7354_v55 = vld [vmem:[%s10004_s2 + $0x1b0] sm:$0xff]  }
 0x247   : > { %v10122_v16 = vld [vmem:[#allocation12_spill] sm:$0xff] }
 0x248   : > { %v2442_v33 = vsel %vm297_vm0, %v2410_v14, %v2426_v59  ;;  %v2458_v2 = vsel %vm297_vm0, %v2426_v59, %v2410_v14  ;;  %v2506_v21 = vsel %vm362_vm6, %v2474_v62, %v2490_v53  ;;  %v2522_v13 = vsel %vm362_vm6, %v2490_v53, %v2474_v62  ;;  %v7353_v14 = vld [vmem:[%s10004_s2 + $0x1f0] sm:$0xff]   ;;  %v7355_v62 = vld [vmem:[%s10004_s2 + $0x1f8] sm:$0xff]   ;;  %v10123_v59 = vld [vmem:[#allocation8_spill] sm:$0xff] }
 0x249   : > { %v9318_v52 = vpack.c.bf16 %v2442_v33, %v2458_v2  ;;  %v9320_v51 = vpack.c.bf16 %v2522_v13, %v2506_v21  ;;  %v10124_v53 = vld [vmem:[#allocation13_spill] sm:$0xff]  ;;  %v7356_v33 = vld [vmem:[%s10004_s2 + $0x1b8] sm:$0xff]   ;;  %v7357_v2 = vld [vmem:[%s10004_s2 + $0x200] sm:$0xff]  }
 0x24a   : > { %v10125_v21 = vld [vmem:[#allocation9_spill] sm:$0xff]  ;;  %v10126_v13 = vld [vmem:[#allocation10_spill] sm:$0xff] }
 0x24c   : > { %5476 = vmatmul.mubr.msk.bf16.vlgmr.msra.gmra.mrb[224].mxu0 %vm7589_vm5, %v8874_v32  ;;  %6746 = vmatmul.mubr.msk.bf16.vlgmr.msra.gmra.mrb[96].mxu1 %vm7577_vm4, %v8909_v40  ;;  %v7345_v32 = vld [vmem:[%s10004_s2 + $0x1d0] sm:$0xff]  }
 0x24d   : > { %3573 = vmatprep.mubr.bf16.mxu0 %v8893_v27  ;;  %6749 = vmatprep.mubr.msk.bf16.mxu1 %vm7577_vm4, %v8948_v0 }
 0x24e   : > { %6402 = vmatpush3.bf16.msra.mxu1 %v7342_v10  ;;  %v10127_v10 = vld [vmem:[#allocation15_spill] sm:$0xff] }
 0x24f   : > { %6403 = vmatprep.subr.bf16.mxu1 %v7343_v41  ;;  %v7358_v41 = vld [vmem:[%s10004_s2 + $0x208] sm:$0xff]  }
 0x252   : > { %6404 = vmatpush3.bf16.msra.mxu1 %v7344_v15  ;;  %v7360_v15 = vld [vmem:[%s10004_s2 + $0x218] sm:$0xff]  }
 0x253   : > { %6405 = vmatprep.subr.bf16.mxu1 %v7345_v32  ;;  %v7363_v32 = vld [vmem:[%s10004_s2 + $0x230] sm:$0xff]  }
 0x254   : > { %5480 = vmatmul.mubr.msk.bf16.gmra.mrb[228].mxu0 %vm7589_vm5, %v8903_v57  ;;  %6750 = vmatmul.mubr.msk.bf16.gmra.mrb[100].mxu1 %vm7577_vm4, %v8987_v37 }
 0x255   : > { %3581 = vmatprep.mubr.bf16.mxu0 %v8930_v43  ;;  %6753 = vmatprep.mubr.msk.bf16.mxu1 %vm7577_vm4, %v10119_v23 }
 0x256   : > { %6406 = vmatpush3.bf16.msra.mxu1 %v7346_v20  ;;  %v7364_v20 = vld [vmem:[%s10004_s2 + $0x238] sm:$0xff]  }
 0x257   : > { %6407 = vmatprep.subr.bf16.mxu1 %v7347_v6 }
 0x25a   : > { %6408 = vmatpush3.bf16.msra.mxu1 %v7348_v56 }
 0x25b   : > { %6409 = vmatprep.subr.bf16.mxu1 %v7349_v42 }
 0x25c   : > { %5484 = vmatmul.mubr.msk.bf16.gmra.mrb[232].mxu0 %vm7589_vm5, %v10120_v61  ;;  %6754 = vmatmul.mubr.msk.bf16.gmra.mrb[104].mxu1 %vm7577_vm4, %v10121_v39 }
 0x25d   : > { %3589 = vmatprep.mubr.bf16.mxu0 %v10122_v16  ;;  %6757 = vmatprep.mubr.msk.bf16.mxu1 %vm7577_vm4, %v9092_v9 }
 0x25e   : > { %6410 = vmatpush3.bf16.msra.mxu1 %v7350_v54 }
 0x25f   : > { %6411 = vmatprep.subr.bf16.mxu1 %v7351_v4 }
 0x262   : > { %6412 = vmatpush3.bf16.msra.mxu1 %v7352_v7 }
 0x263   : > { %6413 = vmatprep.subr.bf16.mxu1 %v7353_v14 }
 0x264   : > { %5488 = vmatmul.mubr.msk.bf16.gmra.mrb[236].mxu0 %vm7589_vm5, %v10123_v59  ;;  %6758 = vmatmul.mubr.msk.bf16.gmra.mrb[108].mxu1 %vm7577_vm4, %v9117_v63 }
 0x265   : > { %3597 = vmatprep.mubr.bf16.mxu0 %v10124_v53  ;;  %6761 = vmatprep.mubr.msk.bf16.mxu1 %vm7577_vm4, %v9142_v30 }
 0x266   : > { %6414 = vmatpush3.bf16.msra.mxu1 %v7354_v55 }
 0x267   : > { %6415 = vmatprep.subr.bf16.mxu1 %v7355_v62 }
 0x26a   : > { %6416 = vmatpush3.bf16.msra.mxu1 %v7356_v33 }
 0x26b   : > { %6777 = vmatprep.subr.bf16.mxu1 %v7357_v2 }
 0x26c   : > { %5492 = vmatmul.mubr.msk.bf16.gmra.mrb[240].mxu0 %vm7589_vm5, %v10125_v21  ;;  %6762 = vmatmul.mubr.msk.bf16.gmra.mrb[112].mxu1 %vm7577_vm4, %v9167_v29 }
 0x26d   : > { %3605 = vmatprep.mubr.bf16.mxu0 %v10126_v13  ;;  %6765 = vmatprep.mubr.msk.bf16.mxu1 %vm7577_vm4, %v9192_v19 }
 0x274   : > { %5496 = vmatmul.mubr.msk.bf16.gmra.mrb[244].mxu0 %vm7589_vm5, %v10127_v10  ;;  %6766 = vmatmul.mubr.msk.bf16.gmra.mrb[116].mxu1 %vm7577_vm4, %v9217_v45 }
 0x275   : > { %3613 = vmatprep.mubr.bf16.mxu0 %v9074_v38  ;;  %6769 = vmatprep.mubr.msk.bf16.mxu1 %vm7577_vm4, %v9242_v47 }
 0x27c   : > { %5500 = vmatmul.mubr.msk.bf16.gmra.mrb[248].mxu0 %vm7589_vm5, %v9085_v17  ;;  %6770 = vmatmul.mubr.msk.bf16.gmra.mrb[120].mxu1 %vm7577_vm4, %v9267_v8 }
 0x27d   : > { %3621 = vmatprep.mubr.bf16.mxu0 %v9101_v35  ;;  %6773 = vmatprep.mubr.msk.bf16.mxu1 %vm7577_vm4, %v9292_v46 }
 0x284   : > { %5504 = vmatmul.mubr.msk.bf16.gmra.mrb[252].mxu0 %vm7589_vm5, %v9110_v36  ;;  %6774 = vmatmul.mubr.msk.bf16.gmra.mrb[124].mxu1 %vm7577_vm4, %v9320_v51 }
 0x285   : > { %3629 = vmatprep.mubr.bf16.mxu0 %v9126_v26  ;;  %4161 = vmatprep.mubr.bf16.mxu1 %v8893_v27  ;;  %v7359_v27 = vld [vmem:[%s10004_s2 + $0x210] sm:$0xff]  }
 0x28c   : > { %5508 = vmatmul.mubr.msk.bf16.gmra.mrb[0].mxu0 %vm7589_vm5, %v9135_v28  ;;  %5604 = vmatmul.mubr.msk.bf16.vlgmr.msra.gmra.mrb[128].mxu1 %vm7589_vm5, %v8903_v57  ;;  %v7361_v57 = vld [vmem:[%s10004_s2 + $0x220] sm:$0xff]  }
 0x28d   : > { %3637 = vmatprep.mubr.bf16.mxu0 %v9151_v48  ;;  %4169 = vmatprep.mubr.bf16.mxu1 %v8930_v43  ;;  %v7362_v43 = vld [vmem:[%s10004_s2 + $0x228] sm:$0xff]  }
 0x28e   : > { %6778 = vmatpush3.bf16.msra.mxu1 %v7357_v2 }
 0x28f   : > { %6779 = vmatprep.subr.bf16.mxu1 %v7358_v41 }
 0x292   : > { %6780 = vmatpush3.bf16.msra.mxu1 %v7358_v41 }
 0x293   : > { %6781 = vmatprep.subr.bf16.mxu1 %v7359_v27 }
 0x294   : > { %5512 = vmatmul.mubr.msk.bf16.gmra.mrb[4].mxu0 %vm7589_vm5, %v9160_v11  ;;  %5608 = vmatmul.mubr.msk.bf16.gmra.mrb[132].mxu1 %vm7589_vm5, %v10120_v61 }
 0x295   : > { %3645 = vmatprep.mubr.bf16.mxu0 %v9176_v25  ;;  %4177 = vmatprep.mubr.bf16.mxu1 %v10122_v16 }
 0x296   : > { %6782 = vmatpush3.bf16.msra.mxu1 %v7359_v27 }
 0x297   : > { %6783 = vmatprep.subr.bf16.mxu1 %v7360_v15 }
 0x29a   : > { %6784 = vmatpush3.bf16.msra.mxu1 %v7360_v15 }
 0x29b   : > { %6785 = vmatprep.subr.bf16.mxu1 %v7361_v57 }
 0x29c   : > { %5516 = vmatmul.mubr.msk.bf16.gmra.mrb[8].mxu0 %vm7589_vm5, %v9185_v60  ;;  %5612 = vmatmul.mubr.msk.bf16.gmra.mrb[136].mxu1 %vm7589_vm5, %v10123_v59 }
 0x29d   : > { %3653 = vmatprep.mubr.bf16.mxu0 %v9201_v3  ;;  %4185 = vmatprep.mubr.bf16.mxu1 %v10124_v53 }
 0x29e   : > { %6786 = vmatpush3.bf16.msra.mxu1 %v7361_v57 }
 0x29f   : > { %6787 = vmatprep.subr.bf16.mxu1 %v7362_v43 }
 0x2a2   : > { %6788 = vmatpush3.bf16.msra.mxu1 %v7362_v43 }
 0x2a3   : > { %6789 = vmatprep.subr.bf16.mxu1 %v7363_v32 }
 0x2a4   : > { %5520 = vmatmul.mubr.msk.bf16.gmra.mrb[12].mxu0 %vm7589_vm5, %v9210_v31  ;;  %5616 = vmatmul.mubr.msk.bf16.gmra.mrb[140].mxu1 %vm7589_vm5, %v10125_v21 }
 0x2a5   : > { %3661 = vmatprep.mubr.bf16.mxu0 %v9226_v58  ;;  %4193 = vmatprep.mubr.bf16.mxu1 %v10126_v13 }
 0x2a6   : > { %6790 = vmatpush3.bf16.msra.mxu1 %v7363_v32 }
 0x2a7   : > { %v6151_v6 = vpop.f32.mrb[164].mxu0  ;;  %6791 = vmatprep.subr.bf16.mxu1 %v7364_v20 }
 0x2a8   : > { %v6152_v56 = vpop.f32.mrb[165].mxu0 }
 0x2a9   : > { %v9501_v42 = vadd.f32 %v6152_v56, %v6151_v6  ;;  %v6154_v54 = vpop.f32.mrb[166].mxu0 }
 0x2aa   : > { %v6155_v4 = vpop.f32.mrb[167].mxu0  ;;  %6792 = vmatpush3.bf16.msra.mxu1 %v7364_v20 }
 0x2ab   : > { %v9503_v61 = vadd.f32 %v6155_v4, %v6154_v54 }
 0x2ac   : > { %5524 = vmatmul.mubr.msk.bf16.gmra.mrb[16].mxu0 %vm7589_vm5, %v9235_v44  ;;  %5620 = vmatmul.mubr.msk.bf16.gmra.mrb[144].mxu1 %vm7589_vm5, %v10127_v10 }
 0x2ad   : > { %3669 = vmatprep.mubr.bf16.mxu0 %v9251_v22  ;;  %4201 = vmatprep.mubr.bf16.mxu1 %v9074_v38 }
 0x2af   : > { %v6157_v16 = vpop.f32.mrb[168].mxu0 }
 0x2b0   : > { %v6158_v7 = vpop.f32.mrb[169].mxu0 }
 0x2b1   : > { %v9513_v14 = vadd.f32 %v6158_v7, %v6157_v16  ;;  %v6160_v55 = vpop.f32.mrb[170].mxu0 }
 0x2b2   : > { %v6161_v62 = vpop.f32.mrb[171].mxu0 }
 0x2b3   : > { %v9515_v59 = vadd.f32 %v6161_v62, %v6160_v55 }
 0x2b4   : > { %5528 = vmatmul.mubr.msk.bf16.gmra.mrb[20].mxu0 %vm7589_vm5, %v9260_v12  ;;  %5624 = vmatmul.mubr.msk.bf16.gmra.mrb[148].mxu1 %vm7589_vm5, %v9085_v17 }
 0x2b5   : > { %3677 = vmatprep.mubr.bf16.mxu0 %v9276_v5  ;;  %4209 = vmatprep.mubr.bf16.mxu1 %v9101_v35 }
 0x2b7   : > { %v6163_v38 = vpop.f32.mrb[172].mxu0 }
 0x2b8   : > { %v6164_v53 = vpop.f32.mrb[173].mxu0 }
 0x2b9   : > { %v9525_v33 = vadd.f32 %v6164_v53, %v6163_v38  ;;  %v6166_v2 = vpop.f32.mrb[174].mxu0 }
 0x2ba   : > { %v6167_v21 = vpop.f32.mrb[175].mxu0 }
 0x2bb   : > { %v9527_v13 = vadd.f32 %v6167_v21, %v6166_v2 }
 0x2bc   : > { %5532 = vmatmul.mubr.msk.bf16.gmra.mrb[24].mxu0 %vm7589_vm5, %v9285_v1  ;;  %5628 = vmatmul.mubr.msk.bf16.gmra.mrb[152].mxu1 %vm7589_vm5, %v9110_v36 }
 0x2bd   : > { %3685 = vmatprep.mubr.bf16.mxu0 %v9308_v50  ;;  %4217 = vmatprep.mubr.bf16.mxu1 %v9126_v26 }
 0x2bf   : > { %v6169_v17 = vpop.f32.mrb[176].mxu0 }
 0x2c0   : > { %v6170_v35 = vpop.f32.mrb[177].mxu0 }
 0x2c1   : > { %v9537_v10 = vadd.f32 %v6170_v35, %v6169_v17  ;;  %v6172_v41 = vpop.f32.mrb[178].mxu0 }
 0x2c2   : > { %v6173_v27 = vpop.f32.mrb[179].mxu0 }
 0x2c3   : > { %v9539_v15 = vadd.f32 %v6173_v27, %v6172_v41 }
 0x2c4   : > { %5536 = vmatmul.mubr.msk.bf16.gmra.mrb[28].mxu0 %vm7589_vm5, %v9318_v52  ;;  %5632 = vmatmul.mubr.msk.bf16.gmra.mrb[156].mxu1 %vm7589_vm5, %v9135_v28 }
 0x2c5   : > { %4225 = vmatprep.mubr.bf16.mxu1 %v9151_v48 }
 0x2c7   : > { %v6175_v36 = vpop.f32.mrb[180].mxu0 }
 0x2c8   : > { %v6176_v26 = vpop.f32.mrb[181].mxu0 }
 0x2c9   : > { %v9548_v57 = vadd.f32 %v6176_v26, %v6175_v36  ;;  %v6178_v43 = vpop.f32.mrb[182].mxu0 }
 0x2ca   : > { %v6179_v32 = vpop.f32.mrb[183].mxu0 }
 0x2cb   : > { %v9550_v20 = vadd.f32 %v6179_v32, %v6178_v43 }
 0x2cc   : > { %5636 = vmatmul.mubr.msk.bf16.gmra.mrb[160].mxu1 %vm7589_vm5, %v9160_v11 }
 0x2cd   : > { %4233 = vmatprep.mubr.bf16.mxu1 %v9176_v25 }
 0x2cf   : > { %v6181_v6 = vpop.f32.mrb[184].mxu0 }
 0x2d0   : > { %v6182_v56 = vpop.f32.mrb[185].mxu0 }
 0x2d1   : > { %v9556_v54 = vadd.f32 %v6182_v56, %v6181_v6  ;;  %v6184_v28 = vpop.f32.mrb[186].mxu0 }
 0x2d2   : > { %v6185_v48 = vpop.f32.mrb[187].mxu0 }
 0x2d3   : > { %v9558_v4 = vadd.f32 %v6185_v48, %v6184_v28 }
 0x2d4   : > { %5640 = vmatmul.mubr.msk.bf16.gmra.mrb[164].mxu1 %vm7589_vm5, %v9185_v60 }
 0x2d5   : > { %4241 = vmatprep.mubr.bf16.mxu1 %v9201_v3 }
 0x2d7   : > { %v6187_v16 = vpop.f32.mrb[188].mxu0 }
 0x2d8   : > { %v6188_v7 = vpop.f32.mrb[189].mxu0 }
 0x2d9   : > { %v9564_v55 = vadd.f32 %v6188_v7, %v6187_v16  ;;  %v6190_v11 = vpop.f32.mrb[190].mxu0  ;;  %v10128_v16 = vmov 0  }
 0x2da   : > { %v6191_v25 = vpop.f32.mrb[191].mxu0 }
 0x2db   : > { %v9566_v62 = vadd.f32 %v6191_v25, %v6190_v11 }
 0x2dc   : > { %5644 = vmatmul.mubr.msk.bf16.gmra.mrb[168].mxu1 %vm7589_vm5, %v9210_v31 }
 0x2dd   : > { %4249 = vmatprep.mubr.bf16.mxu1 %v9226_v58 }
 0x2df   : > { %v6193_v38 = vpop.f32.mrb[192].mxu0 }
 0x2e0   : > { %v6194_v53 = vpop.f32.mrb[193].mxu0 }
 0x2e1   : > { %v9572_v2 = vadd.f32 %v6194_v53, %v6193_v38  ;;  %v6196_v60 = vpop.f32.mrb[194].mxu0 }
 0x2e2   : > { %v6197_v3 = vpop.f32.mrb[195].mxu0 }
 0x2e3   : > { %v9574_v21 = vadd.f32 %v6197_v3, %v6196_v60 }
 0x2e4   : > { %5648 = vmatmul.mubr.msk.bf16.gmra.mrb[172].mxu1 %vm7589_vm5, %v9235_v44 }
 0x2e5   : > { %4257 = vmatprep.mubr.bf16.mxu1 %v9251_v22 }
 0x2e7   : > { %v6199_v17 = vpop.f32.mrb[196].mxu0 }
 0x2e8   : > { %v6200_v35 = vpop.f32.mrb[197].mxu0 }
 0x2e9   : > { %v9580_v41 = vadd.f32 %v6200_v35, %v6199_v17  ;;  %v6202_v31 = vpop.f32.mrb[198].mxu0 }
 0x2ea   : > { %v6203_v58 = vpop.f32.mrb[199].mxu0 }
 0x2eb   : > { %v9582_v27 = vadd.f32 %v6203_v58, %v6202_v31 }
 0x2ec   : > { %5652 = vmatmul.mubr.msk.bf16.gmra.mrb[176].mxu1 %vm7589_vm5, %v9260_v12 }
 0x2ed   : > { %4265 = vmatprep.mubr.bf16.mxu1 %v9276_v5 }
 0x2ef   : > { %v6205_v36 = vpop.f32.mrb[200].mxu0 }
 0x2f0   : > { %v6206_v26 = vpop.f32.mrb[201].mxu0 }
 0x2f1   : > { %v9588_v43 = vadd.f32 %v6206_v26, %v6205_v36  ;;  %v6208_v44 = vpop.f32.mrb[202].mxu0 }
 0x2f2   : > { %v6209_v22 = vpop.f32.mrb[203].mxu0 }
 0x2f3   : > { %v9590_v32 = vadd.f32 %v6209_v22, %v6208_v44 }
 0x2f4   : > { %5656 = vmatmul.mubr.msk.bf16.gmra.mrb[180].mxu1 %vm7589_vm5, %v9285_v1 }
 0x2f5   : > { %4273 = vmatprep.mubr.bf16.mxu1 %v9308_v50 }
 0x2f7   : > { %v6211_v6 = vpop.f32.mrb[204].mxu0 }
 0x2f8   : > { %v6212_v56 = vpop.f32.mrb[205].mxu0 }
 0x2f9   : > { %v9596_v28 = vadd.f32 %v6212_v56, %v6211_v6  ;;  %v6214_v12 = vpop.f32.mrb[206].mxu0 }
 0x2fa   : > { %v6215_v5 = vpop.f32.mrb[207].mxu0 }
 0x2fb   : > { %v9598_v48 = vadd.f32 %v6215_v5, %v6214_v12 }
 0x2fc   : > { %5660 = vmatmul.mubr.msk.bf16.gmra.mrb[184].mxu1 %vm7589_vm5, %v9318_v52 }
 0x2fd   : > { %4281 = vmatprep.mubr.bf16.mxu1 %v10128_v16 }
 0x2ff   : > { %v6217_v7 = vpop.f32.mrb[208].mxu0 }
 0x300   : > { %v6218_v11 = vpop.f32.mrb[209].mxu0 }
 0x301   : > { %v9604_v25 = vadd.f32 %v6218_v11, %v6217_v7  ;;  %v6220_v1 = vpop.f32.mrb[210].mxu0 }
 0x302   : > { %v6221_v50 = vpop.f32.mrb[211].mxu0 }
 0x303   : > { %v9606_v38 = vadd.f32 %v6221_v50, %v6220_v1 }
 0x304   : > { %4282 = vmatmul.mubr.bf16.gmra.mrb[188].mxu1 %v10128_v16 }
 0x305   : > { %6793 = vmatprep.mubr.msk.bf16.mxu1 %vm7577_vm4, %v8909_v40 }
 0x307   : > { %v6223_v53 = vpop.f32.mrb[212].mxu0 }
 0x308   : > { %v6224_v60 = vpop.f32.mrb[213].mxu0 }
 0x309   : > { %v9612_v18 = vadd.f32 %v6224_v60, %v6223_v53  ;;  %v6226_v52 = vpop.f32.mrb[214].mxu0 }
 0x30a   : > { %v6227_v3 = vpop.f32.mrb[215].mxu0 }
 0x30b   : > { %v9614_v17 = vadd.f32 %v6227_v3, %v6226_v52 }
 0x30c   : > { %6794 = vmatmul.mubr.msk.bf16.vlgmr.msra.gmra.mrb[96].mxu1 %vm7577_vm4, %v8948_v0 }
 0x30d   : > { %6797 = vmatprep.mubr.msk.bf16.mxu1 %vm7577_vm4, %v8987_v37 }
 0x30f   : > { %v6229_v35 = vpop.f32.mrb[216].mxu0 }
 0x310   : > { %v6230_v31 = vpop.f32.mrb[217].mxu0 }
 0x311   : > { %v9622_v58 = vadd.f32 %v6230_v31, %v6229_v35  ;;  %v6232_v40 = vpop.f32.mrb[218].mxu0 }
 0x312   : > { %v6233_v36 = vpop.f32.mrb[219].mxu0 }
 0x313   : > { %v9624_v26 = vadd.f32 %v6233_v36, %v6232_v40 }
 0x314   : > { %6798 = vmatmul.mubr.msk.bf16.gmra.mrb[100].mxu1 %vm7577_vm4, %v10119_v23 }
 0x315   : > { %6801 = vmatprep.mubr.msk.bf16.mxu1 %vm7577_vm4, %v10121_v39  ;;  %v9645_v39 = vld [vmem:[%s10006_s4] ss:$0 sm:$0xff] }
 0x316   : > { %v6989_v5 = vadd.f32 %v9300_v49, %v9645_v39  ;;  %v6985_v52 = vadd.f32 %v9501_v42, %v9645_v39  ;;  %v6993_v31 = vadd.f32 %v9503_v61, %v9645_v39 }
 0x317   : > { %v6235_v0 = vpop.f32.mrb[220].mxu0 }
 0x318   : > { %v6236_v44 = vpop.f32.mrb[221].mxu0 }
 0x319   : > { %v9632_v22 = vadd.f32 %v6236_v44, %v6235_v0  ;;  %v6238_v37 = vpop.f32.mrb[222].mxu0  ;;  %v7005_v0 = vadd.f32 %v9513_v14, %v9645_v39 }
 0x31a   : > { %v6239_v6 = vpop.f32.mrb[223].mxu0 }
 0x31b   : > { %v9634_v56 = vadd.f32 %v6239_v6, %v6238_v37  ;;  %v7013_v6 = vadd.f32 %v9515_v59, %v9645_v39 }
 0x31c   : > { %6802 = vmatmul.mubr.msk.bf16.gmra.mrb[104].mxu1 %vm7577_vm4, %v9092_v9  ;;  %v6997_v9 = vadd.f32 %v9306_v24, %v9645_v39 }
 0x31d   : > { %6805 = vmatprep.mubr.msk.bf16.mxu1 %vm7577_vm4, %v9117_v63 }
 0x31f   : > { %v6281_v23 = vpop.f32.mrb[224].mxu0 }
 0x320   : > { %v6282_v12 = vpop.f32.mrb[225].mxu0 }
 0x321   : > { %v6283_v7 = vadd.f32 %v6282_v12, %v6281_v23  ;;  %v6284_v11 = vpop.f32.mrb[226].mxu0 }
 0x322   : > { %v6285_v1 = vpop.f32.mrb[227].mxu0 }
 0x323   : > { %v9651_v50 = vadd.f32 %v6989_v5, %v6283_v7  ;;  %v6286_v53 = vadd.f32 %v6285_v1, %v6284_v11  ;;  %v7001_v5 = vadd.f32 %v9525_v33, %v9645_v39  ;;  %v7009_v1 = vadd.f32 %v9527_v13, %v9645_v39 }
 0x324   : > { %6806 = vmatmul.mubr.msk.bf16.gmra.mrb[108].mxu1 %vm7577_vm4, %v9142_v30 }
 0x325   : > { %v9656_v63 = vadd.f32 %v6997_v9, %v6286_v53  ;;  %6809 = vmatprep.mubr.msk.bf16.mxu1 %vm7577_vm4, %v9167_v29 }
 0x327   : > { %v6287_v49 = vpop.f32.mrb[228].mxu0 }
 0x328   : > { %v6288_v60 = vpop.f32.mrb[229].mxu0 }
 0x329   : > { %v6289_v3 = vadd.f32 %v6288_v60, %v6287_v49  ;;  %v6290_v24 = vpop.f32.mrb[230].mxu0  ;;  %v7021_v49 = vadd.f32 %v9537_v10, %v9645_v39 }
 0x32a   : > { %v6291_v35 = vpop.f32.mrb[231].mxu0 }
 0x32b   : > { %v9665_v40 = vadd.f32 %v6985_v52, %v6289_v3  ;;  %v6292_v30 = vadd.f32 %v6291_v35, %v6290_v24  ;;  %v7029_v3 = vadd.f32 %v9539_v15, %v9645_v39 }
 0x32c   : > { %6810 = vmatmul.mubr.msk.bf16.gmra.mrb[112].mxu1 %vm7577_vm4, %v9192_v19 }
 0x32d   : > { %v9670_v36 = vadd.f32 %v6993_v31, %v6292_v30  ;;  %6813 = vmatprep.mubr.msk.bf16.mxu1 %vm7577_vm4, %v9217_v45  ;;  %v7017_v31 = vadd.f32 %v9548_v57, %v9645_v39  ;;  %v7045_v57 = vadd.f32 %v9558_v4, %v9645_v39 }
 0x32f   : > { %v6293_v29 = vpop.f32.mrb[232].mxu0 }
 0x330   : > { %v6294_v42 = vpop.f32.mrb[233].mxu0 }
 0x331   : > { %v6295_v44 = vadd.f32 %v6294_v42, %v6293_v29  ;;  %v6296_v61 = vpop.f32.mrb[234].mxu0  ;;  %v7025_v42 = vadd.f32 %v9550_v20, %v9645_v39 }
 0x332   : > { %v6297_v37 = vpop.f32.mrb[235].mxu0 }
 0x333   : > { %v9679_v23 = vadd.f32 %v7005_v0, %v6295_v44  ;;  %v6298_v19 = vadd.f32 %v6297_v37, %v6296_v61  ;;  %v7037_v37 = vadd.f32 %v9556_v54, %v9645_v39  ;;  %v7041_v54 = vadd.f32 %v9566_v62, %v9645_v39 }
 0x334   : > { %6814 = vmatmul.mubr.msk.bf16.gmra.mrb[116].mxu1 %vm7577_vm4, %v9242_v47 }
 0x335   : > { %v9684_v12 = vadd.f32 %v7013_v6, %v6298_v19  ;;  %6817 = vmatprep.mubr.msk.bf16.mxu1 %vm7577_vm4, %v9267_v8 }
 0x337   : > { %v6299_v45 = vpop.f32.mrb[236].mxu0 }
 0x338   : > { %v6300_v14 = vpop.f32.mrb[237].mxu0 }
 0x339   : > { %v6301_v7 = vadd.f32 %v6300_v14, %v6299_v45  ;;  %v6302_v59 = vpop.f32.mrb[238].mxu0 }
 0x33a   : > { %v6303_v11 = vpop.f32.mrb[239].mxu0 }
 0x33b   : > { %v9693_v9 = vadd.f32 %v7001_v5, %v6301_v7  ;;  %v6304_v47 = vadd.f32 %v6303_v11, %v6302_v59  ;;  %v7033_v11 = vadd.f32 %v9564_v55, %v9645_v39 }
 0x33c   : > { %6818 = vmatmul.mubr.msk.bf16.gmra.mrb[120].mxu1 %vm7577_vm4, %v9292_v46 }
 0x33d   : > { %v9698_v53 = vadd.f32 %v7009_v1, %v6304_v47  ;;  %6821 = vmatprep.mubr.msk.bf16.mxu1 %vm7577_vm4, %v9320_v51 }
 0x33f   : > { %v6305_v8 = vpop.f32.mrb[240].mxu0 }
 0x340   : > { %v6306_v33 = vpop.f32.mrb[241].mxu0 }
 0x341   : > { %v6307_v60 = vadd.f32 %v6306_v33, %v6305_v8  ;;  %v6308_v13 = vpop.f32.mrb[242].mxu0 }
 0x342   : > { %v6309_v52 = vpop.f32.mrb[243].mxu0 }
 0x343   : > { %v9707_v24 = vadd.f32 %v7021_v49, %v6307_v60  ;;  %v6310_v46 = vadd.f32 %v6309_v52, %v6308_v13 }
 0x344   : > { %6822 = vmatmul.mubr.bf16.gmra.mrb[124].mxu1 %v10128_v16 }
 0x345   : > { %v9710_v35 = vadd.f32 %v7029_v3, %v6310_v46  ;;  %v7053_v46 = vadd.f32 %v9572_v2, %v9645_v39 }
 0x347   : > { %v6311_v34 = vpop.f32.mrb[244].mxu0 }
 0x348   : > { %v6312_v51 = vpop.f32.mrb[245].mxu0 }
 0x349   : > { %v6313_v30 = vadd.f32 %v6312_v51, %v6311_v34  ;;  %v6314_v10 = vpop.f32.mrb[246].mxu0 }
 0x34a   : > { %v6315_v29 = vpop.f32.mrb[247].mxu0 }
 0x34b   : > { %v9716_v0 = vadd.f32 %v7017_v31, %v6313_v30  ;;  %v6316_v15 = vadd.f32 %v6315_v29, %v6314_v10  ;;  %v7061_v30 = vadd.f32 %v9574_v21, %v9645_v39  ;;  %v7049_v21 = vadd.f32 %v9580_v41, %v9645_v39 }
 0x34d   : > { %v9718_v44 = vadd.f32 %v7025_v42, %v6316_v15 }
 0x34f   : > { %v6317_v61 = vpop.f32.mrb[248].mxu0 }
 0x350   : > { %v6318_v16 = vpop.f32.mrb[249].mxu0 }
 0x351   : > { %v6319_v6 = vadd.f32 %v6318_v16, %v6317_v61  ;;  %v6320_v19 = vpop.f32.mrb[250].mxu0 }
 0x352   : > { %v6321_v45 = vpop.f32.mrb[251].mxu0 }
 0x353   : > { %v9724_v14 = vadd.f32 %v7037_v37, %v6319_v6  ;;  %v6322_v5 = vadd.f32 %v6321_v45, %v6320_v19 }
 0x355   : > { %v9726_v20 = vadd.f32 %v7045_v57, %v6322_v5 }
 0x357   : > { %v6323_v7 = vpop.f32.mrb[252].mxu0 }
 0x358   : > { %v6324_v59 = vpop.f32.mrb[253].mxu0 }
 0x359   : > { %v6325_v1 = vadd.f32 %v6324_v59, %v6323_v7  ;;  %v6326_v47 = vpop.f32.mrb[254].mxu0 }
 0x35a   : > { %v6327_v8 = vpop.f32.mrb[255].mxu0 }
 0x35b   : > { %v9732_v33 = vadd.f32 %v7033_v11, %v6325_v1  ;;  %v6328_v49 = vadd.f32 %v6327_v8, %v6326_v47 }
 0x35d   : > { %v9734_v4 = vadd.f32 %v7041_v54, %v6328_v49 }
 0x35f   : > { %v6329_v60 = vpop.f32.mrb[0].mxu0  ;;  %v6417_v13 = vpop.f32.mrb[128].mxu1 }
 0x360   : > { %v6330_v52 = vpop.f32.mrb[1].mxu0  ;;  %v6418_v3 = vpop.f32.mrb[129].mxu1 }
 0x361   : > { %v6331_v34 = vadd.f32 %v6330_v52, %v6329_v60  ;;  %v6419_v55 = vadd.f32 %v6418_v3, %v6417_v13  ;;  %v6332_v51 = vpop.f32.mrb[2].mxu0  ;;  %v6420_v31 = vpop.f32.mrb[130].mxu1 }
 0x362   : > { %v6333_v62 = vpop.f32.mrb[3].mxu0  ;;  %v6421_v10 = vpop.f32.mrb[131].mxu1 }
 0x363   : > { %v9740_v29 = vadd.f32 %v7053_v46, %v6331_v34  ;;  %v6334_v42 = vadd.f32 %v6333_v62, %v6332_v51  ;;  %v6422_v15 = vadd.f32 %v6421_v10, %v6420_v31  ;;  %v9743_v61 = vadd.f32 %v9651_v50, %v6419_v55 }
 0x364   : > { %v7057_v50 = vadd.f32 %v9582_v27, %v9645_v39  ;;  %v7069_v27 = vadd.f32 %v9588_v43, %v9645_v39 }
 0x365   : > { %v9745_v16 = vadd.f32 %v7061_v30, %v6334_v42  ;;  %v9748_v2 = vadd.f32 %v9656_v63, %v6422_v15 }
 0x367   : > { %v6335_v37 = vpop.f32.mrb[4].mxu0  ;;  %v6423_v6 = vpop.f32.mrb[132].mxu1 }
 0x368   : > { %v6336_v19 = vpop.f32.mrb[5].mxu0  ;;  %v6424_v45 = vpop.f32.mrb[133].mxu1 }
 0x369   : > { %v6337_v57 = vadd.f32 %v6336_v19, %v6335_v37  ;;  %v6425_v5 = vadd.f32 %v6424_v45, %v6423_v6  ;;  %v6338_v7 = vpop.f32.mrb[6].mxu0  ;;  %v6426_v59 = vpop.f32.mrb[134].mxu1 }
 0x36a   : > { %v6339_v11 = vpop.f32.mrb[7].mxu0  ;;  %v6427_v1 = vpop.f32.mrb[135].mxu1 }
 0x36b   : > { %v9754_v47 = vadd.f32 %v7049_v21, %v6337_v57  ;;  %v6340_v63 = vadd.f32 %v6339_v11, %v6338_v7  ;;  %v6428_v8 = vadd.f32 %v6427_v1, %v6426_v59  ;;  %v9757_v54 = vadd.f32 %v9665_v40, %v6425_v5 }
 0x36c   : > { %v7077_v40 = vadd.f32 %v9590_v32, %v9645_v39  ;;  %v7065_v32 = vadd.f32 %v9596_v28, %v9645_v39 }
 0x36d   : > { %v9759_v49 = vadd.f32 %v7057_v50, %v6340_v63  ;;  %v9762_v41 = vadd.f32 %v9670_v36, %v6428_v8 }
 0x36f   : > { %v6341_v60 = vpop.f32.mrb[8].mxu0  ;;  %v6429_v13 = vpop.f32.mrb[136].mxu1 }
 0x370   : > { %v6342_v52 = vpop.f32.mrb[9].mxu0  ;;  %v6430_v3 = vpop.f32.mrb[137].mxu1 }
 0x371   : > { %v6343_v46 = vadd.f32 %v6342_v52, %v6341_v60  ;;  %v6431_v34 = vadd.f32 %v6430_v3, %v6429_v13  ;;  %v6344_v55 = vpop.f32.mrb[10].mxu0  ;;  %v6432_v51 = vpop.f32.mrb[138].mxu1 }
 0x372   : > { %v6345_v31 = vpop.f32.mrb[11].mxu0  ;;  %v6433_v30 = vpop.f32.mrb[139].mxu1 }
 0x373   : > { %v9768_v62 = vadd.f32 %v7069_v27, %v6343_v46  ;;  %v6346_v36 = vadd.f32 %v6345_v31, %v6344_v55  ;;  %v6434_v10 = vadd.f32 %v6433_v30, %v6432_v51  ;;  %v9771_v42 = vadd.f32 %v9679_v23, %v6431_v34 }
 0x374   : > { %v7073_v23 = vadd.f32 %v9598_v48, %v9645_v39  ;;  %v7085_v48 = vadd.f32 %v9604_v25, %v9645_v39 }
 0x375   : > { %v9773_v15 = vadd.f32 %v7077_v40, %v6346_v36  ;;  %v9776_v43 = vadd.f32 %v9684_v12, %v6434_v10 }
 0x377   : > { %v6347_v37 = vpop.f32.mrb[12].mxu0  ;;  %v6435_v6 = vpop.f32.mrb[140].mxu1 }
 0x378   : > { %v6348_v19 = vpop.f32.mrb[13].mxu0  ;;  %v6436_v45 = vpop.f32.mrb[141].mxu1 }
 0x379   : > { %v6349_v21 = vadd.f32 %v6348_v19, %v6347_v37  ;;  %v6437_v57 = vadd.f32 %v6436_v45, %v6435_v6  ;;  %v6350_v5 = vpop.f32.mrb[14].mxu0  ;;  %v6438_v7 = vpop.f32.mrb[142].mxu1 }
 0x37a   : > { %v6351_v59 = vpop.f32.mrb[15].mxu0  ;;  %v6439_v50 = vpop.f32.mrb[143].mxu1 }
 0x37b   : > { %v9782_v11 = vadd.f32 %v7065_v32, %v6349_v21  ;;  %v6352_v12 = vadd.f32 %v6351_v59, %v6350_v5  ;;  %v6440_v1 = vadd.f32 %v6439_v50, %v6438_v7  ;;  %v9785_v63 = vadd.f32 %v9693_v9, %v6437_v57 }
 0x37c   : > { %v7093_v9 = vadd.f32 %v9606_v38, %v9645_v39  ;;  %v7081_v38 = vadd.f32 %v9612_v18, %v9645_v39 }
 0x37d   : > { %v9787_v8 = vadd.f32 %v7073_v23, %v6352_v12  ;;  %v9790_v28 = vadd.f32 %v9698_v53, %v6440_v1 }
 0x37f   : > { %v6353_v60 = vpop.f32.mrb[16].mxu0  ;;  %v6441_v13 = vpop.f32.mrb[144].mxu1 }
 0x380   : > { %v6354_v52 = vpop.f32.mrb[17].mxu0  ;;  %v6442_v3 = vpop.f32.mrb[145].mxu1 }
 0x381   : > { %v6355_v27 = vadd.f32 %v6354_v52, %v6353_v60  ;;  %v6443_v46 = vadd.f32 %v6442_v3, %v6441_v13  ;;  %v6356_v34 = vpop.f32.mrb[18].mxu0  ;;  %v6444_v55 = vpop.f32.mrb[146].mxu1 }
 0x382   : > { %v6357_v51 = vpop.f32.mrb[19].mxu0  ;;  %v6445_v40 = vpop.f32.mrb[147].mxu1 }
 0x383   : > { %v9796_v31 = vadd.f32 %v7085_v48, %v6355_v27  ;;  %v6358_v53 = vadd.f32 %v6357_v51, %v6356_v34  ;;  %v6446_v30 = vadd.f32 %v6445_v40, %v6444_v55  ;;  %v9799_v36 = vadd.f32 %v9707_v24, %v6443_v46 }
 0x384   : > { %v7089_v24 = vadd.f32 %v9614_v17, %v9645_v39  ;;  %v7101_v17 = vadd.f32 %v9622_v58, %v9645_v39 }
 0x385   : > { %v9801_v10 = vadd.f32 %v7093_v9, %v6358_v53  ;;  %v9804_v25 = vadd.f32 %v9710_v35, %v6446_v30 }
 0x387   : > { %v6359_v37 = vpop.f32.mrb[20].mxu0  ;;  %v6447_v6 = vpop.f32.mrb[148].mxu1 }
 0x388   : > { %v6360_v19 = vpop.f32.mrb[21].mxu0  ;;  %v6448_v45 = vpop.f32.mrb[149].mxu1 }
 0x389   : > { %v6361_v32 = vadd.f32 %v6360_v19, %v6359_v37  ;;  %v6449_v21 = vadd.f32 %v6448_v45, %v6447_v6  ;;  %v6362_v57 = vpop.f32.mrb[22].mxu0  ;;  %v6450_v5 = vpop.f32.mrb[150].mxu1 }
 0x38a   : > { %v6363_v7 = vpop.f32.mrb[23].mxu0  ;;  %v6451_v23 = vpop.f32.mrb[151].mxu1 }
 0x38b   : > { %v9810_v59 = vadd.f32 %v7081_v38, %v6361_v32  ;;  %v6364_v35 = vadd.f32 %v6363_v7, %v6362_v57  ;;  %v6452_v50 = vadd.f32 %v6451_v23, %v6450_v5  ;;  %v9813_v12 = vadd.f32 %v9716_v0, %v6449_v21 }
 0x38c   : > { %v7109_v0 = vadd.f32 %v9624_v26, %v9645_v39  ;;  %v7097_v26 = vadd.f32 %v9632_v22, %v9645_v39 }
 0x38d   : > { %v9815_v1 = vadd.f32 %v7089_v24, %v6364_v35  ;;  %v9818_v18 = vadd.f32 %v9718_v44, %v6452_v50 }
 0x38f   : > { %v6365_v60 = vpop.f32.mrb[24].mxu0  ;;  %v6453_v13 = vpop.f32.mrb[152].mxu1 }
 0x390   : > { %v6366_v52 = vpop.f32.mrb[25].mxu0  ;;  %v6454_v3 = vpop.f32.mrb[153].mxu1 }
 0x391   : > { %v6367_v48 = vadd.f32 %v6366_v52, %v6365_v60  ;;  %v6455_v27 = vadd.f32 %v6454_v3, %v6453_v13  ;;  %v6368_v46 = vpop.f32.mrb[26].mxu0  ;;  %v6456_v34 = vpop.f32.mrb[154].mxu1 }
 0x392   : > { %v6369_v55 = vpop.f32.mrb[27].mxu0  ;;  %v6457_v9 = vpop.f32.mrb[155].mxu1 }
 0x393   : > { %v9824_v51 = vadd.f32 %v7101_v17, %v6367_v48  ;;  %v6370_v44 = vadd.f32 %v6369_v55, %v6368_v46  ;;  %v6458_v40 = vadd.f32 %v6457_v9, %v6456_v34  ;;  %v9827_v53 = vadd.f32 %v9724_v14, %v6455_v27 }
 0x394   : > { %v7105_v14 = vadd.f32 %v9634_v56, %v9645_v39 }
 0x395   : > { %v9829_v30 = vadd.f32 %v7109_v0, %v6370_v44  ;;  %v9832_v58 = vadd.f32 %v9726_v20, %v6458_v40 }
 0x397   : > { %v6371_v37 = vpop.f32.mrb[28].mxu0  ;;  %v6459_v6 = vpop.f32.mrb[156].mxu1 }
 0x398   : > { %v6372_v19 = vpop.f32.mrb[29].mxu0  ;;  %v6460_v45 = vpop.f32.mrb[157].mxu1 }
 0x399   : > { %v6373_v38 = vadd.f32 %v6372_v19, %v6371_v37  ;;  %v6461_v32 = vadd.f32 %v6460_v45, %v6459_v6  ;;  %v6374_v21 = vpop.f32.mrb[30].mxu0  ;;  %v6462_v57 = vpop.f32.mrb[158].mxu1 }
 0x39a   : > { %v6375_v5 = vpop.f32.mrb[31].mxu0  ;;  %v6463_v24 = vpop.f32.mrb[159].mxu1 }
 0x39b   : > { %v9838_v7 = vadd.f32 %v7097_v26, %v6373_v38  ;;  %v6376_v20 = vadd.f32 %v6375_v5, %v6374_v21  ;;  %v6464_v23 = vadd.f32 %v6463_v24, %v6462_v57  ;;  %v9841_v35 = vadd.f32 %v9732_v33, %v6461_v32 }
 0x39d   : > { %v9843_v50 = vadd.f32 %v7105_v14, %v6376_v20  ;;  %v9846_v22 = vadd.f32 %v9734_v4, %v6464_v23 }
 0x39f   : > { %v6465_v60 = vpop.f32.mrb[160].mxu1 }
 0x3a0   : > { %v6466_v13 = vpop.f32.mrb[161].mxu1 }
 0x3a1   : > { %v6467_v52 = vadd.f32 %v6466_v13, %v6465_v60  ;;  %v6468_v3 = vpop.f32.mrb[162].mxu1 }
 0x3a2   : > { %v6469_v17 = vpop.f32.mrb[163].mxu1 }
 0x3a3   : > { %v6470_v56 = vadd.f32 %v6469_v17, %v6468_v3  ;;  %v9849_v39 = vadd.f32 %v9740_v29, %v6467_v52 }
 0x3a5   : > { %v9852_v48 = vadd.f32 %v9745_v16, %v6470_v56 }
 0x3a7   : > { %v6471_v27 = vpop.f32.mrb[164].mxu1 }
 0x3a8   : > { %v6472_v33 = vpop.f32.mrb[165].mxu1 }
 0x3a9   : > { %v6473_v46 = vadd.f32 %v6472_v33, %v6471_v27  ;;  %v6474_v34 = vpop.f32.mrb[166].mxu1 }
 0x3aa   : > { %v6475_v0 = vpop.f32.mrb[167].mxu1 }
 0x3ab   : > { %v6476_v55 = vadd.f32 %v6475_v0, %v6474_v34  ;;  %v9855_v4 = vadd.f32 %v9754_v47, %v6473_v46 }
 0x3ad   : > { %v9858_v9 = vadd.f32 %v9759_v49, %v6476_v55 }
 0x3af   : > { %v6477_v44 = vpop.f32.mrb[168].mxu1 }
 0x3b0   : > { %v6478_v40 = vpop.f32.mrb[169].mxu1 }
 0x3b1   : > { %v6479_v37 = vadd.f32 %v6478_v40, %v6477_v44  ;;  %v6480_v29 = vpop.f32.mrb[170].mxu1 }
 0x3b2   : > { %v6481_v6 = vpop.f32.mrb[171].mxu1 }
 0x3b3   : > { %v6482_v19 = vadd.f32 %v6481_v6, %v6480_v29  ;;  %v9861_v16 = vadd.f32 %v9768_v62, %v6479_v37 }
 0x3b5   : > { %v9864_v45 = vadd.f32 %v9773_v15, %v6482_v19 }
 0x3b7   : > { %v6483_v26 = vpop.f32.mrb[172].mxu1 }
 0x3b8   : > { %v6484_v38 = vpop.f32.mrb[173].mxu1 }
 0x3b9   : > { %v6485_v32 = vadd.f32 %v6484_v38, %v6483_v26  ;;  %v6486_v47 = vpop.f32.mrb[174].mxu1 }
 0x3ba   : > { %v6487_v21 = vpop.f32.mrb[175].mxu1 }
 0x3bb   : > { %v6488_v57 = vadd.f32 %v6487_v21, %v6486_v47  ;;  %v9867_v49 = vadd.f32 %v9782_v11, %v6485_v32 }
 0x3bd   : > { %v9870_v14 = vadd.f32 %v9787_v8, %v6488_v57  ;;  %v7365_v57 = vld [vmem:[%s7553_s12 + $0x10] sm:$0xff] }
 0x3bf   : > { %v6489_v5 = vpop.f32.mrb[176].mxu1 }
 0x3c0   : > { %v6490_v24 = vpop.f32.mrb[177].mxu1 }
 0x3c1   : > { %v6491_v20 = vadd.f32 %v6490_v24, %v6489_v5  ;;  %v6492_v62 = vpop.f32.mrb[178].mxu1 }
 0x3c2   : > { %v6493_v23 = vpop.f32.mrb[179].mxu1 }
 0x3c3   : > { %v6494_v60 = vadd.f32 %v6493_v23, %v6492_v62  ;;  %v9873_v15 = vadd.f32 %v9796_v31, %v6491_v20  ;;  %v7367_v62 = vld [vmem:[%s7553_s12 + $0x18] sm:$0xff] }
 0x3c5   : > { %v9876_v13 = vadd.f32 %v9801_v10, %v6494_v60  ;;  %v7368_v60 = vld [vmem:[%s7553_s12 + $0x8] sm:$0xff] }
 0x3c7   : > { %v6495_v52 = vpop.f32.mrb[180].mxu1 }
 0x3c8   : > { %v6496_v3 = vpop.f32.mrb[181].mxu1 }
 0x3c9   : > { %v6497_v17 = vadd.f32 %v6496_v3, %v6495_v52  ;;  %v6498_v11 = vpop.f32.mrb[182].mxu1 }
 0x3ca   : > { %v6499_v56 = vpop.f32.mrb[183].mxu1 }
 0x3cb   : > { %v6500_v27 = vadd.f32 %v6499_v56, %v6498_v11  ;;  %v9879_v8 = vadd.f32 %v9810_v59, %v6497_v17 }
 0x3cd   : > { %v9882_v33 = vadd.f32 %v9815_v1, %v6500_v27 }
 0x3cf   : > { %v6501_v46 = vpop.f32.mrb[184].mxu1 }
 0x3d0   : > { %v6502_v34 = vpop.f32.mrb[185].mxu1 }
 0x3d1   : > { %v6503_v0 = vadd.f32 %v6502_v34, %v6501_v46  ;;  %v6504_v31 = vpop.f32.mrb[186].mxu1  ;;  %v7369_v34 = vld [vmem:[%s7553_s12 + $0x30] sm:$0xff] }
 0x3d2   : > { %v6505_v55 = vpop.f32.mrb[187].mxu1 }
 0x3d3   : > { %v6506_v44 = vadd.f32 %v6505_v55, %v6504_v31  ;;  %v9885_v10 = vadd.f32 %v9824_v51, %v6503_v0 }
 0x3d5   : > { %v9888_v40 = vadd.f32 %v9829_v30, %v6506_v44  ;;  %v7370_v44 = vld [vmem:[%s7553_s12 + $0x20] sm:$0xff] }
 0x3d7   : > { %v6507_v37 = vpop.f32.mrb[188].mxu1 }
 0x3d8   : > { %v6508_v29 = vpop.f32.mrb[189].mxu1 }
 0x3d9   : > { %v6509_v59 = vadd.f32 %v6508_v29, %v6507_v37  ;;  %v6510_v1 = vpop.f32.mrb[190].mxu1 }
 0x3da   : > { %v6511_v6 = vpop.f32.mrb[191].mxu1 }
 0x3db   : > { %v6512_v19 = vadd.f32 %v6511_v6, %v6510_v1  ;;  %v9891_v26 = vadd.f32 %v9838_v7, %v6509_v59  ;;  %v7371_v59 = vld [vmem:[%s7553_s12 + $0x38] sm:$0xff] }
 0x3dd   : > { %v9894_v38 = vadd.f32 %v9843_v50, %v6512_v19  ;;  %v7372_v19 = vld [vmem:[%s7553_s12 + $0x28] sm:$0xff] }
 0x3df   : > { %v6795_v51 = vpop.f32.mrb[96].mxu1 }
 0x3e0   : > { %v6988_v32 = vadd.f32 %v9757_v54, %v6795_v51  ;;  %v4324_v30 = vpop.f32.mrb[97].mxu1  ;;  %v7366_v54 = vld [vmem:[%s7553_s12] sm:$0xff] }
 0x3e1   : > { %v6992_v47 = vadd.f32 %v9743_v61, %v4324_v30  ;;  %v6796_v21 = vpop.f32.mrb[98].mxu1 }
 0x3e2   : > { %v4485_v5 = vadd.f32 %v7365_v57, %v6988_v32  ;;  %v6996_v24 = vadd.f32 %v9762_v41, %v6796_v21  ;;  %v4327_v20 = vpop.f32.mrb[99].mxu1  ;;  %v7373_v57 = vld [vmem:[%s7553_s12 + $0x50] sm:$0xff] }
 0x3e3   : > { %v4483_v7 = vadd.f32 %v7366_v54, %v6992_v47  ;;  %v7000_v61 = vadd.f32 %v9748_v2, %v4327_v20  ;;  %v7374_v54 = vld [vmem:[%s7553_s12 + $0x40] sm:$0xff] }
 0x3e4   : > { %v4517_v50 = vmax.f32 %v4485_v5, 0.0  ;;  %v4486_v23 = vadd.f32 %v7367_v62, %v6996_v24 }
 0x3e5   : > { %v4515_v41 = vmax.f32 %v4483_v7, 0.0  ;;  %v4484_v52 = vadd.f32 %v7368_v60, %v7000_v61 }
 0x3e6   : > { %4549 = vst [vmem:[%s9905_s16 + $0x10] sm:$0xff] %v4517_v50  ;;  %v4518_v3 = vmax.f32 %v4486_v23, 0.0  ;;  %v7375_v50 = vld [vmem:[%s7553_s12 + $0x58] sm:$0xff] }
 0x3e7   : > { %4547 = vst [vmem:[%s9905_s16] sm:$0xff] %v4515_v41  ;;  %v4516_v17 = vmax.f32 %v4484_v52, 0.0  ;;  %v6799_v11 = vpop.f32.mrb[100].mxu1  ;;  %v7376_v41 = vld [vmem:[%s7553_s12 + $0x48] sm:$0xff] }
 0x3e8   : > { %4550 = vst [vmem:[%s9905_s16 + $0x18] sm:$0xff] %v4518_v3  ;;  %v7004_v56 = vadd.f32 %v9785_v63, %v6799_v11  ;;  %v4340_v27 = vpop.f32.mrb[101].mxu1 }
 0x3e9   : > { %4548 = vst [vmem:[%s9905_s16 + $0x8] sm:$0xff] %v4516_v17  ;;  %v7008_v2 = vadd.f32 %v9771_v42, %v4340_v27  ;;  %v6800_v46 = vpop.f32.mrb[102].mxu1 }
 0x3ea   : > { %v4489_v0 = vadd.f32 %v7369_v34, %v7004_v56  ;;  %v7012_v31 = vadd.f32 %v9790_v28, %v6800_v46  ;;  %v4343_v55 = vpop.f32.mrb[103].mxu1  ;;  %v7377_v56 = vld [vmem:[%s7553_s12 + $0x70] sm:$0xff]  ;;  %v7378_v34 = vld [vmem:[%s7553_s12 + $0x60] sm:$0xff] }
 0x3eb   : > { %v4487_v37 = vadd.f32 %v7370_v44, %v7008_v2  ;;  %v7016_v29 = vadd.f32 %v9776_v43, %v4343_v55  ;;  %v7379_v55 = vld [vmem:[%s7553_s12 + $0x78] sm:$0xff] }
 0x3ec   : > { %v4521_v63 = vmax.f32 %v4489_v0, 0.0  ;;  %v4490_v1 = vadd.f32 %v7371_v59, %v7012_v31 }
 0x3ed   : > { %v4519_v6 = vmax.f32 %v4487_v37, 0.0  ;;  %v4488_v42 = vadd.f32 %v7372_v19, %v7016_v29  ;;  %v7380_v29 = vld [vmem:[%s7553_s12 + $0x68] sm:$0xff] }
 0x3ee   : > { %4553 = vst [vmem:[%s9905_s16 + $0x30] sm:$0xff] %v4521_v63  ;;  %v4522_v51 = vmax.f32 %v4490_v1, 0.0 }
 0x3ef   : > { %4551 = vst [vmem:[%s9905_s16 + $0x20] sm:$0xff] %v4519_v6  ;;  %v4520_v32 = vmax.f32 %v4488_v42, 0.0  ;;  %v6803_v28 = vpop.f32.mrb[104].mxu1  ;;  %v7381_v42 = vld [vmem:[%s7553_s12 + $0x90] sm:$0xff] }
 0x3f0   : > { %4554 = vst [vmem:[%s9905_s16 + $0x38] sm:$0xff] %v4522_v51  ;;  %v7020_v30 = vadd.f32 %v9813_v12, %v6803_v28  ;;  %v4356_v47 = vpop.f32.mrb[105].mxu1 }
 0x3f1   : > { %4552 = vst [vmem:[%s9905_s16 + $0x28] sm:$0xff] %v4520_v32  ;;  %v7024_v43 = vadd.f32 %v9799_v36, %v4356_v47  ;;  %v6804_v21 = vpop.f32.mrb[106].mxu1 }
 0x3f2   : > { %v4493_v5 = vadd.f32 %v7373_v57, %v7020_v30  ;;  %v7028_v24 = vadd.f32 %v9818_v18, %v6804_v21  ;;  %v4359_v20 = vpop.f32.mrb[107].mxu1  ;;  %v7382_v30 = vld [vmem:[%s7553_s12 + $0x80] sm:$0xff]  ;;  %v7383_v21 = vld [vmem:[%s7553_s12 + $0x98] sm:$0xff] }
 0x3f3   : > { %v4491_v7 = vadd.f32 %v7374_v54, %v7024_v43  ;;  %v7032_v61 = vadd.f32 %v9804_v25, %v4359_v20 }
 0x3f4   : > { %v4525_v12 = vmax.f32 %v4493_v5, 0.0  ;;  %v4494_v62 = vadd.f32 %v7375_v50, %v7028_v24  ;;  %v7384_v24 = vld [vmem:[%s7553_s12 + $0x88] sm:$0xff]  ;;  %v7385_v50 = vld [vmem:[%s7553_s12 + $0xb0] sm:$0xff] }
 0x3f5   : > { %v4523_v23 = vmax.f32 %v4491_v7, 0.0  ;;  %v4492_v36 = vadd.f32 %v7376_v41, %v7032_v61 }
 0x3f6   : > { %4557 = vst [vmem:[%s9905_s16 + $0x50] sm:$0xff] %v4525_v12  ;;  %v4526_v60 = vmax.f32 %v4494_v62, 0.0 }
 0x3f7   : > { %4555 = vst [vmem:[%s9905_s16 + $0x40] sm:$0xff] %v4523_v23  ;;  %v4524_v52 = vmax.f32 %v4492_v36, 0.0  ;;  %v6807_v18 = vpop.f32.mrb[108].mxu1  ;;  %v7386_v36 = vld [vmem:[%s7553_s12 + $0xa0] sm:$0xff] }
 0x3f8   : > { %4558 = vst [vmem:[%s9905_s16 + $0x58] sm:$0xff] %v4526_v60  ;;  %v7036_v3 = vadd.f32 %v9841_v35, %v6807_v18  ;;  %v4372_v17 = vpop.f32.mrb[109].mxu1  ;;  %v7387_v18 = vld [vmem:[%s7553_s12 + $0xb8] sm:$0xff] }
 0x3f9   : > { %4556 = vst [vmem:[%s9905_s16 + $0x48] sm:$0xff] %v4524_v52  ;;  %v7040_v25 = vadd.f32 %v9827_v53, %v4372_v17  ;;  %v6808_v11 = vpop.f32.mrb[110].mxu1 }
 0x3fa   : > { %v4497_v27 = vadd.f32 %v7377_v56, %v7036_v3  ;;  %v7044_v2 = vadd.f32 %v9846_v22, %v6808_v11  ;;  %v4375_v46 = vpop.f32.mrb[111].mxu1 }
 0x3fb   : > { %v4495_v0 = vadd.f32 %v7378_v34, %v7040_v25  ;;  %v7048_v31 = vadd.f32 %v9832_v58, %v4375_v46  ;;  %v7388_v25 = vld [vmem:[%s7553_s12 + $0xa8] sm:$0xff]  ;;  %v7389_v34 = vld [vmem:[%s7553_s12 + $0xd0] sm:$0xff] }
 0x3fc   : > { %v4529_v35 = vmax.f32 %v4497_v27, 0.0  ;;  %v4498_v44 = vadd.f32 %v7379_v55, %v7044_v2  ;;  %v7390_v55 = vld [vmem:[%s7553_s12 + $0xc0] sm:$0xff] }
 0x3fd   : > { %v4527_v37 = vmax.f32 %v4495_v0, 0.0  ;;  %v4496_v53 = vadd.f32 %v7380_v29, %v7048_v31  ;;  %v7391_v29 = vld [vmem:[%s7553_s12 + $0xd8] sm:$0xff] }
 0x3fe   : > { %4561 = vst [vmem:[%s9905_s16 + $0x70] sm:$0xff] %v4529_v35  ;;  %v4530_v63 = vmax.f32 %v4498_v44, 0.0 }
 0x3ff   : > { %4559 = vst [vmem:[%s9905_s16 + $0x60] sm:$0xff] %v4527_v37  ;;  %v4528_v59 = vmax.f32 %v4496_v53, 0.0  ;;  %v6811_v22 = vpop.f32.mrb[112].mxu1 }
 0x400   : > { %4562 = vst [vmem:[%s9905_s16 + $0x78] sm:$0xff] %v4530_v63  ;;  %v7052_v1 = vadd.f32 %v9855_v4, %v6811_v22  ;;  %v4388_v6 = vpop.f32.mrb[113].mxu1 }
 0x401   : > { %4560 = vst [vmem:[%s9905_s16 + $0x68] sm:$0xff] %v4528_v59  ;;  %v7056_v58 = vadd.f32 %v9849_v39, %v4388_v6  ;;  %v6812_v19 = vpop.f32.mrb[114].mxu1  ;;  %v7392_v59 = vld [vmem:[%s7553_s12 + $0xc8] sm:$0xff] }
 0x402   : > { %v4501_v51 = vadd.f32 %v7381_v42, %v7052_v1  ;;  %v7060_v32 = vadd.f32 %v9858_v9, %v6812_v19  ;;  %v4391_v28 = vpop.f32.mrb[115].mxu1  ;;  %v7393_v42 = vld [vmem:[%s7553_s12 + $0xf0] sm:$0xff] }
 0x403   : > { %v4499_v47 = vadd.f32 %v7382_v30, %v7056_v58  ;;  %v7064_v43 = vadd.f32 %v9852_v48, %v4391_v28  ;;  %v7394_v30 = vld [vmem:[%s7553_s12 + $0xe0] sm:$0xff] }
 0x404   : > { %v4533_v4 = vmax.f32 %v4501_v51, 0.0  ;;  %v4502_v57 = vadd.f32 %v7383_v21, %v7060_v32 }
 0x405   : > { %v4531_v5 = vmax.f32 %v4499_v47, 0.0  ;;  %v4500_v39 = vadd.f32 %v7384_v24, %v7064_v43 }
 0x406   : > { %4565 = vst [vmem:[%s9905_s16 + $0x90] sm:$0xff] %v4533_v4  ;;  %v4534_v20 = vmax.f32 %v4502_v57, 0.0  ;;  %v7395_v4 = vld [vmem:[%s7553_s12 + $0xf8] sm:$0xff] }
 0x407   : > { %4563 = vst [vmem:[%s9905_s16 + $0x80] sm:$0xff] %v4531_v5  ;;  %v4532_v54 = vmax.f32 %v4500_v39, 0.0  ;;  %v6815_v9 = vpop.f32.mrb[116].mxu1  ;;  %v7396_v5 = vld [vmem:[%s7553_s12 + $0xe8] sm:$0xff] }
 0x408   : > { %4566 = vst [vmem:[%s9905_s16 + $0x98] sm:$0xff] %v4534_v20  ;;  %v7068_v7 = vadd.f32 %v9867_v49, %v6815_v9  ;;  %v4404_v61 = vpop.f32.mrb[117].mxu1 }
 0x409   : > { %4564 = vst [vmem:[%s9905_s16 + $0x88] sm:$0xff] %v4532_v54  ;;  %v7072_v48 = vadd.f32 %v9861_v16, %v4404_v61  ;;  %v6816_v12 = vpop.f32.mrb[118].mxu1 }
 0x40a   : > { %v4505_v62 = vadd.f32 %v7385_v50, %v7068_v7  ;;  %v7076_v23 = vadd.f32 %v9870_v14, %v6816_v12  ;;  %v4407_v41 = vpop.f32.mrb[119].mxu1 }
 0x40b   : > { %v4503_v60 = vadd.f32 %v7386_v36, %v7072_v48  ;;  %v7080_v52 = vadd.f32 %v9864_v45, %v4407_v41 }
 0x40c   : > { %v4537_v49 = vmax.f32 %v4505_v62, 0.0  ;;  %v4506_v3 = vadd.f32 %v7387_v18, %v7076_v23 }
 0x40d   : > { %v4535_v17 = vmax.f32 %v4503_v60, 0.0  ;;  %v4504_v16 = vadd.f32 %v7388_v25, %v7080_v52 }
 0x40e   : > { %4569 = vst [vmem:[%s9905_s16 + $0xb0] sm:$0xff] %v4537_v49  ;;  %v4538_v11 = vmax.f32 %v4506_v3, 0.0 }
 0x40f   : > { %4567 = vst [vmem:[%s9905_s16 + $0xa0] sm:$0xff] %v4535_v17  ;;  %v4536_v56 = vmax.f32 %v4504_v16, 0.0  ;;  %v6819_v14 = vpop.f32.mrb[120].mxu1 }
 0x410   : > { %4570 = vst [vmem:[%s9905_s16 + $0xb8] sm:$0xff] %v4538_v11  ;;  %v7084_v27 = vadd.f32 %v9879_v8, %v6819_v14  ;;  %v4420_v2 = vpop.f32.mrb[121].mxu1 }
 0x411   : > { %4568 = vst [vmem:[%s9905_s16 + $0xa8] sm:$0xff] %v4536_v56  ;;  %v7088_v45 = vadd.f32 %v9873_v15, %v4420_v2  ;;  %v6820_v46 = vpop.f32.mrb[122].mxu1 }
 0x412   : > { %v4509_v0 = vadd.f32 %v7389_v34, %v7084_v27  ;;  %v7092_v31 = vadd.f32 %v9882_v33, %v6820_v46  ;;  %v4423_v35 = vpop.f32.mrb[123].mxu1 }
 0x413   : > { %v4507_v44 = vadd.f32 %v7390_v55, %v7088_v45  ;;  %v7096_v37 = vadd.f32 %v9876_v13, %v4423_v35 }
 0x414   : > { %v4541_v8 = vmax.f32 %v4509_v0, 0.0  ;;  %v4510_v53 = vadd.f32 %v7391_v29, %v7092_v31 }
 0x415   : > { %v4539_v63 = vmax.f32 %v4507_v44, 0.0  ;;  %v4508_v15 = vadd.f32 %v7392_v59, %v7096_v37 }
 0x416   : > { %4573 = vst [vmem:[%s9905_s16 + $0xd0] sm:$0xff] %v4541_v8  ;;  %v4542_v22 = vmax.f32 %v4510_v53, 0.0 }
 0x417   : > { %4571 = vst [vmem:[%s9905_s16 + $0xc0] sm:$0xff] %v4539_v63  ;;  %v4540_v1 = vmax.f32 %v4508_v15, 0.0  ;;  %v6823_v33 = vpop.f32.mrb[124].mxu1 }
 0x418   : > { %4574 = vst [vmem:[%s9905_s16 + $0xd8] sm:$0xff] %v4542_v22  ;;  %v7100_v6 = vadd.f32 %v9891_v26, %v6823_v33  ;;  %v4436_v58 = vpop.f32.mrb[125].mxu1 }
 0x419   : > { %4572 = vst [vmem:[%s9905_s16 + $0xc8] sm:$0xff] %v4540_v1  ;;  %v7104_v13 = vadd.f32 %v9885_v10, %v4436_v58  ;;  %v6824_v19 = vpop.f32.mrb[126].mxu1 }
 0x41a   : > { %v4513_v51 = vadd.f32 %v7393_v42, %v7100_v6  ;;  %v7108_v32 = vadd.f32 %v9894_v38, %v6824_v19  ;;  %v4439_v28 = vpop.f32.mrb[127].mxu1 }
 0x41b   : > { %v4511_v47 = vadd.f32 %v7394_v30, %v7104_v13  ;;  %v7112_v43 = vadd.f32 %v9888_v40, %v4439_v28 }
 0x41c   : > { %v4545_v26 = vmax.f32 %v4513_v51, 0.0  ;;  %v4514_v21 = vadd.f32 %v7395_v4, %v7108_v32 }
 0x41d   : > { %v4543_v57 = vmax.f32 %v4511_v47, 0.0  ;;  %v4512_v24 = vadd.f32 %v7396_v5, %v7112_v43 }
 0x41e   : > { %4577 = vst [vmem:[%s9905_s16 + $0xf0] sm:$0xff] %v4545_v26  ;;  %v4546_v10 = vmax.f32 %v4514_v21, 0.0 }
 0x41f   : > { %4575 = vst [vmem:[%s9905_s16 + $0xe0] sm:$0xff] %v4543_v57  ;;  %v4544_v39 = vmax.f32 %v4512_v24, 0.0 }
 0x420   : > { %4578 = vst [vmem:[%s9905_s16 + $0xf8] sm:$0xff] %v4546_v10 }
 0x421   : > { %4576 = vst [vmem:[%s9905_s16 + $0xe8] sm:$0xff] %v4544_v39 }
 0x422 PF: > { %s15_s18 = sadd.s32 1, %s7403_s18  }
 0x423   : > { %p12_p4 = scmp.ge.s32.totalorder %s15_s18, 4  }
 0x425   :  { %14 = sbr.rel (!%p12_p4) target bundleno = 1 (0x1), region = 80 }

</bundles_post_ra>
